<compile_context>
chip_gen: v7x
topology: tpu7x:2x2x1
jax: 0.10.0
libtpu: 0.0.40
codegen_flags: <defaults>
</compile_context>

<pallas_src>
import math
import functools

import jax
import jax.numpy as jnp
import numpy as np
from jax.experimental import pallas as pl
from jax.experimental.pallas import tpu as pltpu


# ----------------------------------------------------------------------------
# Pallas kernel: one grid step == Bt batch elements.  LN1 + fused QKV run once
# over the full (Bt*T, D) rows; attention + Wo + LN2 + FFN run per query tile
# so per-tile VMEM is bounded by q_tile / ff_tile instead of T / d_ff.
# ----------------------------------------------------------------------------
def _decoder_layer_kernel(
    x_ref, mask_ref,
    ln1_w_ref, ln1_b_ref,
    wqkv_ref, bqkv_ref, wo_ref, bo_ref,
    ln2_w_ref, ln2_b_ref,
    w1_ref, b1_ref, w2_ref, b2_ref,
    out_ref, attn_ref=None,                 # attn_ref absent when return_attn=False
    *, heads: int, q_tile: int, ff_tile: int,
):
    Bt, T, D = x_ref.shape
    dh = D // heads
    d_ff = w1_ref.shape[1]
    n_q = T // q_tile
    n_f = d_ff // ff_tile
    inv_sqrt_dh = 1.0 / math.sqrt(dh)
    gelu_c = math.sqrt(2.0 / math.pi)
    mxu_dt = wqkv_ref.dtype                  # matmul-input dtype (f32 or bf16)

    def layer_norm(v, w_ref, b_ref):
        mu = jnp.mean(v, axis=-1, keepdims=True)
        var = jnp.mean((v - mu) ** 2, axis=-1, keepdims=True)
        return (v - mu) * jax.lax.rsqrt(var + 1e-5) * w_ref[...] + b_ref[...]

    x3 = x_ref[...].astype(jnp.float32)                       # (Bt, T, D)
    x2d = x3.reshape(Bt * T, D)

    # ---- LayerNorm 1 + fused QKV projection (one wide MXU matmul) ----------
    h1 = layer_norm(x2d, ln1_w_ref, ln1_b_ref)
    qkv = jnp.dot(h1.astype(mxu_dt), wqkv_ref[...],
                  preferred_element_type=jnp.float32) + bqkv_ref[...]
    q_m = (qkv[:, :D] * inv_sqrt_dh).reshape(Bt, T, D).astype(mxu_dt)
    k_m = qkv[:, D:2 * D].reshape(Bt, T, D).astype(mxu_dt)
    v_m = qkv[:, 2 * D:].reshape(Bt, T, D).astype(mxu_dt)

    pad = mask_ref[...].astype(jnp.int32)                     # (Bt, 1, T)
    col = jax.lax.broadcasted_iota(jnp.int32, (q_tile, T), 1)  # key index

    # TODO(synk): at very long T / many heads convert these static loops to
    # pl.loop over scratch-resident Q (head-major layout pass), and stream
    # W1/W2 from HBM with pltpu.emit_pipeline when d_ff no longer fits VMEM.
    for qi in range(n_q):
        q0 = qi * q_tile
        qts = slice(q0, q0 + q_tile)

        # Additive decoder mask for this query tile: (Bt, q_tile, T).
        row = q0 + jax.lax.broadcasted_iota(jnp.int32, (q_tile, T), 0)
        masked = (pad + (col > row).astype(jnp.int32)[None]) > 0
        amask = jnp.where(masked, jnp.float32(-1e18), jnp.float32(0.0))

        # ---- multi-head attention with Wo folded into the head loop --------
        so = None                                             # (Bt*q_tile, D) f32
        for h in range(heads):
            sl = slice(h * dh, (h + 1) * dh)
            s = jnp.einsum('bqd,bkd->bqk', q_m[:, qts, sl], k_m[:, :, sl],
                           preferred_element_type=jnp.float32)  # (Bt, q_tile, T)
            s = s + amask
            s = s - jnp.max(s, axis=-1, keepdims=True)        # keep masked rows finite
            p = jnp.exp(s)
            p = p * pl.reciprocal(jnp.sum(p, axis=-1, keepdims=True), approx=True)
            if h == 0 and attn_ref is not None:
                attn_ref[:, qts, :] = p.astype(attn_ref.dtype)   # OpenNMT top_attn
            ctx_h = jnp.einsum('bqk,bkd->bqd', p.astype(mxu_dt), v_m[:, :, sl],
                               preferred_element_type=jnp.float32)
            part = jnp.dot(ctx_h.reshape(Bt * q_tile, dh).astype(mxu_dt),
                           wo_ref[sl, :], preferred_element_type=jnp.float32)
            so = part if so is None else so + part

        # ---- residual, LayerNorm 2, GPT MLP (tanh GELU, d_ff streamed) -----
        x_t = x3[:, qts, :].reshape(Bt * q_tile, D)
        query_t = so + bo_ref[...] + x_t                      # dropout == id (eval)
        h2 = layer_norm(query_t, ln2_w_ref, ln2_b_ref).astype(mxu_dt)
        acc = query_t + b2_ref[...]
        for j in range(n_f):
            fs = slice(j * ff_tile, (j + 1) * ff_tile)
            ff = jnp.dot(h2, w1_ref[:, fs],
                         preferred_element_type=jnp.float32) + b1_ref[:, fs]
            ff = 0.5 * ff * (1.0 + jnp.tanh(
                gelu_c * (ff + 0.044715 * ff * ff * ff)))
            acc = acc + jnp.dot(ff.astype(mxu_dt), w2_ref[fs, :],
                                preferred_element_type=jnp.float32)
        out_ref[:, qts, :] = acc.reshape(Bt, q_tile, D).astype(out_ref.dtype)


# ----------------------------------------------------------------------------
# Wrapper
# ----------------------------------------------------------------------------
def transformer_gpt_decoder_layer(inputs, memory_bank, src_pad_mask,
                                  tgt_pad_mask, params, *, heads,
                                  batch_tile=None, q_tile=None, ff_tile=None,
                                  mxu_dtype=jnp.float32,
                                  return_attn=True, attn_dtype=jnp.float32):
    """inputs: (B, T, D) f32; tgt_pad_mask: (B, 1, T) int32.
    memory_bank / src_pad_mask are unused (unconditional layer).
    batch_tile: batch elements per grid step (default B//2 -> >=2 parallel steps).
    q_tile / ff_tile: in-kernel tiling of the sequence / d_ff dimensions.
    mxu_dtype: dtype fed to the MXU (bf16 recommended on v5e; f32 accumulation).
    return_attn=False skips the (B, T, T) attention writeback entirely."""
    del memory_bank, src_pad_mask
    B, T, D = inputs.shape
    d_ff = params["w1"].shape[1]
    assert D % heads == 0

    if batch_tile is None:
        Bt = B // 2 if (B % 2 == 0 and B >= 2) else B   # >=2 steps for v7x megacore
    else:
        Bt = batch_tile
    assert B % Bt == 0, "batch_tile must divide batch"
    if q_tile is None:
        q_tile = 128 if T % 128 == 0 else T
    assert T % q_tile == 0, "q_tile must divide seq len"
    if ff_tile is None:
        ff_tile = 512 if d_ff % 512 == 0 else d_ff
    assert d_ff % ff_tile == 0, "ff_tile must divide d_ff"

    # Host-side: fuse Q|K|V into one (D, 3D) projection; cast matmul weights to
    # the MXU dtype.  LN params and biases stay f32 (VPU/EUP math is f32).
    # TODO(synk): on v7x consider fp8 weight casts (fp8 MXU, f32 accumulate).
    wqkv = jnp.concatenate([params["wq"], params["wk"], params["wv"]], axis=1)
    bqkv = jnp.concatenate([params["bq"], params["bk"], params["bv"]], axis=1)
    weight_args = [
        params["ln1_w"], params["ln1_b"],
        wqkv.astype(mxu_dtype), bqkv.astype(jnp.float32),
        params["wo"].astype(mxu_dtype), params["bo"],
        params["ln2_w"], params["ln2_b"],
        params["w1"].astype(mxu_dtype), params["b1"],
        params["w2"].astype(mxu_dtype), params["b2"],
    ]

    # VMEM budget: ~3/4 of physical (96 MiB-class on v5e/v6e, 48 MiB on v7x).
    try:
        vmem_cap = int(pltpu.get_tpu_info().vmem_capacity_bytes)
    except Exception:
        vmem_cap = 64 * 1024 * 1024          # conservative fallback (v7x-safe)
    vmem_limit = min(int(vmem_cap * 3 // 4), 112 * 1024 * 1024)

    kernel = functools.partial(_decoder_layer_kernel, heads=heads,
                               q_tile=q_tile, ff_tile=ff_tile)

    out_specs = [pl.BlockSpec((Bt, T, D), lambda b: (b, 0, 0))]
    out_shape = [jax.ShapeDtypeStruct((B, T, D), jnp.float32)]
    if return_attn:
        out_specs.append(pl.BlockSpec((Bt, T, T), lambda b: (b, 0, 0)))
        out_shape.append(jax.ShapeDtypeStruct((B, T, T), attn_dtype))

    def _call(weight_mode):
        # Constant-index weight blocks: fetched once for the whole grid;
        # Buffered(1) removes their double-buffering (halves weight VMEM).
        def wspec(a):
            if weight_mode is None:
                return pl.BlockSpec(a.shape, lambda b: (0, 0))
            return pl.BlockSpec(a.shape, lambda b: (0, 0),
                                pipeline_mode=weight_mode)
        return pl.pallas_call(
            kernel,
            grid=(B // Bt,),
            in_specs=[
                pl.BlockSpec((Bt, T, D), lambda b: (b, 0, 0)),      # inputs
                pl.BlockSpec((Bt, 1, T), lambda b: (b, 0, 0)),      # tgt_pad_mask
            ] + [wspec(a) for a in weight_args],
            out_specs=tuple(out_specs),
            out_shape=tuple(out_shape),
            compiler_params=pltpu.CompilerParams(
                dimension_semantics=("parallel",),   # batch steps independent
                vmem_limit_bytes=vmem_limit),
        )(inputs, tgt_pad_mask, *weight_args)

    try:
        res = _call(pl.Buffered(1))
    except Exception:
        res = _call(None)                    # fallback: default double-buffering

    if return_attn:
        out, attn = res
        return out, attn
    (out,) = res
    return out, None


# ----------------------------------------------------------------------------
# Pure-JAX reference (mirrors the PyTorch forward in eval mode)
# ----------------------------------------------------------------------------
def _reference(inputs, tgt_pad_mask, params, heads):
    B, T, D = inputs.shape
    dh = D // heads

    def ln(x, w, b):
        mu = jnp.mean(x, -1, keepdims=True)
        var = jnp.mean((x - mu) ** 2, -1, keepdims=True)
        return (x - mu) / jnp.sqrt(var + 1e-5) * w + b

    future = jnp.triu(jnp.ones((T, T), jnp.int32), 1)[None]
    dec_mask = (tgt_pad_mask + future) > 0                   # (B, T, T)

    h1 = ln(inputs, params["ln1_w"], params["ln1_b"])
    q = h1 @ params["wq"] + params["bq"]
    k = h1 @ params["wk"] + params["bk"]
    v = h1 @ params["wv"] + params["bv"]
    q = q.reshape(B, T, heads, dh).transpose(0, 2, 1, 3) / math.sqrt(dh)
    k = k.reshape(B, T, heads, dh).transpose(0, 2, 1, 3)
    v = v.reshape(B, T, heads, dh).transpose(0, 2, 1, 3)
    s = jnp.einsum("bhqd,bhkd->bhqk", q, k)
    s = jnp.where(dec_mask[:, None], -1e18, s)
    p = jax.nn.softmax(s, axis=-1)
    ctx = jnp.einsum("bhqk,bhkd->bhqd", p, v).transpose(0, 2, 1, 3).reshape(B, T, D)
    self_out = ctx @ params["wo"] + params["bo"]
    query = self_out + inputs
    h2 = ln(query, params["ln2_w"], params["ln2_b"])
    ff = h2 @ params["w1"] + params["b1"]
    ff = 0.5 * ff * (1.0 + jnp.tanh(math.sqrt(2.0 / math.pi)
                                    * (ff + 0.044715 * ff ** 3)))
    ff = ff @ params["w2"] + params["b2"]
    return ff + query, p[:, 0]


if __name__ == "__main__":
    B, T, D, H = 4, 16, 64, 4
    d_ff = 4 * D
    S = 16  # src_len (unused path)

    key = jax.random.PRNGKey(0)
    ks = jax.random.split(key, 16)
    scale = 0.08
    params = {
        "ln1_w": jnp.ones((1, D), jnp.float32),
        "ln1_b": jnp.zeros((1, D), jnp.float32),
        "wq": scale * jax.random.normal(ks[0], (D, D), jnp.float32),
        "bq": scale * jax.random.normal(ks[1], (1, D), jnp.float32),
        "wk": scale * jax.random.normal(ks[2], (D, D), jnp.float32),
        "bk": scale * jax.random.normal(ks[3], (1, D), jnp.float32),
        "wv": scale * jax.random.normal(ks[4], (D, D), jnp.float32),
        "bv": scale * jax.random.normal(ks[5], (1, D), jnp.float32),
        "wo": scale * jax.random.normal(ks[6], (D, D), jnp.float32),
        "bo": scale * jax.random.normal(ks[7], (1, D), jnp.float32),
        "ln2_w": jnp.ones((1, D), jnp.float32),
        "ln2_b": jnp.zeros((1, D), jnp.float32),
        "w1": scale * jax.random.normal(ks[8], (D, d_ff), jnp.float32),
        "b1": scale * jax.random.normal(ks[9], (1, d_ff), jnp.float32),
        "w2": scale * jax.random.normal(ks[10], (d_ff, D), jnp.float32),
        "b2": scale * jax.random.normal(ks[11], (1, D), jnp.float32),
    }

    inputs = jax.random.normal(ks[12], (B, T, D), jnp.float32)
    memory_bank = jax.random.normal(ks[13], (B, S, D), jnp.float32)  # unused
    src_pad_mask = jnp.zeros((B, 1, S), jnp.int32)                   # unused
    # batch 1: last target position padded; batch 3: last two positions padded
    tgt_pad_mask = (jnp.zeros((B, 1, T), jnp.int32)
                    .at[1, 0, T - 1].set(1)
                    .at[3, 0, T - 2].set(1)
                    .at[3, 0, T - 1].set(1))

    ref_out, ref_attn = _reference(inputs, tgt_pad_mask, params, H)

    # 1) f32-at-the-MXU path, default tiling (strict check).
    out, attn = transformer_gpt_decoder_layer(
        inputs, memory_bank, src_pad_mask, tgt_pad_mask, params, heads=H)
    jax.block_until_ready((out, attn))
    np.testing.assert_allclose(np.asarray(out), np.asarray(ref_out),
                               rtol=2e-3, atol=2e-3)
    np.testing.assert_allclose(np.asarray(attn), np.asarray(ref_attn),
                               rtol=2e-3, atol=2e-3)

    # 2) bf16-at-the-MXU path with explicit query / d_ff tiling (loose check).
    out_bf, attn_bf = transformer_gpt_decoder_layer(
        inputs, memory_bank, src_pad_mask, tgt_pad_mask, params, heads=H,
        batch_tile=2, q_tile=8, ff_tile=128, mxu_dtype=jnp.bfloat16)
    jax.block_until_ready((out_bf, attn_bf))
    np.testing.assert_allclose(np.asarray(out_bf), np.asarray(ref_out),
                               rtol=5e-2, atol=5e-2)
    np.testing.assert_allclose(np.asarray(attn_bf), np.asarray(ref_attn),
                               rtol=5e-2, atol=5e-2)

    # 3) attention writeback skipped (return_attn=False), tiled, f32 strict.
    out_na, attn_na = transformer_gpt_decoder_layer(
        inputs, memory_bank, src_pad_mask, tgt_pad_mask, params, heads=H,
        q_tile=8, ff_tile=128, return_attn=False)
    jax.block_until_ready(out_na)
    assert attn_na is None
    np.testing.assert_allclose(np.asarray(out_na), np.asarray(ref_out),
                               rtol=2e-3, atol=2e-3)

    print("KERNEL_OK")
</pallas_src>

<mosaic_0001>
module attributes {stable_mosaic.version = 11 : i64} {
  func.func @_decoder_layer_kernel(%arg0: i32, %arg1: memref<2x16x64xf32, #tpu.memory_space<vmem>>, %arg2: memref<2x1x16xi32, #tpu.memory_space<vmem>>, %arg3: memref<1x64xf32, #tpu.memory_space<vmem>>, %arg4: memref<1x64xf32, #tpu.memory_space<vmem>>, %arg5: memref<64x192xf32, #tpu.memory_space<vmem>>, %arg6: memref<1x192xf32, #tpu.memory_space<vmem>>, %arg7: memref<64x64xf32, #tpu.memory_space<vmem>>, %arg8: memref<1x64xf32, #tpu.memory_space<vmem>>, %arg9: memref<1x64xf32, #tpu.memory_space<vmem>>, %arg10: memref<1x64xf32, #tpu.memory_space<vmem>>, %arg11: memref<64x256xf32, #tpu.memory_space<vmem>>, %arg12: memref<1x256xf32, #tpu.memory_space<vmem>>, %arg13: memref<256x64xf32, #tpu.memory_space<vmem>>, %arg14: memref<1x64xf32, #tpu.memory_space<vmem>>, %arg15: memref<2x16x64xf32, #tpu.memory_space<vmem>>, %arg16: memref<2x16x16xf32, #tpu.memory_space<vmem>>) attributes {dimension_semantics = [#tpu.dimension_semantics<parallel>], iteration_bounds = array<i64: 2>, scalar_prefetch = 0 : i64, scratch_operands = 0 : i64, tpu.core_type = #tpu.core_type<tc>, window_params = [{transform_indices = @transform_0, window_bounds = array<i64: 2, 16, 64>}, {transform_indices = @transform_1, window_bounds = array<i64: 2, 1, 16>}, {pipeline_mode = #tpu.pipeline_mode<synchronous>, transform_indices = @transform_2, window_bounds = array<i64: 1, 64>}, {pipeline_mode = #tpu.pipeline_mode<synchronous>, transform_indices = @transform_3, window_bounds = array<i64: 1, 64>}, {pipeline_mode = #tpu.pipeline_mode<synchronous>, transform_indices = @transform_4, window_bounds = array<i64: 64, 192>}, {pipeline_mode = #tpu.pipeline_mode<synchronous>, transform_indices = @transform_5, window_bounds = array<i64: 1, 192>}, {pipeline_mode = #tpu.pipeline_mode<synchronous>, transform_indices = @transform_6, window_bounds = array<i64: 64, 64>}, {pipeline_mode = #tpu.pipeline_mode<synchronous>, transform_indices = @transform_7, window_bounds = array<i64: 1, 64>}, {pipeline_mode = #tpu.pipeline_mode<synchronous>, transform_indices = @transform_8, window_bounds = array<i64: 1, 64>}, {pipeline_mode = #tpu.pipeline_mode<synchronous>, transform_indices = @transform_9, window_bounds = array<i64: 1, 64>}, {pipeline_mode = #tpu.pipeline_mode<synchronous>, transform_indices = @transform_10, window_bounds = array<i64: 64, 256>}, {pipeline_mode = #tpu.pipeline_mode<synchronous>, transform_indices = @transform_11, window_bounds = array<i64: 1, 256>}, {pipeline_mode = #tpu.pipeline_mode<synchronous>, transform_indices = @transform_12, window_bounds = array<i64: 256, 64>}, {pipeline_mode = #tpu.pipeline_mode<synchronous>, transform_indices = @transform_13, window_bounds = array<i64: 1, 64>}, {transform_indices = @transform_14, window_bounds = array<i64: 2, 16, 64>}, {transform_indices = @transform_15, window_bounds = array<i64: 2, 16, 16>}]} {
    %c0 = arith.constant 0 : index
    %c0_0 = arith.constant 0 : index
    %c0_1 = arith.constant 0 : index
    %0 = vector.load %arg1[%c0, %c0_0, %c0_1] : memref<2x16x64xf32, #tpu.memory_space<vmem>>, vector<2x16x64xf32>
    %1 = vector.shape_cast %0 : vector<2x16x64xf32> to vector<32x64xf32>
    %cst = arith.constant dense<0.000000e+00> : vector<32xf32>
    %2 = vector.multi_reduction <add>, %1, %cst [1] : vector<32x64xf32> to vector<32xf32>
    %3 = vector.shape_cast %2 : vector<32xf32> to vector<32x1xf32>
    %cst_2 = arith.constant 6.400000e+01 : f32
    %4 = vector.broadcast %cst_2 : f32 to vector<32x1xf32>
    %5 = arith.divf %3, %4 : vector<32x1xf32>
    %6 = vector.broadcast %5 : vector<32x1xf32> to vector<32x64xf32>
    %7 = arith.subf %1, %6 : vector<32x64xf32>
    %8 = arith.mulf %7, %7 : vector<32x64xf32>
    %cst_3 = arith.constant dense<0.000000e+00> : vector<32xf32>
    %9 = vector.multi_reduction <add>, %8, %cst_3 [1] : vector<32x64xf32> to vector<32xf32>
    %10 = vector.shape_cast %9 : vector<32xf32> to vector<32x1xf32>
    %cst_4 = arith.constant 6.400000e+01 : f32
    %11 = vector.broadcast %cst_4 : f32 to vector<32x1xf32>
    %12 = arith.divf %10, %11 : vector<32x1xf32>
    %13 = vector.broadcast %5 : vector<32x1xf32> to vector<32x64xf32>
    %14 = arith.subf %1, %13 : vector<32x64xf32>
    %cst_5 = arith.constant 9.99999974E-6 : f32
    %15 = vector.broadcast %cst_5 : f32 to vector<32x1xf32>
    %16 = arith.addf %12, %15 : vector<32x1xf32>
    %17 = math.rsqrt %16 : vector<32x1xf32>
    %18 = vector.broadcast %17 : vector<32x1xf32> to vector<32x64xf32>
    %19 = arith.mulf %14, %18 : vector<32x64xf32>
    %c0_6 = arith.constant 0 : index
    %c0_7 = arith.constant 0 : index
    %20 = vector.load %arg3[%c0_6, %c0_7] : memref<1x64xf32, #tpu.memory_space<vmem>>, vector<1x64xf32>
    %21 = vector.broadcast %20 : vector<1x64xf32> to vector<32x64xf32>
    %22 = arith.mulf %19, %21 : vector<32x64xf32>
    %c0_8 = arith.constant 0 : index
    %c0_9 = arith.constant 0 : index
    %23 = vector.load %arg4[%c0_8, %c0_9] : memref<1x64xf32, #tpu.memory_space<vmem>>, vector<1x64xf32>
    %24 = vector.broadcast %23 : vector<1x64xf32> to vector<32x64xf32>
    %25 = arith.addf %22, %24 : vector<32x64xf32>
    %c0_10 = arith.constant 0 : index
    %c0_11 = arith.constant 0 : index
    %26 = vector.load %arg5[%c0_10, %c0_11] : memref<64x192xf32, #tpu.memory_space<vmem>>, vector<64x192xf32>
    %cst_12 = arith.constant dense<0.000000e+00> : vector<32x192xf32>
    %27 = tpu.matmul %25, %26, %cst_12 {dimension_numbers = #tpu.dot_dimension_numbers<[1], [0], [0], [1], [0, 0, 1, 1], [], []>} : vector<32x64xf32>, vector<64x192xf32>, vector<32x192xf32> -> vector<32x192xf32>
    %c0_13 = arith.constant 0 : index
    %c0_14 = arith.constant 0 : index
    %28 = vector.load %arg6[%c0_13, %c0_14] : memref<1x192xf32, #tpu.memory_space<vmem>>, vector<1x192xf32>
    %29 = vector.broadcast %28 : vector<1x192xf32> to vector<32x192xf32>
    %30 = arith.addf %27, %29 : vector<32x192xf32>
    %31 = vector.extract_strided_slice %30 {offsets = [0, 0], sizes = [32, 64], strides = [1, 1]} : vector<32x192xf32> to vector<32x64xf32>
    %cst_15 = arith.constant 2.500000e-01 : f32
    %32 = vector.broadcast %cst_15 : f32 to vector<32x64xf32>
    %33 = arith.mulf %31, %32 : vector<32x64xf32>
    %34 = vector.shape_cast %33 : vector<32x64xf32> to vector<2x16x64xf32>
    %35 = vector.extract_strided_slice %30 {offsets = [0, 64], sizes = [32, 64], strides = [1, 1]} : vector<32x192xf32> to vector<32x64xf32>
    %36 = vector.shape_cast %35 : vector<32x64xf32> to vector<2x16x64xf32>
    %37 = vector.extract_strided_slice %30 {offsets = [0, 128], sizes = [32, 64], strides = [1, 1]} : vector<32x192xf32> to vector<32x64xf32>
    %38 = vector.shape_cast %37 : vector<32x64xf32> to vector<2x16x64xf32>
    %c0_16 = arith.constant 0 : index
    %c0_17 = arith.constant 0 : index
    %c0_18 = arith.constant 0 : index
    %39 = vector.load %arg2[%c0_16, %c0_17, %c0_18] : memref<2x1x16xi32, #tpu.memory_space<vmem>>, vector<2x1x16xi32>
    %40 = tpu.iota {dimensions = array<i32: 1>} : vector<16x16xi32>
    %41 = tpu.iota {dimensions = array<i32: 0>} : vector<16x16xi32>
    %c0_i32 = arith.constant 0 : i32
    %42 = vector.broadcast %c0_i32 : i32 to vector<16x16xi32>
    %43 = arith.addi %42, %41 : vector<16x16xi32>
    %44 = arith.cmpi sgt, %40, %43 : vector<16x16xi32>
    %45 = arith.extui %44 : vector<16x16xi1> to vector<16x16xi32>
    %46 = vector.shape_cast %45 : vector<16x16xi32> to vector<1x16x16xi32>
    %47 = vector.broadcast %39 : vector<2x1x16xi32> to vector<2x16x16xi32>
    %48 = vector.broadcast %46 : vector<1x16x16xi32> to vector<2x16x16xi32>
    %49 = arith.addi %47, %48 : vector<2x16x16xi32>
    %c0_i32_19 = arith.constant 0 : i32
    %50 = vector.broadcast %c0_i32_19 : i32 to vector<2x16x16xi32>
    %51 = arith.cmpi sgt, %49, %50 : vector<2x16x16xi32>
    %cst_20 = arith.constant -9.99999984E+17 : f32
    %cst_21 = arith.constant 0.000000e+00 : f32
    %52 = vector.broadcast %cst_20 : f32 to vector<2x16x16xf32>
    %53 = vector.broadcast %cst_21 : f32 to vector<2x16x16xf32>
    %54 = arith.select %51, %52, %53 : vector<2x16x16xi1>, vector<2x16x16xf32>
    %55 = vector.extract_strided_slice %34 {offsets = [0, 0, 0], sizes = [2, 16, 16], strides = [1, 1, 1]} : vector<2x16x64xf32> to vector<2x16x16xf32>
    %56 = vector.extract_strided_slice %36 {offsets = [0, 0, 0], sizes = [2, 16, 16], strides = [1, 1, 1]} : vector<2x16x64xf32> to vector<2x16x16xf32>
    "tpu.trace_start"() <{level = 10 : i32, message = "bqd,bkd->bqk"}> : () -> ()
    %cst_22 = arith.constant dense<0.000000e+00> : vector<2x16x16xf32>
    %57 = tpu.matmul %55, %56, %cst_22 {dimension_numbers = #tpu.dot_dimension_numbers<[2], [2], [1], [1], [0, 0, 0, 1, 1, 1], [0], [0]>} : vector<2x16x16xf32>, vector<2x16x16xf32>, vector<2x16x16xf32> -> vector<2x16x16xf32>
    "tpu.trace_stop"() : () -> ()
    %58 = arith.addf %57, %54 : vector<2x16x16xf32>
    %cst_23 = arith.constant dense<0xFF800000> : vector<2x16xf32>
    %59 = vector.multi_reduction <maximumf>, %58, %cst_23 [2] : vector<2x16x16xf32> to vector<2x16xf32>
    %60 = vector.shape_cast %59 : vector<2x16xf32> to vector<2x16x1xf32>
    %61 = vector.broadcast %60 : vector<2x16x1xf32> to vector<2x16x16xf32>
    %62 = arith.subf %58, %61 : vector<2x16x16xf32>
    %63 = math.exp %62 : vector<2x16x16xf32>
    %cst_24 = arith.constant dense<0.000000e+00> : vector<2x16xf32>
    %64 = vector.multi_reduction <add>, %63, %cst_24 [2] : vector<2x16x16xf32> to vector<2x16xf32>
    %65 = vector.shape_cast %64 : vector<2x16xf32> to vector<2x16x1xf32>
    %66 = tpu.reciprocal %65 {approx = true} : vector<2x16x1xf32> -> vector<2x16x1xf32>
    %67 = vector.broadcast %66 : vector<2x16x1xf32> to vector<2x16x16xf32>
    %68 = arith.mulf %63, %67 : vector<2x16x16xf32>
    %c0_25 = arith.constant 0 : index
    %c0_26 = arith.constant 0 : index
    %c0_27 = arith.constant 0 : index
    %69 = vector.load %arg16[%c0_25, %c0_26, %c0_27] : memref<2x16x16xf32, #tpu.memory_space<vmem>>, vector<2x16x16xf32>
    tpu.vector_store %arg16[%c0_25, %c0_26, %c0_27], %68 {strides = array<i32>} : memref<2x16x16xf32, #tpu.memory_space<vmem>>, vector<2x16x16xf32>,
    %70 = vector.extract_strided_slice %38 {offsets = [0, 0, 0], sizes = [2, 16, 16], strides = [1, 1, 1]} : vector<2x16x64xf32> to vector<2x16x16xf32>
    "tpu.trace_start"() <{level = 10 : i32, message = "bqk,bkd->bqd"}> : () -> ()
    %cst_28 = arith.constant dense<0.000000e+00> : vector<2x16x16xf32>
    %71 = tpu.matmul %68, %70, %cst_28 {dimension_numbers = #tpu.dot_dimension_numbers<[2], [1], [1], [2], [0, 0, 0, 1, 1, 2], [0], [0]>} : vector<2x16x16xf32>, vector<2x16x16xf32>, vector<2x16x16xf32> -> vector<2x16x16xf32>
    "tpu.trace_stop"() : () -> ()
    %72 = vector.shape_cast %71 : vector<2x16x16xf32> to vector<32x16xf32>
    %c0_29 = arith.constant 0 : index
    %c0_30 = arith.constant 0 : index
    %73 = vector.load %arg7[%c0_29, %c0_30] : memref<64x64xf32, #tpu.memory_space<vmem>>, vector<16x64xf32>
    %cst_31 = arith.constant dense<0.000000e+00> : vector<32x64xf32>
    %74 = tpu.matmul %72, %73, %cst_31 {dimension_numbers = #tpu.dot_dimension_numbers<[1], [0], [0], [1], [0, 0, 1, 1], [], []>} : vector<32x16xf32>, vector<16x64xf32>, vector<32x64xf32> -> vector<32x64xf32>
    %75 = vector.extract_strided_slice %34 {offsets = [0, 0, 16], sizes = [2, 16, 16], strides = [1, 1, 1]} : vector<2x16x64xf32> to vector<2x16x16xf32>
    %76 = vector.extract_strided_slice %36 {offsets = [0, 0, 16], sizes = [2, 16, 16], strides = [1, 1, 1]} : vector<2x16x64xf32> to vector<2x16x16xf32>
    "tpu.trace_start"() <{level = 10 : i32, message = "bqd,bkd->bqk"}> : () -> ()
    %cst_32 = arith.constant dense<0.000000e+00> : vector<2x16x16xf32>
    %77 = tpu.matmul %75, %76, %cst_32 {dimension_numbers = #tpu.dot_dimension_numbers<[2], [2], [1], [1], [0, 0, 0, 1, 1, 1], [0], [0]>} : vector<2x16x16xf32>, vector<2x16x16xf32>, vector<2x16x16xf32> -> vector<2x16x16xf32>
    "tpu.trace_stop"() : () -> ()
    %78 = arith.addf %77, %54 : vector<2x16x16xf32>
    %cst_33 = arith.constant dense<0xFF800000> : vector<2x16xf32>
    %79 = vector.multi_reduction <maximumf>, %78, %cst_33 [2] : vector<2x16x16xf32> to vector<2x16xf32>
    %80 = vector.shape_cast %79 : vector<2x16xf32> to vector<2x16x1xf32>
    %81 = vector.broadcast %80 : vector<2x16x1xf32> to vector<2x16x16xf32>
    %82 = arith.subf %78, %81 : vector<2x16x16xf32>
    %83 = math.exp %82 : vector<2x16x16xf32>
    %cst_34 = arith.constant dense<0.000000e+00> : vector<2x16xf32>
    %84 = vector.multi_reduction <add>, %83, %cst_34 [2] : vector<2x16x16xf32> to vector<2x16xf32>
    %85 = vector.shape_cast %84 : vector<2x16xf32> to vector<2x16x1xf32>
    %86 = tpu.reciprocal %85 {approx = true} : vector<2x16x1xf32> -> vector<2x16x1xf32>
    %87 = vector.broadcast %86 : vector<2x16x1xf32> to vector<2x16x16xf32>
    %88 = arith.mulf %83, %87 : vector<2x16x16xf32>
    %89 = vector.extract_strided_slice %38 {offsets = [0, 0, 16], sizes = [2, 16, 16], strides = [1, 1, 1]} : vector<2x16x64xf32> to vector<2x16x16xf32>
    "tpu.trace_start"() <{level = 10 : i32, message = "bqk,bkd->bqd"}> : () -> ()
    %cst_35 = arith.constant dense<0.000000e+00> : vector<2x16x16xf32>
    %90 = tpu.matmul %88, %89, %cst_35 {dimension_numbers = #tpu.dot_dimension_numbers<[2], [1], [1], [2], [0, 0, 0, 1, 1, 2], [0], [0]>} : vector<2x16x16xf32>, vector<2x16x16xf32>, vector<2x16x16xf32> -> vector<2x16x16xf32>
    "tpu.trace_stop"() : () -> ()
    %91 = vector.shape_cast %90 : vector<2x16x16xf32> to vector<32x16xf32>
    %c16 = arith.constant 16 : index
    %c0_36 = arith.constant 0 : index
    %92 = vector.load %arg7[%c16, %c0_36] : memref<64x64xf32, #tpu.memory_space<vmem>>, vector<16x64xf32>
    %cst_37 = arith.constant dense<0.000000e+00> : vector<32x64xf32>
    %93 = tpu.matmul %91, %92, %cst_37 {dimension_numbers = #tpu.dot_dimension_numbers<[1], [0], [0], [1], [0, 0, 1, 1], [], []>} : vector<32x16xf32>, vector<16x64xf32>, vector<32x64xf32> -> vector<32x64xf32>
    %94 = arith.addf %74, %93 : vector<32x64xf32>
    %95 = vector.extract_strided_slice %34 {offsets = [0, 0, 32], sizes = [2, 16, 16], strides = [1, 1, 1]} : vector<2x16x64xf32> to vector<2x16x16xf32>
    %96 = vector.extract_strided_slice %36 {offsets = [0, 0, 32], sizes = [2, 16, 16], strides = [1, 1, 1]} : vector<2x16x64xf32> to vector<2x16x16xf32>
    "tpu.trace_start"() <{level = 10 : i32, message = "bqd,bkd->bqk"}> : () -> ()
    %cst_38 = arith.constant dense<0.000000e+00> : vector<2x16x16xf32>
    %97 = tpu.matmul %95, %96, %cst_38 {dimension_numbers = #tpu.dot_dimension_numbers<[2], [2], [1], [1], [0, 0, 0, 1, 1, 1], [0], [0]>} : vector<2x16x16xf32>, vector<2x16x16xf32>, vector<2x16x16xf32> -> vector<2x16x16xf32>
    "tpu.trace_stop"() : () -> ()
    %98 = arith.addf %97, %54 : vector<2x16x16xf32>
    %cst_39 = arith.constant dense<0xFF800000> : vector<2x16xf32>
    %99 = vector.multi_reduction <maximumf>, %98, %cst_39 [2] : vector<2x16x16xf32> to vector<2x16xf32>
    %100 = vector.shape_cast %99 : vector<2x16xf32> to vector<2x16x1xf32>
    %101 = vector.broadcast %100 : vector<2x16x1xf32> to vector<2x16x16xf32>
    %102 = arith.subf %98, %101 : vector<2x16x16xf32>
    %103 = math.exp %102 : vector<2x16x16xf32>
    %cst_40 = arith.constant dense<0.000000e+00> : vector<2x16xf32>
    %104 = vector.multi_reduction <add>, %103, %cst_40 [2] : vector<2x16x16xf32> to vector<2x16xf32>
    %105 = vector.shape_cast %104 : vector<2x16xf32> to vector<2x16x1xf32>
    %106 = tpu.reciprocal %105 {approx = true} : vector<2x16x1xf32> -> vector<2x16x1xf32>
    %107 = vector.broadcast %106 : vector<2x16x1xf32> to vector<2x16x16xf32>
    %108 = arith.mulf %103, %107 : vector<2x16x16xf32>
    %109 = vector.extract_strided_slice %38 {offsets = [0, 0, 32], sizes = [2, 16, 16], strides = [1, 1, 1]} : vector<2x16x64xf32> to vector<2x16x16xf32>
    "tpu.trace_start"() <{level = 10 : i32, message = "bqk,bkd->bqd"}> : () -> ()
    %cst_41 = arith.constant dense<0.000000e+00> : vector<2x16x16xf32>
    %110 = tpu.matmul %108, %109, %cst_41 {dimension_numbers = #tpu.dot_dimension_numbers<[2], [1], [1], [2], [0, 0, 0, 1, 1, 2], [0], [0]>} : vector<2x16x16xf32>, vector<2x16x16xf32>, vector<2x16x16xf32> -> vector<2x16x16xf32>
    "tpu.trace_stop"() : () -> ()
    %111 = vector.shape_cast %110 : vector<2x16x16xf32> to vector<32x16xf32>
    %c32 = arith.constant 32 : index
    %c0_42 = arith.constant 0 : index
    %112 = vector.load %arg7[%c32, %c0_42] : memref<64x64xf32, #tpu.memory_space<vmem>>, vector<16x64xf32>
    %cst_43 = arith.constant dense<0.000000e+00> : vector<32x64xf32>
    %113 = tpu.matmul %111, %112, %cst_43 {dimension_numbers = #tpu.dot_dimension_numbers<[1], [0], [0], [1], [0, 0, 1, 1], [], []>} : vector<32x16xf32>, vector<16x64xf32>, vector<32x64xf32> -> vector<32x64xf32>
    %114 = arith.addf %94, %113 : vector<32x64xf32>
    %115 = vector.extract_strided_slice %34 {offsets = [0, 0, 48], sizes = [2, 16, 16], strides = [1, 1, 1]} : vector<2x16x64xf32> to vector<2x16x16xf32>
    %116 = vector.extract_strided_slice %36 {offsets = [0, 0, 48], sizes = [2, 16, 16], strides = [1, 1, 1]} : vector<2x16x64xf32> to vector<2x16x16xf32>
    "tpu.trace_start"() <{level = 10 : i32, message = "bqd,bkd->bqk"}> : () -> ()
    %cst_44 = arith.constant dense<0.000000e+00> : vector<2x16x16xf32>
    %117 = tpu.matmul %115, %116, %cst_44 {dimension_numbers = #tpu.dot_dimension_numbers<[2], [2], [1], [1], [0, 0, 0, 1, 1, 1], [0], [0]>} : vector<2x16x16xf32>, vector<2x16x16xf32>, vector<2x16x16xf32> -> vector<2x16x16xf32>
    "tpu.trace_stop"() : () -> ()
    %118 = arith.addf %117, %54 : vector<2x16x16xf32>
    %cst_45 = arith.constant dense<0xFF800000> : vector<2x16xf32>
    %119 = vector.multi_reduction <maximumf>, %118, %cst_45 [2] : vector<2x16x16xf32> to vector<2x16xf32>
    %120 = vector.shape_cast %119 : vector<2x16xf32> to vector<2x16x1xf32>
    %121 = vector.broadcast %120 : vector<2x16x1xf32> to vector<2x16x16xf32>
    %122 = arith.subf %118, %121 : vector<2x16x16xf32>
    %123 = math.exp %122 : vector<2x16x16xf32>
    %cst_46 = arith.constant dense<0.000000e+00> : vector<2x16xf32>
    %124 = vector.multi_reduction <add>, %123, %cst_46 [2] : vector<2x16x16xf32> to vector<2x16xf32>
    %125 = vector.shape_cast %124 : vector<2x16xf32> to vector<2x16x1xf32>
    %126 = tpu.reciprocal %125 {approx = true} : vector<2x16x1xf32> -> vector<2x16x1xf32>
    %127 = vector.broadcast %126 : vector<2x16x1xf32> to vector<2x16x16xf32>
    %128 = arith.mulf %123, %127 : vector<2x16x16xf32>
    %129 = vector.extract_strided_slice %38 {offsets = [0, 0, 48], sizes = [2, 16, 16], strides = [1, 1, 1]} : vector<2x16x64xf32> to vector<2x16x16xf32>
    "tpu.trace_start"() <{level = 10 : i32, message = "bqk,bkd->bqd"}> : () -> ()
    %cst_47 = arith.constant dense<0.000000e+00> : vector<2x16x16xf32>
    %130 = tpu.matmul %128, %129, %cst_47 {dimension_numbers = #tpu.dot_dimension_numbers<[2], [1], [1], [2], [0, 0, 0, 1, 1, 2], [0], [0]>} : vector<2x16x16xf32>, vector<2x16x16xf32>, vector<2x16x16xf32> -> vector<2x16x16xf32>
    "tpu.trace_stop"() : () -> ()
    %131 = vector.shape_cast %130 : vector<2x16x16xf32> to vector<32x16xf32>
    %c48 = arith.constant 48 : index
    %c0_48 = arith.constant 0 : index
    %132 = vector.load %arg7[%c48, %c0_48] : memref<64x64xf32, #tpu.memory_space<vmem>>, vector<16x64xf32>
    %cst_49 = arith.constant dense<0.000000e+00> : vector<32x64xf32>
    %133 = tpu.matmul %131, %132, %cst_49 {dimension_numbers = #tpu.dot_dimension_numbers<[1], [0], [0], [1], [0, 0, 1, 1], [], []>} : vector<32x16xf32>, vector<16x64xf32>, vector<32x64xf32> -> vector<32x64xf32>
    %134 = arith.addf %114, %133 : vector<32x64xf32>
    %135 = vector.shape_cast %0 : vector<2x16x64xf32> to vector<32x64xf32>
    %c0_50 = arith.constant 0 : index
    %c0_51 = arith.constant 0 : index
    %136 = vector.load %arg8[%c0_50, %c0_51] : memref<1x64xf32, #tpu.memory_space<vmem>>, vector<1x64xf32>
    %137 = vector.broadcast %136 : vector<1x64xf32> to vector<32x64xf32>
    %138 = arith.addf %134, %137 : vector<32x64xf32>
    %139 = arith.addf %138, %135 : vector<32x64xf32>
    %cst_52 = arith.constant dense<0.000000e+00> : vector<32xf32>
    %140 = vector.multi_reduction <add>, %139, %cst_52 [1] : vector<32x64xf32> to vector<32xf32>
    %141 = vector.shape_cast %140 : vector<32xf32> to vector<32x1xf32>
    %cst_53 = arith.constant 6.400000e+01 : f32
    %142 = vector.broadcast %cst_53 : f32 to vector<32x1xf32>
    %143 = arith.divf %141, %142 : vector<32x1xf32>
    %144 = vector.broadcast %143 : vector<32x1xf32> to vector<32x64xf32>
    %145 = arith.subf %139, %144 : vector<32x64xf32>
    %146 = arith.mulf %145, %145 : vector<32x64xf32>
    %cst_54 = arith.constant dense<0.000000e+00> : vector<32xf32>
    %147 = vector.multi_reduction <add>, %146, %cst_54 [1] : vector<32x64xf32> to vector<32xf32>
    %148 = vector.shape_cast %147 : vector<32xf32> to vector<32x1xf32>
    %cst_55 = arith.constant 6.400000e+01 : f32
    %149 = vector.broadcast %cst_55 : f32 to vector<32x1xf32>
    %150 = arith.divf %148, %149 : vector<32x1xf32>
    %151 = vector.broadcast %143 : vector<32x1xf32> to vector<32x64xf32>
    %152 = arith.subf %139, %151 : vector<32x64xf32>
    %cst_56 = arith.constant 9.99999974E-6 : f32
    %153 = vector.broadcast %cst_56 : f32 to vector<32x1xf32>
    %154 = arith.addf %150, %153 : vector<32x1xf32>
    %155 = math.rsqrt %154 : vector<32x1xf32>
    %156 = vector.broadcast %155 : vector<32x1xf32> to vector<32x64xf32>
    %157 = arith.mulf %152, %156 : vector<32x64xf32>
    %c0_57 = arith.constant 0 : index
    %c0_58 = arith.constant 0 : index
    %158 = vector.load %arg9[%c0_57, %c0_58] : memref<1x64xf32, #tpu.memory_space<vmem>>, vector<1x64xf32>
    %159 = vector.broadcast %158 : vector<1x64xf32> to vector<32x64xf32>
    %160 = arith.mulf %157, %159 : vector<32x64xf32>
    %c0_59 = arith.constant 0 : index
    %c0_60 = arith.constant 0 : index
    %161 = vector.load %arg10[%c0_59, %c0_60] : memref<1x64xf32, #tpu.memory_space<vmem>>, vector<1x64xf32>
    %162 = vector.broadcast %161 : vector<1x64xf32> to vector<32x64xf32>
    %163 = arith.addf %160, %162 : vector<32x64xf32>
    %c0_61 = arith.constant 0 : index
    %c0_62 = arith.constant 0 : index
    %164 = vector.load %arg14[%c0_61, %c0_62] : memref<1x64xf32, #tpu.memory_space<vmem>>, vector<1x64xf32>
    %165 = vector.broadcast %164 : vector<1x64xf32> to vector<32x64xf32>
    %166 = arith.addf %139, %165 : vector<32x64xf32>
    %c0_63 = arith.constant 0 : index
    %c0_64 = arith.constant 0 : index
    %167 = vector.load %arg11[%c0_63, %c0_64] : memref<64x256xf32, #tpu.memory_space<vmem>>, vector<64x256xf32>
    %cst_65 = arith.constant dense<0.000000e+00> : vector<32x256xf32>
    %168 = tpu.matmul %163, %167, %cst_65 {dimension_numbers = #tpu.dot_dimension_numbers<[1], [0], [0], [1], [0, 0, 1, 1], [], []>} : vector<32x64xf32>, vector<64x256xf32>, vector<32x256xf32> -> vector<32x256xf32>
    %c0_66 = arith.constant 0 : index
    %c0_67 = arith.constant 0 : index
    %169 = vector.load %arg12[%c0_66, %c0_67] : memref<1x256xf32, #tpu.memory_space<vmem>>, vector<1x256xf32>
    %170 = vector.broadcast %169 : vector<1x256xf32> to vector<32x256xf32>
    %171 = arith.addf %168, %170 : vector<32x256xf32>
    %cst_68 = arith.constant 5.000000e-01 : f32
    %172 = vector.broadcast %cst_68 : f32 to vector<32x256xf32>
    %173 = arith.mulf %172, %171 : vector<32x256xf32>
    %cst_69 = arith.constant 4.471500e-02 : f32
    %174 = vector.broadcast %cst_69 : f32 to vector<32x256xf32>
    %175 = arith.mulf %174, %171 : vector<32x256xf32>
    %176 = arith.mulf %175, %171 : vector<32x256xf32>
    %177 = arith.mulf %176, %171 : vector<32x256xf32>
    %178 = arith.addf %171, %177 : vector<32x256xf32>
    %cst_70 = arith.constant 0.797884583 : f32
    %179 = vector.broadcast %cst_70 : f32 to vector<32x256xf32>
    %180 = arith.mulf %179, %178 : vector<32x256xf32>
    %181 = math.tanh %180 : vector<32x256xf32>
    %cst_71 = arith.constant 1.000000e+00 : f32
    %182 = vector.broadcast %cst_71 : f32 to vector<32x256xf32>
    %183 = arith.addf %182, %181 : vector<32x256xf32>
    %184 = arith.mulf %173, %183 : vector<32x256xf32>
    %c0_72 = arith.constant 0 : index
    %c0_73 = arith.constant 0 : index
    %185 = vector.load %arg13[%c0_72, %c0_73] : memref<256x64xf32, #tpu.memory_space<vmem>>, vector<256x64xf32>
    %cst_74 = arith.constant dense<0.000000e+00> : vector<32x64xf32>
    %186 = tpu.matmul %184, %185, %cst_74 {dimension_numbers = #tpu.dot_dimension_numbers<[1], [0], [0], [1], [0, 0, 1, 1], [], []>} : vector<32x256xf32>, vector<256x64xf32>, vector<32x64xf32> -> vector<32x64xf32>
    %187 = arith.addf %166, %186 : vector<32x64xf32>
    %188 = vector.shape_cast %187 : vector<32x64xf32> to vector<2x16x64xf32>
    %c0_75 = arith.constant 0 : index
    %c0_76 = arith.constant 0 : index
    %c0_77 = arith.constant 0 : index
    %189 = vector.load %arg15[%c0_75, %c0_76, %c0_77] : memref<2x16x64xf32, #tpu.memory_space<vmem>>, vector<2x16x64xf32>
    tpu.vector_store %arg15[%c0_75, %c0_76, %c0_77], %188 {strides = array<i32>} : memref<2x16x64xf32, #tpu.memory_space<vmem>>, vector<2x16x64xf32>,
    return
  }
  func.func @transform_0(%arg0: i32) -> (i32, i32, i32) {
    %c0_i32 = arith.constant 0 : i32
    %c0_i32_0 = arith.constant 0 : i32
    %c0_i32_1 = arith.constant 0 : i32
    return %arg0, %c0_i32, %c0_i32_0 : i32, i32, i32
  }
  func.func @transform_1(%arg0: i32) -> (i32, i32, i32) {
    %c0_i32 = arith.constant 0 : i32
    %c0_i32_0 = arith.constant 0 : i32
    %c0_i32_1 = arith.constant 0 : i32
    return %arg0, %c0_i32, %c0_i32_0 : i32, i32, i32
  }
  func.func @transform_2(%arg0: i32) -> (i32, i32) {
    %c0_i32 = arith.constant 0 : i32
    %c0_i32_0 = arith.constant 0 : i32
    %c0_i32_1 = arith.constant 0 : i32
    return %c0_i32, %c0_i32_0 : i32, i32
  }
  func.func @transform_3(%arg0: i32) -> (i32, i32) {
    %c0_i32 = arith.constant 0 : i32
    %c0_i32_0 = arith.constant 0 : i32
    %c0_i32_1 = arith.constant 0 : i32
    return %c0_i32, %c0_i32_0 : i32, i32
  }
  func.func @transform_4(%arg0: i32) -> (i32, i32) {
    %c0_i32 = arith.constant 0 : i32
    %c0_i32_0 = arith.constant 0 : i32
    %c0_i32_1 = arith.constant 0 : i32
    return %c0_i32, %c0_i32_0 : i32, i32
  }
  func.func @transform_5(%arg0: i32) -> (i32, i32) {
    %c0_i32 = arith.constant 0 : i32
    %c0_i32_0 = arith.constant 0 : i32
    %c0_i32_1 = arith.constant 0 : i32
    return %c0_i32, %c0_i32_0 : i32, i32
  }
  func.func @transform_6(%arg0: i32) -> (i32, i32) {
    %c0_i32 = arith.constant 0 : i32
    %c0_i32_0 = arith.constant 0 : i32
    %c0_i32_1 = arith.constant 0 : i32
    return %c0_i32, %c0_i32_0 : i32, i32
  }
  func.func @transform_7(%arg0: i32) -> (i32, i32) {
    %c0_i32 = arith.constant 0 : i32
    %c0_i32_0 = arith.constant 0 : i32
    %c0_i32_1 = arith.constant 0 : i32
    return %c0_i32, %c0_i32_0 : i32, i32
  }
  func.func @transform_8(%arg0: i32) -> (i32, i32) {
    %c0_i32 = arith.constant 0 : i32
    %c0_i32_0 = arith.constant 0 : i32
    %c0_i32_1 = arith.constant 0 : i32
    return %c0_i32, %c0_i32_0 : i32, i32
  }
  func.func @transform_9(%arg0: i32) -> (i32, i32) {
    %c0_i32 = arith.constant 0 : i32
    %c0_i32_0 = arith.constant 0 : i32
    %c0_i32_1 = arith.constant 0 : i32
    return %c0_i32, %c0_i32_0 : i32, i32
  }
  func.func @transform_10(%arg0: i32) -> (i32, i32) {
    %c0_i32 = arith.constant 0 : i32
    %c0_i32_0 = arith.constant 0 : i32
    %c0_i32_1 = arith.constant 0 : i32
    return %c0_i32, %c0_i32_0 : i32, i32
  }
  func.func @transform_11(%arg0: i32) -> (i32, i32) {
    %c0_i32 = arith.constant 0 : i32
    %c0_i32_0 = arith.constant 0 : i32
    %c0_i32_1 = arith.constant 0 : i32
    return %c0_i32, %c0_i32_0 : i32, i32
  }
  func.func @transform_12(%arg0: i32) -> (i32, i32) {
    %c0_i32 = arith.constant 0 : i32
    %c0_i32_0 = arith.constant 0 : i32
    %c0_i32_1 = arith.constant 0 : i32
    return %c0_i32, %c0_i32_0 : i32, i32
  }
  func.func @transform_13(%arg0: i32) -> (i32, i32) {
    %c0_i32 = arith.constant 0 : i32
    %c0_i32_0 = arith.constant 0 : i32
    %c0_i32_1 = arith.constant 0 : i32
    return %c0_i32, %c0_i32_0 : i32, i32
  }
  func.func @transform_14(%arg0: i32) -> (i32, i32, i32) {
    %c0_i32 = arith.constant 0 : i32
    %c0_i32_0 = arith.constant 0 : i32
    %c0_i32_1 = arith.constant 0 : i32
    return %arg0, %c0_i32, %c0_i32_0 : i32, i32, i32
  }
  func.func @transform_15(%arg0: i32) -> (i32, i32, i32) {
    %c0_i32 = arith.constant 0 : i32
    %c0_i32_0 = arith.constant 0 : i32
    %c0_i32_1 = arith.constant 0 : i32
    return %arg0, %c0_i32, %c0_i32_0 : i32, i32, i32
  }
}

module attributes {stable_mosaic.version = 11 : i64} {
  func.func @_decoder_layer_kernel(%arg0: i32, %arg1: memref<2x16x64xf32, #tpu.memory_space<vmem>>, %arg2: memref<2x1x16xi32, #tpu.memory_space<vmem>>, %arg3: memref<1x64xf32, #tpu.memory_space<vmem>>, %arg4: memref<1x64xf32, #tpu.memory_space<vmem>>, %arg5: memref<64x192xf32, #tpu.memory_space<vmem>>, %arg6: memref<1x192xf32, #tpu.memory_space<vmem>>, %arg7: memref<64x64xf32, #tpu.memory_space<vmem>>, %arg8: memref<1x64xf32, #tpu.memory_space<vmem>>, %arg9: memref<1x64xf32, #tpu.memory_space<vmem>>, %arg10: memref<1x64xf32, #tpu.memory_space<vmem>>, %arg11: memref<64x256xf32, #tpu.memory_space<vmem>>, %arg12: memref<1x256xf32, #tpu.memory_space<vmem>>, %arg13: memref<256x64xf32, #tpu.memory_space<vmem>>, %arg14: memref<1x64xf32, #tpu.memory_space<vmem>>, %arg15: memref<2x16x64xf32, #tpu.memory_space<vmem>>, %arg16: memref<2x16x16xf32, #tpu.memory_space<vmem>>) attributes {dimension_semantics = [#tpu.dimension_semantics<parallel>], iteration_bounds = array<i64: 2>, scalar_prefetch = 0 : i64, scratch_operands = 0 : i64, tpu.core_type = #tpu.core_type<tc>, window_params = [{transform_indices = @transform_0, window_bounds = array<i64: 2, 16, 64>}, {transform_indices = @transform_1, window_bounds = array<i64: 2, 1, 16>}, {pipeline_mode = #tpu.pipeline_mode<synchronous>, transform_indices = @transform_2, window_bounds = array<i64: 1, 64>}, {pipeline_mode = #tpu.pipeline_mode<synchronous>, transform_indices = @transform_3, window_bounds = array<i64: 1, 64>}, {pipeline_mode = #tpu.pipeline_mode<synchronous>, transform_indices = @transform_4, window_bounds = array<i64: 64, 192>}, {pipeline_mode = #tpu.pipeline_mode<synchronous>, transform_indices = @transform_5, window_bounds = array<i64: 1, 192>}, {pipeline_mode = #tpu.pipeline_mode<synchronous>, transform_indices = @transform_6, window_bounds = array<i64: 64, 64>}, {pipeline_mode = #tpu.pipeline_mode<synchronous>, transform_indices = @transform_7, window_bounds = array<i64: 1, 64>}, {pipeline_mode = #tpu.pipeline_mode<synchronous>, transform_indices = @transform_8, window_bounds = array<i64: 1, 64>}, {pipeline_mode = #tpu.pipeline_mode<synchronous>, transform_indices = @transform_9, window_bounds = array<i64: 1, 64>}, {pipeline_mode = #tpu.pipeline_mode<synchronous>, transform_indices = @transform_10, window_bounds = array<i64: 64, 256>}, {pipeline_mode = #tpu.pipeline_mode<synchronous>, transform_indices = @transform_11, window_bounds = array<i64: 1, 256>}, {pipeline_mode = #tpu.pipeline_mode<synchronous>, transform_indices = @transform_12, window_bounds = array<i64: 256, 64>}, {pipeline_mode = #tpu.pipeline_mode<synchronous>, transform_indices = @transform_13, window_bounds = array<i64: 1, 64>}, {transform_indices = @transform_14, window_bounds = array<i64: 2, 16, 64>}, {transform_indices = @transform_15, window_bounds = array<i64: 2, 16, 16>}]} {
    %c0 = arith.constant 0 : index
    %c0_0 = arith.constant 0 : index
    %c0_1 = arith.constant 0 : index
    %0 = vector.load %arg1[%c0, %c0_0, %c0_1] : memref<2x16x64xf32, #tpu.memory_space<vmem>>, vector<2x16x64xf32>
    %1 = vector.shape_cast %0 : vector<2x16x64xf32> to vector<32x64xf32>
    %cst = arith.constant dense<0.000000e+00> : vector<32xf32>
    %2 = vector.multi_reduction <add>, %1, %cst [1] : vector<32x64xf32> to vector<32xf32>
    %3 = vector.shape_cast %2 : vector<32xf32> to vector<32x1xf32>
    %cst_2 = arith.constant 6.400000e+01 : f32
    %4 = vector.broadcast %cst_2 : f32 to vector<32x1xf32>
    %5 = arith.divf %3, %4 : vector<32x1xf32>
    %6 = vector.broadcast %5 : vector<32x1xf32> to vector<32x64xf32>
    %7 = arith.subf %1, %6 : vector<32x64xf32>
    %8 = arith.mulf %7, %7 : vector<32x64xf32>
    %cst_3 = arith.constant dense<0.000000e+00> : vector<32xf32>
    %9 = vector.multi_reduction <add>, %8, %cst_3 [1] : vector<32x64xf32> to vector<32xf32>
    %10 = vector.shape_cast %9 : vector<32xf32> to vector<32x1xf32>
    %cst_4 = arith.constant 6.400000e+01 : f32
    %11 = vector.broadcast %cst_4 : f32 to vector<32x1xf32>
    %12 = arith.divf %10, %11 : vector<32x1xf32>
    %13 = vector.broadcast %5 : vector<32x1xf32> to vector<32x64xf32>
    %14 = arith.subf %1, %13 : vector<32x64xf32>
    %cst_5 = arith.constant 9.99999974E-6 : f32
    %15 = vector.broadcast %cst_5 : f32 to vector<32x1xf32>
    %16 = arith.addf %12, %15 : vector<32x1xf32>
    %17 = math.rsqrt %16 : vector<32x1xf32>
    %18 = vector.broadcast %17 : vector<32x1xf32> to vector<32x64xf32>
    %19 = arith.mulf %14, %18 : vector<32x64xf32>
    %c0_6 = arith.constant 0 : index
    %c0_7 = arith.constant 0 : index
    %20 = vector.load %arg3[%c0_6, %c0_7] : memref<1x64xf32, #tpu.memory_space<vmem>>, vector<1x64xf32>
    %21 = vector.broadcast %20 : vector<1x64xf32> to vector<32x64xf32>
    %22 = arith.mulf %19, %21 : vector<32x64xf32>
    %c0_8 = arith.constant 0 : index
    %c0_9 = arith.constant 0 : index
    %23 = vector.load %arg4[%c0_8, %c0_9] : memref<1x64xf32, #tpu.memory_space<vmem>>, vector<1x64xf32>
    %24 = vector.broadcast %23 : vector<1x64xf32> to vector<32x64xf32>
    %25 = arith.addf %22, %24 : vector<32x64xf32>
    %c0_10 = arith.constant 0 : index
    %c0_11 = arith.constant 0 : index
    %26 = vector.load %arg5[%c0_10, %c0_11] : memref<64x192xf32, #tpu.memory_space<vmem>>, vector<64x192xf32>
    %cst_12 = arith.constant dense<0.000000e+00> : vector<32x192xf32>
    %27 = tpu.matmul %25, %26, %cst_12 {dimension_numbers = #tpu.dot_dimension_numbers<[1], [0], [0], [1], [0, 0, 1, 1], [], []>} : vector<32x64xf32>, vector<64x192xf32>, vector<32x192xf32> -> vector<32x192xf32>
    %c0_13 = arith.constant 0 : index
    %c0_14 = arith.constant 0 : index
    %28 = vector.load %arg6[%c0_13, %c0_14] : memref<1x192xf32, #tpu.memory_space<vmem>>, vector<1x192xf32>
    %29 = vector.broadcast %28 : vector<1x192xf32> to vector<32x192xf32>
    %30 = arith.addf %27, %29 : vector<32x192xf32>
    %31 = vector.extract_strided_slice %30 {offsets = [0, 0], sizes = [32, 64], strides = [1, 1]} : vector<32x192xf32> to vector<32x64xf32>
    %cst_15 = arith.constant 2.500000e-01 : f32
    %32 = vector.broadcast %cst_15 : f32 to vector<32x64xf32>
    %33 = arith.mulf %31, %32 : vector<32x64xf32>
    %34 = vector.shape_cast %33 : vector<32x64xf32> to vector<2x16x64xf32>
    %35 = vector.extract_strided_slice %30 {offsets = [0, 64], sizes = [32, 64], strides = [1, 1]} : vector<32x192xf32> to vector<32x64xf32>
    %36 = vector.shape_cast %35 : vector<32x64xf32> to vector<2x16x64xf32>
    %37 = vector.extract_strided_slice %30 {offsets = [0, 128], sizes = [32, 64], strides = [1, 1]} : vector<32x192xf32> to vector<32x64xf32>
    %38 = vector.shape_cast %37 : vector<32x64xf32> to vector<2x16x64xf32>
    %c0_16 = arith.constant 0 : index
    %c0_17 = arith.constant 0 : index
    %c0_18 = arith.constant 0 : index
    %39 = vector.load %arg2[%c0_16, %c0_17, %c0_18] : memref<2x1x16xi32, #tpu.memory_space<vmem>>, vector<2x1x16xi32>
    %40 = tpu.iota {dimensions = array<i32: 1>} : vector<16x16xi32>
    %41 = tpu.iota {dimensions = array<i32: 0>} : vector<16x16xi32>
    %c0_i32 = arith.constant 0 : i32
    %42 = vector.broadcast %c0_i32 : i32 to vector<16x16xi32>
    %43 = arith.addi %42, %41 : vector<16x16xi32>
    %44 = arith.cmpi sgt, %40, %43 : vector<16x16xi32>
    %45 = arith.extui %44 : vector<16x16xi1> to vector<16x16xi32>
    %46 = vector.shape_cast %45 : vector<16x16xi32> to vector<1x16x16xi32>
    %47 = vector.broadcast %39 : vector<2x1x16xi32> to vector<2x16x16xi32>
    %48 = vector.broadcast %46 : vector<1x16x16xi32> to vector<2x16x16xi32>
    %49 = arith.addi %47, %48 : vector<2x16x16xi32>
    %c0_i32_19 = arith.constant 0 : i32
    %50 = vector.broadcast %c0_i32_19 : i32 to vector<2x16x16xi32>
    %51 = arith.cmpi sgt, %49, %50 : vector<2x16x16xi32>
    %cst_20 = arith.constant -9.99999984E+17 : f32
    %cst_21 = arith.constant 0.000000e+00 : f32
    %52 = vector.broadcast %cst_20 : f32 to vector<2x16x16xf32>
    %53 = vector.broadcast %cst_21 : f32 to vector<2x16x16xf32>
    %54 = arith.select %51, %52, %53 : vector<2x16x16xi1>, vector<2x16x16xf32>
    %55 = vector.extract_strided_slice %34 {offsets = [0, 0, 0], sizes = [2, 16, 16], strides = [1, 1, 1]} : vector<2x16x64xf32> to vector<2x16x16xf32>
    %56 = vector.extract_strided_slice %36 {offsets = [0, 0, 0], sizes = [2, 16, 16], strides = [1, 1, 1]} : vector<2x16x64xf32> to vector<2x16x16xf32>
    "tpu.trace_start"() <{level = 10 : i32, message = "bqd,bkd->bqk"}> : () -> ()
    %cst_22 = arith.constant dense<0.000000e+00> : vector<2x16x16xf32>
    %57 = tpu.matmul %55, %56, %cst_22 {dimension_numbers = #tpu.dot_dimension_numbers<[2], [2], [1], [1], [0, 0, 0, 1, 1, 1], [0], [0]>} : vector<2x16x16xf32>, vector<2x16x16xf32>, vector<2x16x16xf32> -> vector<2x16x16xf32>
    "tpu.trace_stop"() : () -> ()
    %58 = arith.addf %57, %54 : vector<2x16x16xf32>
    %cst_23 = arith.constant dense<0xFF800000> : vector<2x16xf32>
    %59 = vector.multi_reduction <maximumf>, %58, %cst_23 [2] : vector<2x16x16xf32> to vector<2x16xf32>
    %60 = vector.shape_cast %59 : vector<2x16xf32> to vector<2x16x1xf32>
    %61 = vector.broadcast %60 : vector<2x16x1xf32> to vector<2x16x16xf32>
    %62 = arith.subf %58, %61 : vector<2x16x16xf32>
    %63 = math.exp %62 : vector<2x16x16xf32>
    %cst_24 = arith.constant dense<0.000000e+00> : vector<2x16xf32>
    %64 = vector.multi_reduction <add>, %63, %cst_24 [2] : vector<2x16x16xf32> to vector<2x16xf32>
    %65 = vector.shape_cast %64 : vector<2x16xf32> to vector<2x16x1xf32>
    %66 = tpu.reciprocal %65 {approx = true} : vector<2x16x1xf32> -> vector<2x16x1xf32>
    %67 = vector.broadcast %66 : vector<2x16x1xf32> to vector<2x16x16xf32>
    %68 = arith.mulf %63, %67 : vector<2x16x16xf32>
    %c0_25 = arith.constant 0 : index
    %c0_26 = arith.constant 0 : index
    %c0_27 = arith.constant 0 : index
    %69 = vector.load %arg16[%c0_25, %c0_26, %c0_27] : memref<2x16x16xf32, #tpu.memory_space<vmem>>, vector<2x16x16xf32>
    tpu.vector_store %arg16[%c0_25, %c0_26, %c0_27], %68 {strides = array<i32>} : memref<2x16x16xf32, #tpu.memory_space<vmem>>, vector<2x16x16xf32>,
    %70 = vector.extract_strided_slice %38 {offsets = [0, 0, 0], sizes = [2, 16, 16], strides = [1, 1, 1]} : vector<2x16x64xf32> to vector<2x16x16xf32>
    "tpu.trace_start"() <{level = 10 : i32, message = "bqk,bkd->bqd"}> : () -> ()
    %cst_28 = arith.constant dense<0.000000e+00> : vector<2x16x16xf32>
    %71 = tpu.matmul %68, %70, %cst_28 {dimension_numbers = #tpu.dot_dimension_numbers<[2], [1], [1], [2], [0, 0, 0, 1, 1, 2], [0], [0]>} : vector<2x16x16xf32>, vector<2x16x16xf32>, vector<2x16x16xf32> -> vector<2x16x16xf32>
    "tpu.trace_stop"() : () -> ()
    %72 = vector.shape_cast %71 : vector<2x16x16xf32> to vector<32x16xf32>
    %c0_29 = arith.constant 0 : index
    %c0_30 = arith.constant 0 : index
    %73 = vector.load %arg7[%c0_29, %c0_30] : memref<64x64xf32, #tpu.memory_space<vmem>>, vector<16x64xf32>
    %cst_31 = arith.constant dense<0.000000e+00> : vector<32x64xf32>
    %74 = tpu.matmul %72, %73, %cst_31 {dimension_numbers = #tpu.dot_dimension_numbers<[1], [0], [0], [1], [0, 0, 1, 1], [], []>} : vector<32x16xf32>, vector<16x64xf32>, vector<32x64xf32> -> vector<32x64xf32>
    %75 = vector.extract_strided_slice %34 {offsets = [0, 0, 16], sizes = [2, 16, 16], strides = [1, 1, 1]} : vector<2x16x64xf32> to vector<2x16x16xf32>
    %76 = vector.extract_strided_slice %36 {offsets = [0, 0, 16], sizes = [2, 16, 16], strides = [1, 1, 1]} : vector<2x16x64xf32> to vector<2x16x16xf32>
    "tpu.trace_start"() <{level = 10 : i32, message = "bqd,bkd->bqk"}> : () -> ()
    %cst_32 = arith.constant dense<0.000000e+00> : vector<2x16x16xf32>
    %77 = tpu.matmul %75, %76, %cst_32 {dimension_numbers = #tpu.dot_dimension_numbers<[2], [2], [1], [1], [0, 0, 0, 1, 1, 1], [0], [0]>} : vector<2x16x16xf32>, vector<2x16x16xf32>, vector<2x16x16xf32> -> vector<2x16x16xf32>
    "tpu.trace_stop"() : () -> ()
    %78 = arith.addf %77, %54 : vector<2x16x16xf32>
    %cst_33 = arith.constant dense<0xFF800000> : vector<2x16xf32>
    %79 = vector.multi_reduction <maximumf>, %78, %cst_33 [2] : vector<2x16x16xf32> to vector<2x16xf32>
    %80 = vector.shape_cast %79 : vector<2x16xf32> to vector<2x16x1xf32>
    %81 = vector.broadcast %80 : vector<2x16x1xf32> to vector<2x16x16xf32>
    %82 = arith.subf %78, %81 : vector<2x16x16xf32>
    %83 = math.exp %82 : vector<2x16x16xf32>
    %cst_34 = arith.constant dense<0.000000e+00> : vector<2x16xf32>
    %84 = vector.multi_reduction <add>, %83, %cst_34 [2] : vector<2x16x16xf32> to vector<2x16xf32>
    %85 = vector.shape_cast %84 : vector<2x16xf32> to vector<2x16x1xf32>
    %86 = tpu.reciprocal %85 {approx = true} : vector<2x16x1xf32> -> vector<2x16x1xf32>
    %87 = vector.broadcast %86 : vector<2x16x1xf32> to vector<2x16x16xf32>
    %88 = arith.mulf %83, %87 : vector<2x16x16xf32>
    %89 = vector.extract_strided_slice %38 {offsets = [0, 0, 16], sizes = [2, 16, 16], strides = [1, 1, 1]} : vector<2x16x64xf32> to vector<2x16x16xf32>
    "tpu.trace_start"() <{level = 10 : i32, message = "bqk,bkd->bqd"}> : () -> ()
    %cst_35 = arith.constant dense<0.000000e+00> : vector<2x16x16xf32>
    %90 = tpu.matmul %88, %89, %cst_35 {dimension_numbers = #tpu.dot_dimension_numbers<[2], [1], [1], [2], [0, 0, 0, 1, 1, 2], [0], [0]>} : vector<2x16x16xf32>, vector<2x16x16xf32>, vector<2x16x16xf32> -> vector<2x16x16xf32>
    "tpu.trace_stop"() : () -> ()
    %91 = vector.shape_cast %90 : vector<2x16x16xf32> to vector<32x16xf32>
    %c16 = arith.constant 16 : index
    %c0_36 = arith.constant 0 : index
    %92 = vector.load %arg7[%c16, %c0_36] : memref<64x64xf32, #tpu.memory_space<vmem>>, vector<16x64xf32>
    %cst_37 = arith.constant dense<0.000000e+00> : vector<32x64xf32>
    %93 = tpu.matmul %91, %92, %cst_37 {dimension_numbers = #tpu.dot_dimension_numbers<[1], [0], [0], [1], [0, 0, 1, 1], [], []>} : vector<32x16xf32>, vector<16x64xf32>, vector<32x64xf32> -> vector<32x64xf32>
    %94 = arith.addf %74, %93 : vector<32x64xf32>
    %95 = vector.extract_strided_slice %34 {offsets = [0, 0, 32], sizes = [2, 16, 16], strides = [1, 1, 1]} : vector<2x16x64xf32> to vector<2x16x16xf32>
    %96 = vector.extract_strided_slice %36 {offsets = [0, 0, 32], sizes = [2, 16, 16], strides = [1, 1, 1]} : vector<2x16x64xf32> to vector<2x16x16xf32>
    "tpu.trace_start"() <{level = 10 : i32, message = "bqd,bkd->bqk"}> : () -> ()
    %cst_38 = arith.constant dense<0.000000e+00> : vector<2x16x16xf32>
    %97 = tpu.matmul %95, %96, %cst_38 {dimension_numbers = #tpu.dot_dimension_numbers<[2], [2], [1], [1], [0, 0, 0, 1, 1, 1], [0], [0]>} : vector<2x16x16xf32>, vector<2x16x16xf32>, vector<2x16x16xf32> -> vector<2x16x16xf32>
    "tpu.trace_stop"() : () -> ()
    %98 = arith.addf %97, %54 : vector<2x16x16xf32>
    %cst_39 = arith.constant dense<0xFF800000> : vector<2x16xf32>
    %99 = vector.multi_reduction <maximumf>, %98, %cst_39 [2] : vector<2x16x16xf32> to vector<2x16xf32>
    %100 = vector.shape_cast %99 : vector<2x16xf32> to vector<2x16x1xf32>
    %101 = vector.broadcast %100 : vector<2x16x1xf32> to vector<2x16x16xf32>
    %102 = arith.subf %98, %101 : vector<2x16x16xf32>
    %103 = math.exp %102 : vector<2x16x16xf32>
    %cst_40 = arith.constant dense<0.000000e+00> : vector<2x16xf32>
    %104 = vector.multi_reduction <add>, %103, %cst_40 [2] : vector<2x16x16xf32> to vector<2x16xf32>
    %105 = vector.shape_cast %104 : vector<2x16xf32> to vector<2x16x1xf32>
    %106 = tpu.reciprocal %105 {approx = true} : vector<2x16x1xf32> -> vector<2x16x1xf32>
    %107 = vector.broadcast %106 : vector<2x16x1xf32> to vector<2x16x16xf32>
    %108 = arith.mulf %103, %107 : vector<2x16x16xf32>
    %109 = vector.extract_strided_slice %38 {offsets = [0, 0, 32], sizes = [2, 16, 16], strides = [1, 1, 1]} : vector<2x16x64xf32> to vector<2x16x16xf32>
    "tpu.trace_start"() <{level = 10 : i32, message = "bqk,bkd->bqd"}> : () -> ()
    %cst_41 = arith.constant dense<0.000000e+00> : vector<2x16x16xf32>
    %110 = tpu.matmul %108, %109, %cst_41 {dimension_numbers = #tpu.dot_dimension_numbers<[2], [1], [1], [2], [0, 0, 0, 1, 1, 2], [0], [0]>} : vector<2x16x16xf32>, vector<2x16x16xf32>, vector<2x16x16xf32> -> vector<2x16x16xf32>
    "tpu.trace_stop"() : () -> ()
    %111 = vector.shape_cast %110 : vector<2x16x16xf32> to vector<32x16xf32>
    %c32 = arith.constant 32 : index
    %c0_42 = arith.constant 0 : index
    %112 = vector.load %arg7[%c32, %c0_42] : memref<64x64xf32, #tpu.memory_space<vmem>>, vector<16x64xf32>
    %cst_43 = arith.constant dense<0.000000e+00> : vector<32x64xf32>
    %113 = tpu.matmul %111, %112, %cst_43 {dimension_numbers = #tpu.dot_dimension_numbers<[1], [0], [0], [1], [0, 0, 1, 1], [], []>} : vector<32x16xf32>, vector<16x64xf32>, vector<32x64xf32> -> vector<32x64xf32>
    %114 = arith.addf %94, %113 : vector<32x64xf32>
    %115 = vector.extract_strided_slice %34 {offsets = [0, 0, 48], sizes = [2, 16, 16], strides = [1, 1, 1]} : vector<2x16x64xf32> to vector<2x16x16xf32>
    %116 = vector.extract_strided_slice %36 {offsets = [0, 0, 48], sizes = [2, 16, 16], strides = [1, 1, 1]} : vector<2x16x64xf32> to vector<2x16x16xf32>
    "tpu.trace_start"() <{level = 10 : i32, message = "bqd,bkd->bqk"}> : () -> ()
    %cst_44 = arith.constant dense<0.000000e+00> : vector<2x16x16xf32>
    %117 = tpu.matmul %115, %116, %cst_44 {dimension_numbers = #tpu.dot_dimension_numbers<[2], [2], [1], [1], [0, 0, 0, 1, 1, 1], [0], [0]>} : vector<2x16x16xf32>, vector<2x16x16xf32>, vector<2x16x16xf32> -> vector<2x16x16xf32>
    "tpu.trace_stop"() : () -> ()
    %118 = arith.addf %117, %54 : vector<2x16x16xf32>
    %cst_45 = arith.constant dense<0xFF800000> : vector<2x16xf32>
    %119 = vector.multi_reduction <maximumf>, %118, %cst_45 [2] : vector<2x16x16xf32> to vector<2x16xf32>
    %120 = vector.shape_cast %119 : vector<2x16xf32> to vector<2x16x1xf32>
    %121 = vector.broadcast %120 : vector<2x16x1xf32> to vector<2x16x16xf32>
    %122 = arith.subf %118, %121 : vector<2x16x16xf32>
    %123 = math.exp %122 : vector<2x16x16xf32>
    %cst_46 = arith.constant dense<0.000000e+00> : vector<2x16xf32>
    %124 = vector.multi_reduction <add>, %123, %cst_46 [2] : vector<2x16x16xf32> to vector<2x16xf32>
    %125 = vector.shape_cast %124 : vector<2x16xf32> to vector<2x16x1xf32>
    %126 = tpu.reciprocal %125 {approx = true} : vector<2x16x1xf32> -> vector<2x16x1xf32>
    %127 = vector.broadcast %126 : vector<2x16x1xf32> to vector<2x16x16xf32>
    %128 = arith.mulf %123, %127 : vector<2x16x16xf32>
    %129 = vector.extract_strided_slice %38 {offsets = [0, 0, 48], sizes = [2, 16, 16], strides = [1, 1, 1]} : vector<2x16x64xf32> to vector<2x16x16xf32>
    "tpu.trace_start"() <{level = 10 : i32, message = "bqk,bkd->bqd"}> : () -> ()
    %cst_47 = arith.constant dense<0.000000e+00> : vector<2x16x16xf32>
    %130 = tpu.matmul %128, %129, %cst_47 {dimension_numbers = #tpu.dot_dimension_numbers<[2], [1], [1], [2], [0, 0, 0, 1, 1, 2], [0], [0]>} : vector<2x16x16xf32>, vector<2x16x16xf32>, vector<2x16x16xf32> -> vector<2x16x16xf32>
    "tpu.trace_stop"() : () -> ()
    %131 = vector.shape_cast %130 : vector<2x16x16xf32> to vector<32x16xf32>
    %c48 = arith.constant 48 : index
    %c0_48 = arith.constant 0 : index
    %132 = vector.load %arg7[%c48, %c0_48] : memref<64x64xf32, #tpu.memory_space<vmem>>, vector<16x64xf32>
    %cst_49 = arith.constant dense<0.000000e+00> : vector<32x64xf32>
    %133 = tpu.matmul %131, %132, %cst_49 {dimension_numbers = #tpu.dot_dimension_numbers<[1], [0], [0], [1], [0, 0, 1, 1], [], []>} : vector<32x16xf32>, vector<16x64xf32>, vector<32x64xf32> -> vector<32x64xf32>
    %134 = arith.addf %114, %133 : vector<32x64xf32>
    %135 = vector.shape_cast %0 : vector<2x16x64xf32> to vector<32x64xf32>
    %c0_50 = arith.constant 0 : index
    %c0_51 = arith.constant 0 : index
    %136 = vector.load %arg8[%c0_50, %c0_51] : memref<1x64xf32, #tpu.memory_space<vmem>>, vector<1x64xf32>
    %137 = vector.broadcast %136 : vector<1x64xf32> to vector<32x64xf32>
    %138 = arith.addf %134, %137 : vector<32x64xf32>
    %139 = arith.addf %138, %135 : vector<32x64xf32>
    %cst_52 = arith.constant dense<0.000000e+00> : vector<32xf32>
    %140 = vector.multi_reduction <add>, %139, %cst_52 [1] : vector<32x64xf32> to vector<32xf32>
    %141 = vector.shape_cast %140 : vector<32xf32> to vector<32x1xf32>
    %cst_53 = arith.constant 6.400000e+01 : f32
    %142 = vector.broadcast %cst_53 : f32 to vector<32x1xf32>
    %143 = arith.divf %141, %142 : vector<32x1xf32>
    %144 = vector.broadcast %143 : vector<32x1xf32> to vector<32x64xf32>
    %145 = arith.subf %139, %144 : vector<32x64xf32>
    %146 = arith.mulf %145, %145 : vector<32x64xf32>
    %cst_54 = arith.constant dense<0.000000e+00> : vector<32xf32>
    %147 = vector.multi_reduction <add>, %146, %cst_54 [1] : vector<32x64xf32> to vector<32xf32>
    %148 = vector.shape_cast %147 : vector<32xf32> to vector<32x1xf32>
    %cst_55 = arith.constant 6.400000e+01 : f32
    %149 = vector.broadcast %cst_55 : f32 to vector<32x1xf32>
    %150 = arith.divf %148, %149 : vector<32x1xf32>
    %151 = vector.broadcast %143 : vector<32x1xf32> to vector<32x64xf32>
    %152 = arith.subf %139, %151 : vector<32x64xf32>
    %cst_56 = arith.constant 9.99999974E-6 : f32
    %153 = vector.broadcast %cst_56 : f32 to vector<32x1xf32>
    %154 = arith.addf %150, %153 : vector<32x1xf32>
    %155 = math.rsqrt %154 : vector<32x1xf32>
    %156 = vector.broadcast %155 : vector<32x1xf32> to vector<32x64xf32>
    %157 = arith.mulf %152, %156 : vector<32x64xf32>
    %c0_57 = arith.constant 0 : index
    %c0_58 = arith.constant 0 : index
    %158 = vector.load %arg9[%c0_57, %c0_58] : memref<1x64xf32, #tpu.memory_space<vmem>>, vector<1x64xf32>
    %159 = vector.broadcast %158 : vector<1x64xf32> to vector<32x64xf32>
    %160 = arith.mulf %157, %159 : vector<32x64xf32>
    %c0_59 = arith.constant 0 : index
    %c0_60 = arith.constant 0 : index
    %161 = vector.load %arg10[%c0_59, %c0_60] : memref<1x64xf32, #tpu.memory_space<vmem>>, vector<1x64xf32>
    %162 = vector.broadcast %161 : vector<1x64xf32> to vector<32x64xf32>
    %163 = arith.addf %160, %162 : vector<32x64xf32>
    %c0_61 = arith.constant 0 : index
    %c0_62 = arith.constant 0 : index
    %164 = vector.load %arg14[%c0_61, %c0_62] : memref<1x64xf32, #tpu.memory_space<vmem>>, vector<1x64xf32>
    %165 = vector.broadcast %164 : vector<1x64xf32> to vector<32x64xf32>
    %166 = arith.addf %139, %165 : vector<32x64xf32>
    %c0_63 = arith.constant 0 : index
    %c0_64 = arith.constant 0 : index
    %167 = vector.load %arg11[%c0_63, %c0_64] : memref<64x256xf32, #tpu.memory_space<vmem>>, vector<64x256xf32>
    %cst_65 = arith.constant dense<0.000000e+00> : vector<32x256xf32>
    %168 = tpu.matmul %163, %167, %cst_65 {dimension_numbers = #tpu.dot_dimension_numbers<[1], [0], [0], [1], [0, 0, 1, 1], [], []>} : vector<32x64xf32>, vector<64x256xf32>, vector<32x256xf32> -> vector<32x256xf32>
    %c0_66 = arith.constant 0 : index
    %c0_67 = arith.constant 0 : index
    %169 = vector.load %arg12[%c0_66, %c0_67] : memref<1x256xf32, #tpu.memory_space<vmem>>, vector<1x256xf32>
    %170 = vector.broadcast %169 : vector<1x256xf32> to vector<32x256xf32>
    %171 = arith.addf %168, %170 : vector<32x256xf32>
    %cst_68 = arith.constant 5.000000e-01 : f32
    %172 = vector.broadcast %cst_68 : f32 to vector<32x256xf32>
    %173 = arith.mulf %172, %171 : vector<32x256xf32>
    %cst_69 = arith.constant 4.471500e-02 : f32
    %174 = vector.broadcast %cst_69 : f32 to vector<32x256xf32>
    %175 = arith.mulf %174, %171 : vector<32x256xf32>
    %176 = arith.mulf %175, %171 : vector<32x256xf32>
    %177 = arith.mulf %176, %171 : vector<32x256xf32>
    %178 = arith.addf %171, %177 : vector<32x256xf32>
    %cst_70 = arith.constant 0.797884583 : f32
    %179 = vector.broadcast %cst_70 : f32 to vector<32x256xf32>
    %180 = arith.mulf %179, %178 : vector<32x256xf32>
    %181 = math.tanh %180 : vector<32x256xf32>
    %cst_71 = arith.constant 1.000000e+00 : f32
    %182 = vector.broadcast %cst_71 : f32 to vector<32x256xf32>
    %183 = arith.addf %182, %181 : vector<32x256xf32>
    %184 = arith.mulf %173, %183 : vector<32x256xf32>
    %c0_72 = arith.constant 0 : index
    %c0_73 = arith.constant 0 : index
    %185 = vector.load %arg13[%c0_72, %c0_73] : memref<256x64xf32, #tpu.memory_space<vmem>>, vector<256x64xf32>
    %cst_74 = arith.constant dense<0.000000e+00> : vector<32x64xf32>
    %186 = tpu.matmul %184, %185, %cst_74 {dimension_numbers = #tpu.dot_dimension_numbers<[1], [0], [0], [1], [0, 0, 1, 1], [], []>} : vector<32x256xf32>, vector<256x64xf32>, vector<32x64xf32> -> vector<32x64xf32>
    %187 = arith.addf %166, %186 : vector<32x64xf32>
    %188 = vector.shape_cast %187 : vector<32x64xf32> to vector<2x16x64xf32>
    %c0_75 = arith.constant 0 : index
    %c0_76 = arith.constant 0 : index
    %c0_77 = arith.constant 0 : index
    %189 = vector.load %arg15[%c0_75, %c0_76, %c0_77] : memref<2x16x64xf32, #tpu.memory_space<vmem>>, vector<2x16x64xf32>
    tpu.vector_store %arg15[%c0_75, %c0_76, %c0_77], %188 {strides = array<i32>} : memref<2x16x64xf32, #tpu.memory_space<vmem>>, vector<2x16x64xf32>,
    return
  }
  func.func @transform_0(%arg0: i32) -> (i32, i32, i32) {
    %c0_i32 = arith.constant 0 : i32
    %c0_i32_0 = arith.constant 0 : i32
    %c0_i32_1 = arith.constant 0 : i32
    return %arg0, %c0_i32, %c0_i32_0 : i32, i32, i32
  }
  func.func @transform_1(%arg0: i32) -> (i32, i32, i32) {
    %c0_i32 = arith.constant 0 : i32
    %c0_i32_0 = arith.constant 0 : i32
    %c0_i32_1 = arith.constant 0 : i32
    return %arg0, %c0_i32, %c0_i32_0 : i32, i32, i32
  }
  func.func @transform_2(%arg0: i32) -> (i32, i32) {
    %c0_i32 = arith.constant 0 : i32
    %c0_i32_0 = arith.constant 0 : i32
    %c0_i32_1 = arith.constant 0 : i32
    return %c0_i32, %c0_i32_0 : i32, i32
  }
  func.func @transform_3(%arg0: i32) -> (i32, i32) {
    %c0_i32 = arith.constant 0 : i32
    %c0_i32_0 = arith.constant 0 : i32
    %c0_i32_1 = arith.constant 0 : i32
    return %c0_i32, %c0_i32_0 : i32, i32
  }
  func.func @transform_4(%arg0: i32) -> (i32, i32) {
    %c0_i32 = arith.constant 0 : i32
    %c0_i32_0 = arith.constant 0 : i32
    %c0_i32_1 = arith.constant 0 : i32
    return %c0_i32, %c0_i32_0 : i32, i32
  }
  func.func @transform_5(%arg0: i32) -> (i32, i32) {
    %c0_i32 = arith.constant 0 : i32
    %c0_i32_0 = arith.constant 0 : i32
    %c0_i32_1 = arith.constant 0 : i32
    return %c0_i32, %c0_i32_0 : i32, i32
  }
  func.func @transform_6(%arg0: i32) -> (i32, i32) {
    %c0_i32 = arith.constant 0 : i32
    %c0_i32_0 = arith.constant 0 : i32
    %c0_i32_1 = arith.constant 0 : i32
    return %c0_i32, %c0_i32_0 : i32, i32
  }
  func.func @transform_7(%arg0: i32) -> (i32, i32) {
    %c0_i32 = arith.constant 0 : i32
    %c0_i32_0 = arith.constant 0 : i32
    %c0_i32_1 = arith.constant 0 : i32
    return %c0_i32, %c0_i32_0 : i32, i32
  }
  func.func @transform_8(%arg0: i32) -> (i32, i32) {
    %c0_i32 = arith.constant 0 : i32
    %c0_i32_0 = arith.constant 0 : i32
    %c0_i32_1 = arith.constant 0 : i32
    return %c0_i32, %c0_i32_0 : i32, i32
  }
  func.func @transform_9(%arg0: i32) -> (i32, i32) {
    %c0_i32 = arith.constant 0 : i32
    %c0_i32_0 = arith.constant 0 : i32
    %c0_i32_1 = arith.constant 0 : i32
    return %c0_i32, %c0_i32_0 : i32, i32
  }
  func.func @transform_10(%arg0: i32) -> (i32, i32) {
    %c0_i32 = arith.constant 0 : i32
    %c0_i32_0 = arith.constant 0 : i32
    %c0_i32_1 = arith.constant 0 : i32
    return %c0_i32, %c0_i32_0 : i32, i32
  }
  func.func @transform_11(%arg0: i32) -> (i32, i32) {
    %c0_i32 = arith.constant 0 : i32
    %c0_i32_0 = arith.constant 0 : i32
    %c0_i32_1 = arith.constant 0 : i32
    return %c0_i32, %c0_i32_0 : i32, i32
  }
  func.func @transform_12(%arg0: i32) -> (i32, i32) {
    %c0_i32 = arith.constant 0 : i32
    %c0_i32_0 = arith.constant 0 : i32
    %c0_i32_1 = arith.constant 0 : i32
    return %c0_i32, %c0_i32_0 : i32, i32
  }
  func.func @transform_13(%arg0: i32) -> (i32, i32) {
    %c0_i32 = arith.constant 0 : i32
    %c0_i32_0 = arith.constant 0 : i32
    %c0_i32_1 = arith.constant 0 : i32
    return %c0_i32, %c0_i32_0 : i32, i32
  }
  func.func @transform_14(%arg0: i32) -> (i32, i32, i32) {
    %c0_i32 = arith.constant 0 : i32
    %c0_i32_0 = arith.constant 0 : i32
    %c0_i32_1 = arith.constant 0 : i32
    return %arg0, %c0_i32, %c0_i32_0 : i32, i32, i32
  }
  func.func @transform_15(%arg0: i32) -> (i32, i32, i32) {
    %c0_i32 = arith.constant 0 : i32
    %c0_i32_0 = arith.constant 0 : i32
    %c0_i32_1 = arith.constant 0 : i32
    return %arg0, %c0_i32, %c0_i32_0 : i32, i32, i32
  }
}

</mosaic_0001>

<bundles_post_ra>
// kernel: tpu_custom_call.1
= control target key start
LH: loop header
LB: loop body
LE: loop exit
PB: predicated region body
PF: predicated region fallthrough
CT: control target
= control target key end

     0   :  { %s5279_s0 = inlined_call_operand.vmem [shape: f32[4,16,64], index: 0, kind: input, shape index: {}]   ;;  %s5280_s1 = inlined_call_operand.hbm [shape: s32[4,1,16], index: 1, kind: input, shape index: {}]   ;;  %s5281_s2 = inlined_call_operand.vmem [shape: f32[1,64], index: 2, kind: input, shape index: {}]   ;;  %s5282_s3 = inlined_call_operand.vmem [shape: f32[1,64], index: 3, kind: input, shape index: {}]   ;;  %s5283_s4 = inlined_call_operand.vmem [shape: f32[64,192], index: 4, kind: input, shape index: {}]   ;;  %s5284_s5 = inlined_call_operand.vmem [shape: f32[1,192], index: 5, kind: input, shape index: {}]   ;;  %s5285_s6 = inlined_call_operand.vmem [shape: f32[64,64], index: 6, kind: input, shape index: {}]   ;;  %s5286_s7 = inlined_call_operand.vmem [shape: f32[1,64], index: 7, kind: input, shape index: {}]   ;;  %s5287_s8 = inlined_call_operand.vmem [shape: f32[1,64], index: 8, kind: input, shape index: {}]   ;;  %s5288_s9 = inlined_call_operand.vmem [shape: f32[1,64], index: 9, kind: input, shape index: {}]   ;;  %s5289_s10 = inlined_call_operand.vmem [shape: f32[64,256], index: 10, kind: input, shape index: {}]   ;;  %s5290_s11 = inlined_call_operand.vmem [shape: f32[1,256], index: 11, kind: input, shape index: {}]   ;;  %s5291_s12 = inlined_call_operand.vmem [shape: f32[256,64], index: 12, kind: input, shape index: {}]   ;;  %s5292_s13 = inlined_call_operand.vmem [shape: f32[1,64], index: 13, kind: input, shape index: {}]   ;;  %s5293_s14 = inlined_call_operand.hbm [shape: f32[4,16,64], index: 14, kind: output, shape index: {0}]   ;;  %s5294_s15 = inlined_call_operand.hbm [shape: f32[4,16,16], index: 15, kind: output, shape index: {1}]  }
   0x1   :  { %5303 = sst [smem:[#allocation15_spill]] %s5279_s0 }
   0x2   :  { %5304 = sst [smem:[#allocation16_spill]] %s5280_s1 }
   0x3   :  { %5305 = sst [smem:[#allocation17_spill]] %s5292_s13 }
   0x4   :  { %5306 = sst [smem:[#allocation18_spill]] %s5293_s14 }
   0x5   :  { %21 = vsyncpa [#allocation3], 0 }
   0x6   :  { %23 = vsyncpa [#allocation3 + $0x1], 0 }
   0x7   :  { %24 = vsyncpa [#allocation4], 0 }
   0x8   :  { %26 = vsyncpa [#allocation4 + $0x1], 0 }
   0x9   :  { %27 = vsyncpa [#allocation7], 0 }
   0xa   :  { %29 = vsyncpa [#allocation7 + $0x1], 0  ;;  %s4410_s18 = smov 0   ;;  %s4412_s19 = smov 0  }
   0xb   :  { %s4414_s20 = smov 0   ;;  %s4416_s21 = smov 0  }
   0xc LB: > { %5307 = sst [smem:[#allocation11_spill]] %s4300_s18  ;;  %s4431_s22 = sadd.s32 4294967295, %s4312_s21   ;;  %s4312_s21 = sphi %s4416_s21, %s5329_s21   ;;  %s4308_s20 = sphi %s4414_s20, %s5331_s20   ;;  %s4304_s19 = sphi %s4412_s19, %s5333_s19   ;;  %s4300_s18 = sphi %s4410_s18, %s5332_s18  }
   0xd   : > { %5308 = sst [smem:[#allocation12_spill]] %s4308_s20  ;;  %s3377_s23 = sadd.s32 4294967294, %s4312_s21  }
   0xe   : > { %s4435_s24 = sadd.s32 1, %s4312_s21   ;;  %s68_s25 = sadd.s32 1, %s4308_s20 }
   0xf   : > { %5309 = sst [smem:[#allocation13_spill]] %s4435_s24  ;;  %s65_s26 = ssub.s32 %s4312_s21, %s4435_s24 }
  0x10   : > { %p75_p0 = scmp.ne.s32.totalorder %s4308_s20, %s4304_s19  ;;  %p66_p1 = scmp.eq.s32.totalorder %s65_s26, 0 }
  0x11   : > { %p76_p2 = scmp.eq.s32.totalorder %s4312_s21, 0  ;;  %p81_p3 = scmp.ne.s32.totalorder %s4304_s19, %s4300_s18 }
  0x12   : > { %p82_p4 = scmp.eq.s32.totalorder %s4431_s22, 0  ;;  %p357_p7 = scmp.eq.s32.totalorder %s4431_s22, 1 }
  0x13   : > { %s4447_s27 = scalar_select %p66_p1, %s4308_s20, %s68_s25  }
  0x14   : > { %p4449_p5 = por %p76_p2, %p75_p0  ;;  %p4453_p6 = por %p82_p4, %p81_p3 }
  0x15   : > { %5310 = sst [smem:[#allocation14_spill]] %s4447_s27  ;;  %p363_p8 = scmp.eq.s32.totalorder %s3377_s23, 1 }
  0x16   : > { %p3967_p10 = scmp.lt.s32.totalorder %s4312_s21, 2  ;;  %p4460_p11 = por %p357_p7, %p75_p0 }
  0x17   : > { %p4464_p12 = por %p363_p8, %p81_p3  ;;  %s455_s17 = sand.u32 1, %s4308_s20  }
  0x18   : > { %s5313_s30 = scalar_select %p4460_p11, 1, 0 }
  0x19   : > { %s5314_s16 = scalar_select %p4464_p12, 1, 0 }
  0x1a   : > { %s3480_s25 = sshll.u32 %s4312_s21, 5  ;;  %s3380_s26 = sshll.u32 %s455_s17, 1 }
  0x1b   : > { %s5315_s1 = sld [smem:[#allocation16_spill]]  ;;  %s459_s23 = scalar_lea.vmem [#allocation2], %s3380_s26 }
  0x1c   : > { %s466_s14 = sshll.u32 %s459_s23, 4  ;;  %p4477_p13 = pnand %p3967_p10, %p4449_p5  ;;  %s4481_s14 = int_to_ptr.vmem [resolvable:$true] %s466_s14 }
  0x1d   : > { %s4483_s20 = scalar_lea.sflag [#allocation3], %s455_s17 }
  0x1e   : > { %p4186_p1 = pneg %p4477_p13 }
  0x21   : > { %s4473_s18 = scalar_lea.hbm %s5315_s1, %s3480_s25  ;;  %s4189_s25 = scalar_lea.hbm %s5315_s1, 64 }
  0x22   : > { %s4184_s24 = scalar_lea.hbm %s4473_s18, 32  ;;  %p4190_p4 = scmp.lt.u32.totalorder %s4473_s18, %s5315_s1 }
  0x23   : > { %p4185_p0 = scmp.ne.s32.totalorder %s4473_s18, %s4184_s24  ;;  %p4191_p5 = scmp.lt.u32.totalorder %s4189_s25, %s4184_s24 }
  0x24   : > { %p4193_p8 = scmp.lt.u32.totalorder %s4184_s24, %s4473_s18 }
  0x25   : > { %p4187_p2 = pnand %p4186_p1, %p4185_p0  ;;  %p4192_p7 = por %p4191_p5, %p4190_p4 }
  0x27   : > { %p4188_p3 = pneg %p4187_p2  ;;  %p4194_p10 = por %p4193_p8, %p4192_p7 }
  0x29   : > { %p4195_p9 = pnand %p4194_p10, %p4188_p3 }
  0x2b   : > { %4198 = shalt.err (!%p4195_p9)
}
  0x2c   : > { %s4199_s17 = scalar_lea.vmem %s4481_s14, 32  ;;  %s4314_s27 = smov [#allocation2]  }
  0x2d   : > { %p4200_p0 = scmp.ne.s32.totalorder %s4481_s14, %s4199_s17  ;;  %s4204_s28 = sshll.u32 %s4314_s27, 4  ;;  %s4205_s28 = int_to_ptr.vmem [resolvable:$false] %s4204_s28 }
  0x2e   : > { %s4206_s26 = scalar_lea.vmem %s4205_s28, 64  ;;  %p4207_p11 = scmp.lt.s32.totalorder %s4481_s14, %s4205_s28 }
  0x2f   : > { %p4202_p2 = pnand %p4200_p0, %p4186_p1  ;;  %p4208_p4 = scmp.lt.s32.totalorder %s4206_s26, %s4199_s17 }
  0x31   : > { %p4203_p12 = pneg %p4202_p2  ;;  %p4209_p5 = por %p4208_p4, %p4207_p11 }
  0x33   : > { %p4210_p7 = pnand %p4209_p5, %p4203_p12 }
  0x35   : > { %4213 = shalt.err (!%p4210_p7)
}
  0x36   : > { %s4315_s24 = smov 16   ;;  %s4316_s25 = smov 1  }
  0x37   : > { %3959 = dma.hbm_to_vmem [thread:$0]  (!%p4477_p13), %s4473_s18, 32, %s4481_s14, %s4483_s20, %s4315_s24, %s4315_s24, %s4316_s25  }
  0x38   : > { %p3383_p9 = scmp.ge.s32.totalorder %s4312_s21, 1  ;;  %p474_p1 = scmp.lt.s32.totalorder %s4312_s21, 3 }
  0x3a   : > { %p475_p3 = pnand %p3383_p9, %p474_p1 }
  0x3b   : > { %s4514_s23 = sand.u32 (!%p475_p3), 1, %s4304_s19  }
  0x3c   : > { %478 = sbr.rel (%p475_p3) target bundleno = 4350 (0x10fe), region = 76  ;;  %s3384_s17 = sshll.u32 (!%p475_p3), %s4514_s23, 1 }
  0x3d   : > { %s481_s27 = scalar_lea.sflag (!%p475_p3), [#allocation3], %s4514_s23  ;;  %s4518_s28 = scalar_lea.vmem (!%p475_p3), [#allocation2], %s3384_s17 }
  0x43   : > { %4287 = dma.done.wait (%p4453_p6), %s481_s27, 32  }
  0x44   : > { %4289 = vsyncadd (%p4453_p6), %s481_s27, 4294967264  ;;  %s3387_s13 = sshll.u32 %s4431_s22, 1  ;;  %vm556_vm0 = vcmask 523264   ;;  %s5317_s0 = sld [smem:[#allocation15_spill]]  ;;  %v633_v28 = vld [vmem:[%s5283_s4 + $0x8] sm:$0xff]  ;;  %v635_v29 = vld [vmem:[%s5283_s4 + $0x18] sm:$0xff] }
  0x45   : > { %p543_p11 = scmp.lt.s32.totalorder %s3387_s13, 3  ;;  %v3770_v30 = vpack.c.bf16 %v635_v29, %v633_v28  ;;  %v632_v31 = vld [vmem:[%s5283_s4] sm:$0xff]  ;;  %v634_v32 = vld [vmem:[%s5283_s4 + $0x10] sm:$0xff]  ;;  %v637_v34 = vld [vmem:[%s5283_s4 + $0x28] sm:$0xff]  ;;  %v4317_v50 = vmov 0.0   ;;  %vm802_vm1 = vcmask 130048  }
  0x46   : > { %v3772_v33 = vpack.c.bf16 %v634_v32, %v632_v31  ;;  %v639_v35 = vld [vmem:[%s5283_s4 + $0x38] sm:$0xff]  ;;  %v636_v37 = vld [vmem:[%s5283_s4 + $0x20] sm:$0xff]  ;;  %v638_v38 = vld [vmem:[%s5283_s4 + $0x30] sm:$0xff]  ;;  %736 = vmatprep.mubr.f32.mxu0 %v4317_v50  ;;  %748 = vmatprep.mubr.f32.mxu1 %v4317_v50  ;;  %s4318_s18 = smov 64   ;;  %s4321_s20 = smov 48  }
  0x47   : > { %s5335_s13 = smov (!%p543_p11, %s3387_s13), 3  ;;  %3771 = vmatprep.subr.bf16.mxu0 %v3770_v30  ;;  %3930 = vmatprep.subr.bf16.mxu1 %v3770_v30  ;;  %v3774_v36 = vpack.c.bf16 %v639_v35, %v637_v34  ;;  %v3776_v39 = vpack.c.bf16 %v638_v38, %v636_v37  ;;  %v641_v40 = vld [vmem:[%s5283_s4 + $0x48] sm:$0xff]  ;;  %v643_v41 = vld [vmem:[%s5283_s4 + $0x58] sm:$0xff]  ;;  %v640_v43 = vld [vmem:[%s5283_s4 + $0x40] sm:$0xff]  ;;  %s3385_s29 = sshll.u32 %s4514_s23, 5 }
  0x48   : > { %s3481_s14 = sshll.u32 %s5335_s13, 4  ;;  %3773 = vmatpush1.bf16.msra.mxu0 %v3772_v33  ;;  %3934 = vmatpush1.bf16.msra.mxu1 %v3772_v33  ;;  %v3778_v42 = vpack.c.bf16 %v643_v41, %v641_v40  ;;  %v642_v44 = vld [vmem:[%s5283_s4 + $0x50] sm:$0xff]  ;;  %v645_v45 = vld [vmem:[%s5283_s4 + $0x68] sm:$0xff]  ;;  %v647_v47 = vld [vmem:[%s5283_s4 + $0x78] sm:$0xff]  ;;  %s4719_s24 = scalar_lea.vmem [#allocation6], %s3385_s29 }
  0x49   : > { %3775 = vmatprep.subr.bf16.mxu0 %v3774_v36  ;;  %3931 = vmatprep.subr.bf16.mxu1 %v3774_v36  ;;  %v3780_v46 = vpack.c.bf16 %v642_v44, %v640_v43  ;;  %v644_v48 = vld [vmem:[%s5283_s4 + $0x60] sm:$0xff]  ;;  %v646_v49 = vld [vmem:[%s5283_s4 + $0x70] sm:$0xff]  ;;  %v3782_v51 = vpack.c.bf16 %v647_v47, %v645_v45  ;;  %vm4653_vm2 = vmpackc.low %vm802_vm1, %vm802_vm1  ;;  %s4322_s25 = smov 32   ;;  %s4325_s1 = smov 16  }
  0x4a   : > { %s4528_s26 = scalar_lea.vmem %s5317_s0, %s3481_s14  ;;  %v3784_v52 = vpack.c.bf16 %v646_v49, %v644_v48  ;;  %s4323_s0 = smov 96  }
  0x4b   : > { %v552_v0 = vld [vmem:[%s4528_s26] sm:$0xff]  ;;  %v554_v1 = vld [vmem:[%s4528_s26 + $0x10] sm:$0xff]  ;;  %v553_v2 = vld [vmem:[%s4528_s26 + $0x8] sm:$0xff]  ;;  %s3483_s27 = sshll.u32 %s4431_s22, 9  ;;  %p5320_p12 = scmp.ne.s32.totalorder %s5313_s30, 0 }
  0x4c   : > { %v557_v3 = vsel %vm556_vm0, %v552_v0, 0.0  ;;  %v563_v4 = vsel %vm556_vm0, %v554_v1, 0.0  ;;  %v555_v5 = vld [vmem:[%s4528_s26 + $0x18] sm:$0xff]  ;;  %v560_v6 = vsel %vm556_vm0, %v553_v2, 0.0  ;;  %3777 = vmatpush1.bf16.msra.mxu0 %v3776_v39  ;;  %3935 = vmatpush1.bf16.msra.mxu1 %v3776_v39 }
  0x4d   : > { %558 = vadd.xlane.f32.xlu0 %v557_v3  ;;  %564 = vadd.xlane.f32.xlu1 %v563_v4  ;;  %v566_v7 = vsel %vm556_vm0, %v555_v5, 0.0  ;;  %v3391_v4 = vld [vmem:[%s5282_s3] ss:$0 sm:$0xff] }
  0x4e   : > { %3779 = vmatprep.subr.bf16.mxu0 %v3778_v42  ;;  %3932 = vmatprep.subr.bf16.mxu1 %v3778_v42 }
  0x50   : > { %3781 = vmatpush1.bf16.msra.mxu0 %v3780_v46  ;;  %3936 = vmatpush1.bf16.msra.mxu1 %v3780_v46 }
  0x51   : > { %561 = vadd.xlane.f32.xlu0 %v560_v6  ;;  %567 = vadd.xlane.f32.xlu1 %v566_v7 }
  0x52   : > { %3783 = vmatprep.subr.bf16.mxu0 %v3782_v51  ;;  %3933 = vmatprep.subr.bf16.mxu1 %v3782_v51 }
  0x54   : > { %3785 = vmatpush1.bf16.msra.mxu0 %v3784_v52  ;;  %3937 = vmatpush1.bf16.msra.mxu1 %v3784_v52 }
  0xda   : > { %v559_v8 = vpop.xlane.xlu0 %558  ;;  %v565_v9 = vpop.xlane.xlu1 %564 }
  0xdb   : > { %v570_v10 = vmul.f32 0.015625, %v559_v8  ;;  %v572_v11 = vmul.f32 0.015625, %v565_v9 }
  0xdd   : > { %v4538_v12 = vsub.f32 %v552_v0, %v570_v10  ;;  %v4540_v13 = vsub.f32 %v554_v1, %v572_v11 }
  0xde   : > { %v562_v14 = vpop.xlane.xlu0 %561  ;;  %v568_v15 = vpop.xlane.xlu1 %567 }
  0xdf   : > { %v571_v16 = vmul.f32 0.015625, %v562_v14  ;;  %v573_v17 = vmul.f32 0.015625, %v568_v15  ;;  %v578_v18 = vmul.f32 %v4538_v12, %v4538_v12  ;;  %v580_v19 = vmul.f32 %v4540_v13, %v4540_v13 }
  0xe1   : > { %v4546_v20 = vsub.f32 %v553_v2, %v571_v16  ;;  %v4548_v21 = vsub.f32 %v555_v5, %v573_v17  ;;  %v582_v22 = vsel %vm556_vm0, %v578_v18, 0.0  ;;  %v588_v23 = vsel %vm556_vm0, %v580_v19, 0.0  ;;  %v3390_v2 = vld [vmem:[%s5281_s2] ss:$0 sm:$0xff] }
  0xe2   : > { %583 = vadd.xlane.f32.xlu0 %v582_v22 }
  0xe3   : > { %v579_v24 = vmul.f32 %v4546_v20, %v4546_v20  ;;  %v581_v25 = vmul.f32 %v4548_v21, %v4548_v21 }
  0xe5   : > { %v585_v26 = vsel %vm556_vm0, %v579_v24, 0.0  ;;  %v591_v27 = vsel %vm556_vm0, %v581_v25, 0.0 }
  0xe6   : > { %589 = vadd.xlane.f32.xlu0 %v588_v23  ;;  %586 = vadd.xlane.f32.xlu1 %v585_v26 }
  0xea   : > { %592 = vadd.xlane.f32.xlu1 %v591_v27 }
 0x16f   : > { %v584_v53 = vpop.xlane.xlu0 %583 }
 0x170   : > { %v594_v54 = vmul.f32 0.015625, %v584_v53 }
 0x172   : > { %v598_v55 = vadd.f32 1e-05, %v594_v54 }
 0x173   : > { %v587_v56 = vpop.xlane.xlu1 %586  ;;  %v590_v57 = vpop.xlane.xlu0 %589 }
 0x174   : > { %4084 = vrsqrt.f32 %v598_v55  ;;  %v595_v58 = vmul.f32 0.015625, %v587_v56  ;;  %v596_v59 = vmul.f32 0.015625, %v590_v57 }
 0x176   : > { %v599_v60 = vadd.f32 1e-05, %v595_v58  ;;  %v600_v61 = vadd.f32 1e-05, %v596_v59 }
 0x177   : > { %v593_v62 = vpop.xlane.xlu1 %592 }
 0x178   : > { %4086 = vrsqrt.f32 %v599_v60  ;;  %v597_v63 = vmul.f32 0.015625, %v593_v62 }
 0x179   : > { %4088 = vrsqrt.f32 %v600_v61 }
 0x17a   : > { %v601_v0 = vadd.f32 1e-05, %v597_v63 }
 0x17c   : > { %4090 = vrsqrt.f32 %v601_v0  ;;  %v3396_v0 = vld [vmem:[%s4518_s28] ss:$0 sm:$0xff] }
 0x17e   : > { %v4085_v1 = vpop.eup %4084 }
 0x17f   : > { %v606_v3 = vmul.f32 %v4085_v1, %v4538_v12  ;;  %v4319_v1 = vmov 0  }
 0x181   : > { %v617_v5 = vmul.f32 %v3390_v2, %v606_v3 }
 0x182   : > { %v4087_v6 = vpop.eup %4086 }
 0x183   : > { %v4089_v7 = vpop.eup %4088  ;;  %v628_v8 = vadd.f32 %v3391_v4, %v617_v5  ;;  %v607_v9 = vmul.f32 %v4087_v6, %v4546_v20  ;;  %v3397_v6 = vld [vmem:[%s4518_s28 + $0x1] ss:$0 sm:$0xff]  ;;  %s4320_s28 = smov 112  }
 0x184   : > { %v608_v10 = vmul.f32 %v4089_v7, %v4540_v13  ;;  %v650_v13 = vlaneseq }
 0x185   : > { %3392 = vmatmul.mubr.msk.f32.vlgmr.msra.gmra.mrb[0].mxu0 %vm556_vm0, %v628_v8  ;;  %v618_v11 = vmul.f32 %v3390_v2, %v607_v9 }
 0x186   : > { %v4091_v14 = vpop.eup %4090  ;;  %742 = vmatprep.mubr.f32.mxu0 %v4317_v50  ;;  %v619_v15 = vmul.f32 %v3390_v2, %v608_v10  ;;  %v4624_v20 = vshrl.u32 %v650_v13, 7  ;;  %v768_v62 = vand.u32 127, %v650_v13 }
 0x187   : > { %v629_v12 = vadd.f32 %v3391_v4, %v618_v11  ;;  %v609_v16 = vmul.f32 %v4091_v14, %v4548_v21  ;;  %v648_v21 = vld [vmem:[%s5284_s5] sm:$0x3] }
 0x188   : > { %v630_v17 = vadd.f32 %v3391_v4, %v619_v15  ;;  %v652_v22 = vsub.s32 0, %v4624_v20  ;;  %v656_v24 = vsub.s32 1, %v4624_v20  ;;  %v771_v63 = vadd.s32 8, %v4624_v20 }
 0x189   : > { %3393 = vmatmul.mubr.msk.f32.gmra.mrb[2].mxu0 %vm556_vm0, %v629_v12  ;;  %v620_v18 = vmul.f32 %v3390_v2, %v609_v16  ;;  %vm772_vm4 = vcmp.gt.s32.totalorder %v768_v62, %v4624_v20 }
 0x18a   : > { %3394 = vmatmul.mubr.msk.f32.vlgmr.msra.gmra.mrb[0].mxu1 %vm556_vm0, %v630_v17  ;;  %v653_v23 = vrot.slane %v648_v21, %v652_v22  ;;  %v657_v28 = vrot.slane %v648_v21, %v656_v24  ;;  %vm773_vm3 = vcmp.gt.s32.totalorder %v768_v62, %v771_v63  ;;  %v774_v3 = vsel %vm772_vm4, 1, %v4319_v1 }
 0x18b   : > { %754 = vmatprep.mubr.f32.mxu1 %v4317_v50  ;;  %v631_v19 = vadd.f32 %v3391_v4, %v620_v18  ;;  %v775_v2 = vsel %vm773_vm3, 1, %v4319_v1  ;;  %v784_v5 = vadd.s32 %v3396_v0, %v774_v3  ;;  %v786_v11 = vadd.s32 %v3397_v6, %v774_v3 }
 0x18c   : > { %v785_v4 = vadd.s32 %v3396_v0, %v775_v2  ;;  %v787_v9 = vadd.s32 %v3397_v6, %v775_v2 }
 0x18d   : > { %vm788_vm6 = vcmp.gt.s32.totalorder %v784_v5, 0  ;;  %vm790_vm8 = vcmp.gt.s32.totalorder %v786_v11, 0 }
 0x18e   : > { %3395 = vmatmul.mubr.msk.f32.gmra.mrb[2].mxu1 %vm556_vm0, %v631_v19  ;;  %vm789_vm5 = vcmp.gt.s32.totalorder %v785_v4, 0  ;;  %v4686_v8 = vsel %vm788_vm6, -1e+18, %v4317_v50  ;;  %vm791_vm7 = vcmp.gt.s32.totalorder %v787_v9, 0  ;;  %v4696_v19 = vsel %vm790_vm8, -1e+18, %v4317_v50 }
 0x18f   : > { %v4683_v7 = vsel %vm789_vm5, -1e+18, %v4317_v50  ;;  %v4693_v18 = vsel %vm791_vm7, -1e+18, %v4317_v50 }
 0x258   : > { %v738_v25 = vpop.f32.mrb[0].mxu0 }
 0x259   : > { %v739_v26 = vadd.f32 %v738_v25, %v653_v23  ;;  %v740_v27 = vpop.f32.mrb[1].mxu0 }
 0x25a   : > { %v741_v34 = vadd.f32 %v740_v27, %v657_v28 }
 0x25b   : > { %v4635_v29 = vmul.f32 0.25, %v739_v26 }
 0x25c   : > { %v744_v30 = vpop.f32.mrb[2].mxu0 }
 0x25d   : > { %v745_v31 = vadd.f32 %v744_v30, %v653_v23  ;;  %v750_v32 = vpop.f32.mrb[0].mxu1  ;;  %v746_v33 = vpop.f32.mrb[3].mxu0  ;;  %3622 = vmatprep.mubr.msk.f32.mxu1 %vm802_vm1, %v4635_v29 }
 0x25e   : > { %v747_v35 = vadd.f32 %v746_v33, %v657_v28  ;;  %v752_v36 = vpop.f32.mrb[1].mxu1  ;;  %v751_v41 = vadd.f32 %v750_v32, %v653_v23 }
 0x25f   : > { %v4639_v37 = vpack.i.bf16 %v745_v31, %v739_v26  ;;  %v753_v44 = vadd.f32 %v752_v36, %v657_v28  ;;  %v4663_v59 = vmul.f32 0.25, %v745_v31 }
 0x260   : > { %v3798_v38 = vpack.c.bf16 %v747_v35, %v741_v34  ;;  %v4641_v39 = vpack.i.bf16 %v747_v35, %v741_v34  ;;  %v4665_v60 = vmul.f32 0.25, %v751_v41 }
 0x261   : > { %v756_v40 = vpop.f32.mrb[2].mxu1  ;;  %4015 = vrot.lane.b32.xlu0 %v4639_v37, %s4318_s18 }
 0x262   : > { %v757_v42 = vadd.f32 %v756_v40, %v653_v23  ;;  %v758_v43 = vpop.f32.mrb[3].mxu1 }
 0x263   : > { %v759_v45 = vadd.f32 %v758_v43, %v657_v28 }
 0x264   : > { %v4644_v46 = vpack.i.bf16 %v757_v42, %v751_v41  ;;  %v4673_v61 = vmul.f32 0.25, %v757_v42 }
 0x265   : > { %v4646_v47 = vpack.c.bf16 %v759_v45, %v753_v44  ;;  %v4648_v48 = vpack.i.bf16 %v759_v45, %v753_v44 }
 0x266   : > { %4020 = vrot.lane.b32.xlu1 %v4644_v46, %s4318_s18  ;;  %s5180_s18 = scalar_lea.hbm %s5294_s15, %s3483_s27 }
 0x2d3   : > { %v4016_v49 = vpop.permute.xlu0 %4015 }
 0x2d4   : > { %v4018_v51 = vunpack.i.h.bf16 %v4016_v49  ;;  %v4017_v52 = vunpack.i.l.bf16 %v4016_v49 }
 0x2d6   : > { %v3786_v54 = vpack.c.bf16 %v4018_v51, %v4017_v52 }
 0x2d8   : > { %v4021_v55 = vpop.permute.xlu1 %4020  ;;  %3788 = vmatprep.subr.msk.bf16.mxu1 %vm4653_vm2, %v3786_v54 }
 0x2d9   : > { %v4023_v56 = vunpack.i.h.bf16 %v4021_v55  ;;  %v4022_v57 = vunpack.i.l.bf16 %v4021_v55  ;;  %3791 = vmatpush3.bf16.xpose.msk.msra.mxu1 %vm4653_vm2, %v3786_v54 }
 0x2db   : > { %v3792_v58 = vpack.c.bf16 %v4023_v56, %v4022_v57 }
 0x2dd   : > { %3794 = vmatprep.subr.msk.bf16.mxu1 %vm4653_vm2, %v3792_v58 }
 0x2e0   : > { %3623 = vmatmul.mubr.msk.f32.vlgmr.msra.gmra.mrb[4].mxu1 %vm802_vm1, %v4663_v59 }
 0x2e1   : > { %3797 = vmatpush3.bf16.xpose.msk.msra.mxu1 %vm4653_vm2, %v3792_v58  ;;  %3629 = vmatprep.mubr.msk.f32.mxu1 %vm802_vm1, %v4665_v60 }
 0x2e2   : > { %3799 = vmatprep.subr.bf16.mxu1 %v3798_v38 }
 0x2e8   : > { %3630 = vmatmul.mubr.msk.f32.vlgmr.msra.gmra.mrb[6].mxu1 %vm802_vm1, %v4673_v61 }
 0x2e9   : > { %3801 = vmatpush3.bf16.msra.mxu1 %v3798_v38 }
 0x2ea   : > { %3803 = vmatprep.subr.bf16.mxu1 %v4646_v47 }
 0x3b3   : > { %v3624_v10 = vpop.f32.mrb[4].mxu1 }
 0x3b4   : > { %v885_v14 = vadd.f32 %v3624_v10, %v4683_v7  ;;  %v879_v15 = vpop.f32.mrb[5].mxu1 }
 0x3b5   : > { %v880_v12 = vadd.f32 %v879_v15, %v4686_v8 }
 0x3b6   : > { %v982_v16 = vsel %vm802_vm1, %v885_v14, -inf }
 0x3b7   : > { %983 = vmax.xlane.f32.xlu0 %v982_v16  ;;  %v979_v17 = vsel %vm802_vm1, %v880_v12, -inf }
 0x3b8   : > { %980 = vmax.xlane.f32.xlu1 %v979_v17 }
 0x3bb   : > { %v3631_v13 = vpop.f32.mrb[6].mxu1 }
 0x3bc   : > { %v976_v21 = vadd.f32 %v3631_v13, %v4693_v18  ;;  %v970_v23 = vpop.f32.mrb[7].mxu1 }
 0x3bd   : > { %v971_v25 = vadd.f32 %v970_v23, %v4696_v19 }
 0x3be   : > { %v988_v26 = vsel %vm802_vm1, %v976_v21, -inf }
 0x3bf   : > { %989 = vmax.xlane.f32.xlu1 %v988_v26  ;;  %v985_v27 = vsel %vm802_vm1, %v971_v25, -inf }
 0x3c0   : > { %986 = vmax.xlane.f32.xlu0 %v985_v27 }
 0x444   : > { %v984_v28 = vpop.xlane.xlu0 %983 }
 0x445   : > { %v992_v30 = vsub.f32 %v885_v14, %v984_v28  ;;  %v981_v31 = vpop.xlane.xlu1 %980 }
 0x446   : > { %v991_v32 = vsub.f32 %v880_v12, %v981_v31 }
 0x447   : > { %v997_v33 = vmul.f32 1.442695, %v992_v30 }
 0x448   : > { %v995_v34 = vmul.f32 1.442695, %v991_v32 }
 0x449   : > { %4092 = vpow2.f32 %v997_v33 }
 0x44a   : > { %4094 = vpow2.f32 %v995_v34 }
 0x44c   : > { %v990_v35 = vpop.xlane.xlu1 %989 }
 0x44d   : > { %v994_v36 = vsub.f32 %v976_v21, %v990_v35  ;;  %v987_v38 = vpop.xlane.xlu0 %986 }
 0x44e   : > { %v993_v40 = vsub.f32 %v971_v25, %v987_v38 }
 0x44f   : > { %v1001_v41 = vmul.f32 1.442695, %v994_v36 }
 0x450   : > { %v999_v42 = vmul.f32 1.442695, %v993_v40 }
 0x451   : > { %4096 = vpow2.f32 %v1001_v41 }
 0x452   : > { %4098 = vpow2.f32 %v999_v42 }
 0x453   : > { %v4093_v43 = vpop.eup %4092 }
 0x454   : > { %v4095_v44 = vpop.eup %4094  ;;  %v1006_v45 = vsel %vm802_vm1, %v4093_v43, 0.0 }
 0x455   : > { %1007 = vadd.xlane.f32.xlu1 %v1006_v45  ;;  %v1003_v49 = vsel %vm802_vm1, %v4095_v44, 0.0 }
 0x456   : > { %1004 = vadd.xlane.f32.xlu0 %v1003_v49 }
 0x45b   : > { %v4097_v51 = vpop.eup %4096 }
 0x45c   : > { %v4099_v52 = vpop.eup %4098  ;;  %v1012_v54 = vsel %vm802_vm1, %v4097_v51, 0.0 }
 0x45d   : > { %1013 = vadd.xlane.f32.xlu1 %v1012_v54  ;;  %v1009_v55 = vsel %vm802_vm1, %v4099_v52, 0.0 }
 0x45e   : > { %1010 = vadd.xlane.f32.xlu0 %v1009_v55 }
 0x46e   : > { %1282 = vrot.lane.b32.xlu1 %v4665_v60, %s4320_s28 }
 0x472   : > { %1284 = vrot.lane.b32.xlu1 %v4673_v61, %s4320_s28 }
 0x474   : > { %4025 = vrot.lane.b32.xlu0 %v4644_v46, %s4321_s20 }
 0x476   : > { %4030 = vrot.lane.b32.xlu1 %v4639_v37, %s4321_s20  ;;  %s3229_s20 = scalar_lea.sflag [#allocation7], %s4514_s23 }
 0x478   : > { %1191 = vrot.lane.b32.xlu0 %v4635_v29, %s4320_s28 }
 0x47a   : > { %1193 = vrot.lane.b32.xlu1 %v4663_v59, %s4320_s28 }
 0x4e2   : > { %v1008_v56 = vpop.xlane.xlu1 %1007 }
 0x4e3   : > { %4100 = vrcp.f32 %v1008_v56  ;;  %v1005_v57 = vpop.xlane.xlu0 %1004 }
 0x4e4   : > { %4102 = vrcp.f32 %v1005_v57 }
 0x4ea   : > { %v1014_v58 = vpop.xlane.xlu1 %1013 }
 0x4eb   : > { %4104 = vrcp.f32 %v1014_v58  ;;  %v1011_v62 = vpop.xlane.xlu0 %1010 }
 0x4ec   : > { %4106 = vrcp.f32 %v1011_v62 }
 0x4ed   : > { %v4101_v63 = vpop.eup %4100 }
 0x4ee   : > { %v4103_v0 = vpop.eup %4102  ;;  %v1020_v1 = vmul.f32 %v4101_v63, %v4093_v43  ;;  %v1283_v2 = vpop.permute.xlu1 %1282 }
 0x4ef   : > { %v4026_v3 = vpop.permute.xlu0 %4025  ;;  %v1019_v4 = vmul.f32 %v4103_v0, %v4095_v44 }
 0x4f0   : > { %v4028_v5 = vunpack.i.h.bf16 %v4026_v3  ;;  %v4027_v6 = vunpack.i.l.bf16 %v4026_v3  ;;  %1024 = vst.msk [vmem:[%s4719_s24 + $0x8] sm:$0xff] %vm802_vm1, %v1020_v1 }
 0x4f1   : > { %1023 = vst.msk [vmem:[%s4719_s24] sm:$0xff] %vm802_vm1, %v1019_v4  ;;  %3636 = vmatprep.mubr.msk.f32.mxu1 %vm802_vm1, %v1019_v4 }
 0x4f2   : > { %v3812_v9 = vpack.c.bf16 %v4028_v5, %v4027_v6  ;;  %3637 = vmatmul.mubr.msk.f32.vlgmr.msra.gmra.mrb[8].mxu1 %vm802_vm1, %v1020_v1  ;;  %v1285_v10 = vpop.permute.xlu1 %1284 }
 0x4f3   : > { %3805 = vmatpush3.bf16.msra.mxu1 %v4646_v47  ;;  %v1192_v11 = vpop.permute.xlu0 %1191 }
 0x4f4   : > { %3650 = vmatprep.mubr.msk.f32.mxu0 %vm802_vm1, %v1192_v11  ;;  %3814 = vmatprep.subr.msk.bf16.mxu1 %vm4653_vm2, %v3812_v9 }
 0x4f5   : > { %v4105_v14 = vpop.eup %4104 }
 0x4f6   : > { %v4107_v15 = vpop.eup %4106  ;;  %v1022_v12 = vmul.f32 %v4105_v14, %v4097_v51  ;;  %v4031_v16 = vpop.permute.xlu1 %4030 }
 0x4f7   : > { %v4033_v17 = vunpack.i.h.bf16 %v4031_v16  ;;  %v4032_v13 = vunpack.i.l.bf16 %v4031_v16  ;;  %v1021_v21 = vmul.f32 %v4107_v15, %v4099_v52 }
 0x4f8   : > { %1026 = vst.msk [vmem:[%s4719_s24 + $0x18] sm:$0xff] %vm802_vm1, %v1022_v12 }
 0x4f9   : > { %v3806_v23 = vpack.c.bf16 %v4033_v17, %v4032_v13  ;;  %1025 = vst.msk [vmem:[%s4719_s24 + $0x10] sm:$0xff] %vm802_vm1, %v1021_v21  ;;  %3643 = vmatprep.mubr.msk.f32.mxu1 %vm802_vm1, %v1021_v21 }
 0x4fa   : > { %3644 = vmatmul.mubr.msk.f32.vlgmr.msra.gmra.mrb[10].mxu1 %vm802_vm1, %v1022_v12  ;;  %v1194_v47 = vpop.permute.xlu1 %1193 }
 0x4fb   : > { %3808 = vmatprep.subr.msk.bf16.mxu0 %vm4653_vm2, %v3806_v23  ;;  %3657 = vmatprep.mubr.msk.f32.mxu1 %vm802_vm1, %v1283_v2 }
 0x4fc   : > { %3817 = vmatpush3.bf16.xpose.msk.msra.mxu1 %vm4653_vm2, %v3812_v9  ;;  %3811 = vmatpush3.bf16.xpose.msk.msra.mxu0 %vm4653_vm2, %v3806_v23 }
 0x503   : > { %3658 = vmatmul.mubr.msk.f32.vlgmr.msra.gmra.mrb[12].mxu1 %vm802_vm1, %v1285_v10  ;;  %3651 = vmatmul.mubr.msk.f32.vlgmr.msra.gmra.mrb[4].mxu0 %vm802_vm1, %v1194_v47 }
 0x5c5   : > { %v4746_v25 = vpop.f32.mrb[8].mxu1 }
 0x5c6   : > { %v4748_v26 = vpop.f32.mrb[9].mxu1 }
 0x5cd   : > { %v4750_v27 = vpop.f32.mrb[10].mxu1 }
 0x5ce   : > { %v4752_v28 = vpop.f32.mrb[11].mxu1 }
 0x5d6   : > { %v3659_v30 = vpop.f32.mrb[12].mxu1  ;;  %v3652_v31 = vpop.f32.mrb[4].mxu0 }
 0x5d7   : > { %v1370_v32 = vadd.f32 %v3659_v30, %v4693_v18  ;;  %v1364_v33 = vpop.f32.mrb[13].mxu1  ;;  %v1273_v34 = vpop.f32.mrb[5].mxu0  ;;  %v1279_v9 = vadd.f32 %v3652_v31, %v4683_v7 }
 0x5d8   : > { %v1365_v35 = vadd.f32 %v1364_v33, %v4696_v19  ;;  %v1274_v40 = vadd.f32 %v1273_v34, %v4686_v8 }
 0x5d9   : > { %v1382_v36 = vsel %vm802_vm1, %v1370_v32, -inf  ;;  %v1376_v10 = vsel %vm802_vm1, %v1279_v9, -inf }
 0x5da   : > { %1383 = vmax.xlane.f32.xlu1 %v1382_v36  ;;  %v1379_v38 = vsel %vm802_vm1, %v1365_v35, -inf  ;;  %v1373_v41 = vsel %vm802_vm1, %v1274_v40, -inf }
 0x5db   : > { %1380 = vmax.xlane.f32.xlu0 %v1379_v38 }
 0x5eb   : > { %4040 = vrot.lane.b32.xlu1 %v4639_v37, %s4322_s25 }
 0x5ef   : > { %4045 = vrot.lane.b32.xlu1 %v4644_v46, %s4322_s25  ;;  %s4324_s25 = smov 80  }
 0x5f3   : > { %1791 = vrot.lane.b32.xlu1 %v4635_v29, %s4323_s0 }
 0x5f7   : > { %1882 = vrot.lane.b32.xlu1 %v4665_v60, %s4323_s0 }
 0x61b   : > { %1374 = vmax.xlane.f32.xlu1 %v1373_v41 }
 0x62c   : > { %4050 = vrot.lane.b32.xlu1 %v4641_v39, %s4320_s28 }
 0x667   : > { %v1384_v42 = vpop.xlane.xlu1 %1383 }
 0x668   : > { %v1388_v43 = vsub.f32 %v1370_v32, %v1384_v42  ;;  %v1381_v44 = vpop.xlane.xlu0 %1380 }
 0x669   : > { %v1387_v45 = vsub.f32 %v1365_v35, %v1381_v44 }
 0x66a   : > { %v1395_v49 = vmul.f32 1.442695, %v1388_v43 }
 0x66b   : > { %v1393_v51 = vmul.f32 1.442695, %v1387_v45  ;;  %v4041_v57 = vpop.permute.xlu1 %4040 }
 0x66c   : > { %4108 = vpow2.f32 %v1395_v49  ;;  %v4043_v17 = vunpack.i.h.bf16 %v4041_v57  ;;  %v4042_v13 = vunpack.i.l.bf16 %v4041_v57 }
 0x66d   : > { %4110 = vpow2.f32 %v1393_v51 }
 0x66e   : > { %v3834_v30 = vpack.c.bf16 %v4043_v17, %v4042_v13  ;;  %v1189_v17 = vld [vmem:[%s5285_s6] sm:$0xff]  ;;  %v1190_v13 = vld [vmem:[%s5285_s6 + $0x8] sm:$0xff] }
 0x66f   : > { %v4046_v58 = vpop.permute.xlu1 %4045 }
 0x670   : > { %v4048_v35 = vunpack.i.h.bf16 %v4046_v58  ;;  %v4047_v36 = vunpack.i.l.bf16 %v4046_v58 }
 0x672   : > { %v3840_v38 = vpack.c.bf16 %v4048_v35, %v4047_v36 }
 0x673   : > { %v1792_v62 = vpop.permute.xlu1 %1791 }
 0x676   : > { %v4109_v52 = vpop.eup %4108 }
 0x677   : > { %v1406_v54 = vsel %vm802_vm1, %v4109_v52, 0.0  ;;  %v4111_v55 = vpop.eup %4110  ;;  %v1883_v63 = vpop.permute.xlu1 %1882 }
 0x678   : > { %1407 = vadd.xlane.f32.xlu0 %v1406_v54  ;;  %v1403_v56 = vsel %vm802_vm1, %v4111_v55, 0.0 }
 0x67c   : > { %1404 = vadd.xlane.f32.xlu0 %v1403_v56 }
 0x692   : > { %4035 = vrot.lane.b32.xlu0 %v4648_v48, %s4320_s28  ;;  %s3260_s28 = sshll.u32 %s4719_s24, 4  ;;  %s5183_s28 = int_to_ptr.vmem [resolvable:$true] %s3260_s28 }
 0x696   : > { %1793 = vrot.lane.b32.xlu0 %v4663_v59, %s4323_s0 }
 0x69a   : > { %1884 = vrot.lane.b32.xlu0 %v4673_v61, %s4323_s0 }
 0x6a8   : > { %v1375_v0 = vpop.xlane.xlu1 %1374 }
 0x6a9   : > { %v1385_v1 = vsub.f32 %v1274_v40, %v1375_v0 }
 0x6ab   : > { %v1389_v2 = vmul.f32 1.442695, %v1385_v1 }
 0x6ac   : > { %v4051_v3 = vpop.permute.xlu1 %4050 }
 0x6ad   : > { %v4053_v4 = vunpack.i.h.bf16 %v4051_v3  ;;  %v4052_v5 = vunpack.i.l.bf16 %v4051_v3  ;;  %4112 = vpow2.f32 %v1389_v2 }
 0x6af   : > { %v3818_v6 = vpack.c.bf16 %v4053_v4, %v4052_v5 }
 0x6b1   : > { %3819 = vmatprep.subr.bf16.mxu0 %v3818_v6 }
 0x6b2   : > { %3821 = vmatpush3.bf16.msra.mxu0 %v3818_v6 }
 0x6b7   : > { %v4113_v11 = vpop.eup %4112 }
 0x6b8   : > { %v1397_v14 = vsel %vm802_vm1, %v4113_v11, 0.0 }
 0x6b9   : > { %1377 = vmax.xlane.f32.xlu0 %v1376_v10 }
 0x6bd   : > { %1398 = vadd.xlane.f32.xlu0 %v1397_v14 }
 0x705   : > { %v1408_v15 = vpop.xlane.xlu0 %1407 }
 0x706   : > { %4114 = vrcp.f32 %v1408_v15  ;;  %v1595_v15 = vld [vmem:[%s5285_s6 + $0x10] sm:$0xff] }
 0x709   : > { %v1405_v12 = vpop.xlane.xlu0 %1404 }
 0x70a   : > { %4116 = vrcp.f32 %v1405_v12  ;;  %v1596_v12 = vld [vmem:[%s5285_s6 + $0x18] sm:$0xff] }
 0x70d   : > { %v4036_v16 = vpop.permute.xlu0 %4035 }
 0x70e   : > { %v4038_v21 = vunpack.i.h.bf16 %v4036_v16  ;;  %v4037_v23 = vunpack.i.l.bf16 %v4036_v16  ;;  %v3826_v16 = vpack.c.bf16 %v1596_v12, %v1595_v15 }
 0x710   : > { %v3822_v47 = vpack.c.bf16 %v4038_v21, %v4037_v23  ;;  %v4115_v31 = vpop.eup %4114  ;;  %3827 = vmatprep.subr.bf16.mxu0 %v3826_v16  ;;  %v3830_v21 = vpack.c.bf16 %v1190_v13, %v1189_v17 }
 0x711   : > { %v1416_v34 = vmul.f32 %v4115_v31, %v4109_v52  ;;  %v1794_v40 = vpop.permute.xlu0 %1793 }
 0x712   : > { %3823 = vmatprep.subr.bf16.mxu1 %v3822_v47 }
 0x713   : > { %3825 = vmatpush3.bf16.msra.mxu1 %v3822_v47 }
 0x714   : > { %v4117_v32 = vpop.eup %4116  ;;  %3836 = vmatprep.subr.msk.bf16.mxu1 %vm4653_vm2, %v3834_v30 }
 0x715   : > { %v1415_v33 = vmul.f32 %v4117_v32, %v4111_v55  ;;  %v1885_v41 = vpop.permute.xlu0 %1884 }
 0x717   : > { %3671 = vmatprep.mubr.msk.f32.mxu1 %vm802_vm1, %v1415_v33 }
 0x718   : > { %3672 = vmatmul.mubr.msk.f32.vlgmr.msra.gmra.mrb[14].mxu1 %vm802_vm1, %v1416_v34 }
 0x719   : > { %3698 = vmatprep.mubr.msk.f32.mxu1 %vm802_vm1, %v1792_v62 }
 0x71c   : > { %3839 = vmatpush3.bf16.xpose.msk.msra.mxu1 %vm4653_vm2, %v3834_v30 }
 0x71d   : > { %3842 = vmatprep.subr.msk.bf16.mxu1 %vm4653_vm2, %v3840_v38 }
 0x723   : > { %3699 = vmatmul.mubr.msk.f32.vlgmr.msra.gmra.mrb[16].mxu1 %vm802_vm1, %v1794_v40 }
 0x724   : > { %3845 = vmatpush3.bf16.xpose.msk.msra.mxu1 %vm4653_vm2, %v3840_v38  ;;  %3705 = vmatprep.mubr.msk.f32.mxu1 %vm802_vm1, %v1883_v63 }
 0x72b   : > { %3706 = vmatmul.mubr.msk.f32.vlgmr.msra.gmra.mrb[18].mxu1 %vm802_vm1, %v1885_v41 }
 0x746   : > { %v1378_v42 = vpop.xlane.xlu0 %1377 }
 0x747   : > { %v1386_v43 = vsub.f32 %v1279_v9, %v1378_v42 }
 0x749   : > { %v1391_v44 = vmul.f32 1.442695, %v1386_v43 }
 0x74a   : > { %v1399_v45 = vpop.xlane.xlu0 %1398 }
 0x74b   : > { %4118 = vpow2.f32 %v1391_v44 }
 0x74c   : > { %4120 = vrcp.f32 %v1399_v45 }
 0x755   : > { %v4119_v49 = vpop.eup %4118 }
 0x756   : > { %v4121_v51 = vpop.eup %4120  ;;  %v1400_v52 = vsel %vm802_vm1, %v4119_v49, 0.0 }
 0x757   : > { %1401 = vadd.xlane.f32.xlu0 %v1400_v52  ;;  %v1413_v54 = vmul.f32 %v4121_v51, %v4113_v11 }
 0x759   : > { %3664 = vmatprep.mubr.msk.f32.mxu0 %vm802_vm1, %v1413_v54 }
 0x7e4   : > { %v1402_v55 = vpop.xlane.xlu0 %1401 }
 0x7e5   : > { %4122 = vrcp.f32 %v1402_v55 }
 0x7eb   : > { %v4795_v56 = vpop.f32.mrb[14].mxu1 }
 0x7ec   : > { %v4797_v57 = vpop.f32.mrb[15].mxu1 }
 0x7ef   : > { %v4123_v58 = vpop.eup %4122 }
 0x7f0   : > { %v1414_v62 = vmul.f32 %v4123_v58, %v4119_v49 }
 0x7f2   : > { %3665 = vmatmul.mubr.msk.f32.vlgmr.msra.gmra.mrb[6].mxu0 %vm802_vm1, %v1414_v62  ;;  %v2192_v62 = vld [vmem:[%s5285_s6 + $0x28] sm:$0xff] }
 0x7f3   : > { %3829 = vmatpush3.bf16.msra.mxu0 %v3826_v16 }
 0x7f4   : > { %3831 = vmatprep.subr.bf16.mxu0 %v3830_v21 }
 0x7f6   : > { %v3700_v63 = vpop.f32.mrb[16].mxu1 }
 0x7f7   : > { %v1879_v0 = vadd.f32 %v3700_v63, %v4683_v7  ;;  %v1873_v1 = vpop.f32.mrb[17].mxu1 }
 0x7f8   : > { %v1874_v2 = vadd.f32 %v1873_v1, %v4686_v8 }
 0x7f9   : > { %v1976_v3 = vsel %vm802_vm1, %v1879_v0, -inf }
 0x7fa   : > { %1977 = vmax.xlane.f32.xlu0 %v1976_v3  ;;  %v1973_v4 = vsel %vm802_vm1, %v1874_v2, -inf }
 0x7fe   : > { %v3707_v5 = vpop.f32.mrb[18].mxu1  ;;  %1974 = vmax.xlane.f32.xlu0 %v1973_v4 }
 0x7ff   : > { %v1964_v6 = vpop.f32.mrb[19].mxu1  ;;  %v1970_v10 = vadd.f32 %v3707_v5, %v4693_v18 }
 0x800   : > { %v1965_v9 = vadd.f32 %v1964_v6, %v4696_v19 }
 0x801   : > { %v1982_v14 = vsel %vm802_vm1, %v1970_v10, -inf }
 0x802   : > { %v1979_v11 = vsel %vm802_vm1, %v1965_v9, -inf }
 0x803   : > { %1980 = vmax.xlane.f32.xlu0 %v1979_v11 }
 0x807   : > { %1983 = vmax.xlane.f32.xlu0 %v1982_v14 }
 0x887   : > { %v1978_v23 = vpop.xlane.xlu0 %1977 }
 0x888   : > { %v1986_v47 = vsub.f32 %v1879_v0, %v1978_v23 }
 0x88a   : > { %v1991_v30 = vmul.f32 1.442695, %v1986_v47 }
 0x88b   : > { %v1975_v31 = vpop.xlane.xlu0 %1974 }
 0x88c   : > { %4124 = vpow2.f32 %v1991_v30  ;;  %v1985_v32 = vsub.f32 %v1874_v2, %v1975_v31 }
 0x88e   : > { %v1989_v33 = vmul.f32 1.442695, %v1985_v32 }
 0x890   : > { %4126 = vpow2.f32 %v1989_v33  ;;  %v1981_v34 = vpop.xlane.xlu0 %1980 }
 0x891   : > { %v1987_v35 = vsub.f32 %v1965_v9, %v1981_v34 }
 0x893   : > { %v1993_v41 = vmul.f32 1.442695, %v1987_v35 }
 0x894   : > { %v1984_v36 = vpop.xlane.xlu0 %1983 }
 0x895   : > { %v1988_v38 = vsub.f32 %v1970_v10, %v1984_v36 }
 0x896   : > { %v4820_v40 = vpop.eup %4124 }
 0x897   : > { %v1995_v42 = vmul.f32 1.442695, %v1988_v38  ;;  %v2000_v43 = vsel %vm802_vm1, %v4820_v40, 0.0 }
 0x898   : > { %2001 = vadd.xlane.f32.xlu0 %v2000_v43 }
 0x899   : > { %4128 = vpow2.f32 %v1995_v42 }
 0x89a   : > { %v4127_v44 = vpop.eup %4126  ;;  %4130 = vpow2.f32 %v1993_v41 }
 0x89b   : > { %v1997_v45 = vsel %vm802_vm1, %v4127_v44, 0.0 }
 0x89c   : > { %1998 = vadd.xlane.f32.xlu1 %v1997_v45 }
 0x8a3   : > { %v4825_v49 = vpop.eup %4128 }
 0x8a4   : > { %v2006_v51 = vsel %vm802_vm1, %v4825_v49, 0.0  ;;  %v4131_v52 = vpop.eup %4130 }
 0x8a5   : > { %2007 = vadd.xlane.f32.xlu0 %v2006_v51  ;;  %v2003_v54 = vsel %vm802_vm1, %v4131_v52, 0.0 }
 0x8a9   : > { %2004 = vadd.xlane.f32.xlu0 %v2003_v54 }
 0x8ad   : > { %4060 = vrot.lane.b32.xlu1 %v4648_v48, %s4323_s0 }
 0x8b1   : > { %2387 = vrot.lane.b32.xlu1 %v4673_v61, %s4324_s25 }
 0x8bf   : > { %4055 = vrot.lane.b32.xlu0 %v4641_v39, %s4323_s0 }
 0x8c3   : > { %4065 = vrot.lane.b32.xlu0 %v4639_v37, %s4325_s1 }
 0x8c5   : > { %v3666_v55 = vpop.f32.mrb[6].mxu0 }
 0x8c6   : > { %v1497_v58 = vpop.f32.mrb[7].mxu0 }
 0x8c7   : > { %4070 = vrot.lane.b32.xlu0 %v4644_v46, %s4325_s1  ;;  %3678 = vmatprep.mubr.msk.f32.mxu0 %vm802_vm1, %v1497_v58  ;;  %s4326_s1 = smov [#allocation6]  }
 0x8c8   : > { %3679 = vmatmul.mubr.msk.f32.vlgmr.msra.gmra.mrb[8].mxu0 %vm802_vm1, %v3666_v55 }
 0x8c9   : > { %3681 = vmatprep.mubr.msk.f32.mxu0 %vm802_vm1, %v4797_v57  ;;  %3833 = vmatpush3.bf16.msra.mxu0 %v3830_v21 }
 0x8cb   : > { %2294 = vrot.lane.b32.xlu0 %v4635_v29, %s4324_s25 }
 0x8cc   : > { %3682 = vmatmul.mubr.msk.f32.gmra.mrb[10].mxu0 %vm802_vm1, %v4795_v56 }
 0x8cd   : > { %3688 = vmatprep.mubr.msk.f32.mxu0 %vm802_vm1, %v4748_v26 }
 0x8cf   : > { %2296 = vrot.lane.b32.xlu0 %v4663_v59, %s4324_s25 }
 0x8d0   : > { %3689 = vmatmul.mubr.msk.f32.vlgmr.msra.gmra.mrb[8].mxu0 %vm802_vm1, %v4746_v25 }
 0x8d1   : > { %3691 = vmatprep.mubr.msk.f32.mxu0 %vm802_vm1, %v4752_v28 }
 0x8d3   : > { %2385 = vrot.lane.b32.xlu0 %v4665_v60, %s4324_s25 }
 0x8d4   : > { %3692 = vmatmul.mubr.msk.f32.gmra.mrb[10].mxu0 %vm802_vm1, %v4750_v27  ;;  %v2191_v27 = vld [vmem:[%s5285_s6 + $0x20] sm:$0xff] }
 0x8d5   : > { %v3854_v2 = vpack.c.bf16 %v2192_v62, %v2191_v27 }
 0x925   : > { %v2002_v46 = vpop.xlane.xlu0 %2001 }
 0x929   : > { %v1999_v29 = vpop.xlane.xlu1 %1998 }
 0x92a   : > { %4132 = vrcp.f32 %v1999_v29 }
 0x92b   : > { %4134 = vrcp.f32 %v2002_v46 }
 0x92d   : > { %v4061_v37 = vpop.permute.xlu1 %4060 }
 0x92e   : > { %v4063_v61 = vunpack.i.h.bf16 %v4061_v37  ;;  %v4062_v26 = vunpack.i.l.bf16 %v4061_v37 }
 0x930   : > { %v3850_v56 = vpack.c.bf16 %v4063_v61, %v4062_v26 }
 0x931   : > { %v2388_v35 = vpop.permute.xlu1 %2387 }
 0x932   : > { %v2008_v59 = vpop.xlane.xlu0 %2007  ;;  %3851 = vmatprep.subr.bf16.mxu1 %v3850_v56 }
 0x933   : > { %3853 = vmatpush3.bf16.msra.mxu1 %v3850_v56  ;;  %4136 = vrcp.f32 %v2008_v59 }
 0x934   : > { %v4133_v25 = vpop.eup %4132 }
 0x935   : > { %v2013_v57 = vmul.f32 %v4133_v25, %v4127_v44  ;;  %v4135_v3 = vpop.eup %4134 }
 0x936   : > { %v2005_v28 = vpop.xlane.xlu0 %2004  ;;  %v2014_v11 = vmul.f32 %v4135_v3, %v4820_v40 }
 0x937   : > { %4138 = vrcp.f32 %v2005_v28  ;;  %3712 = vmatprep.mubr.msk.f32.mxu0 %vm802_vm1, %v2013_v57 }
 0x93a   : > { %v4056_v60 = vpop.permute.xlu0 %4055 }
 0x93b   : > { %v4058_v63 = vunpack.i.h.bf16 %v4056_v60  ;;  %v4057_v0 = vunpack.i.l.bf16 %v4056_v60 }
 0x93d   : > { %v3846_v1 = vpack.c.bf16 %v4058_v63, %v4057_v0  ;;  %v4137_v9 = vpop.eup %4136 }
 0x93e   : > { %v4066_v4 = vpop.permute.xlu0 %4065  ;;  %v2016_v16 = vmul.f32 %v4137_v9, %v4825_v49 }
 0x93f   : > { %v4068_v5 = vunpack.i.h.bf16 %v4066_v4  ;;  %v4067_v6 = vunpack.i.l.bf16 %v4066_v4  ;;  %3847 = vmatprep.subr.bf16.mxu0 %v3846_v1 }
 0x940   : > { %3849 = vmatpush3.bf16.msra.mxu0 %v3846_v1 }
 0x941   : > { %v4139_v10 = vpop.eup %4138  ;;  %v3858_v14 = vpack.c.bf16 %v4068_v5, %v4067_v6  ;;  %3855 = vmatprep.subr.bf16.mxu0 %v3854_v2 }
 0x942   : > { %v4071_v15 = vpop.permute.xlu0 %4070  ;;  %v2015_v12 = vmul.f32 %v4139_v10, %v4131_v52 }
 0x943   : > { %v4073_v17 = vunpack.i.h.bf16 %v4071_v15  ;;  %v4072_v13 = vunpack.i.l.bf16 %v4071_v15  ;;  %3713 = vmatmul.mubr.msk.f32.vlgmr.msra.gmra.mrb[12].mxu0 %vm802_vm1, %v2014_v11  ;;  %3860 = vmatprep.subr.msk.bf16.mxu1 %vm4653_vm2, %v3858_v14  ;;  %v2694_v15 = vld [vmem:[%s5285_s6 + $0x30] sm:$0xff] }
 0x944   : > { %3719 = vmatprep.mubr.msk.f32.mxu1 %vm802_vm1, %v2015_v12  ;;  %3857 = vmatpush3.bf16.msra.mxu0 %v3854_v2 }
 0x945   : > { %v3864_v21 = vpack.c.bf16 %v4073_v17, %v4072_v13  ;;  %3720 = vmatmul.mubr.msk.f32.vlgmr.msra.gmra.mrb[20].mxu1 %vm802_vm1, %v2016_v16 }
 0x946   : > { %3863 = vmatpush3.bf16.xpose.msk.msra.mxu1 %vm4653_vm2, %v3858_v14  ;;  %v2295_v23 = vpop.permute.xlu0 %2294 }
 0x947   : > { %3736 = vmatprep.mubr.msk.f32.mxu1 %vm802_vm1, %v2295_v23  ;;  %3866 = vmatprep.subr.msk.bf16.mxu0 %vm4653_vm2, %v3864_v21 }
 0x94a   : > { %v2297_v47 = vpop.permute.xlu0 %2296 }
 0x94d   : > { %3737 = vmatmul.mubr.msk.f32.vlgmr.msra.gmra.mrb[22].mxu1 %vm802_vm1, %v2297_v47 }
 0x94e   : > { %v2386_v34 = vpop.permute.xlu0 %2385 }
 0xa16   : > { %v3714_v30 = vpop.f32.mrb[12].mxu0 }
 0xa17   : > { %v2095_v31 = vpop.f32.mrb[13].mxu0 }
 0xa18   : > { %v3721_v32 = vpop.f32.mrb[20].mxu1  ;;  %3726 = vmatprep.mubr.msk.f32.mxu0 %vm802_vm1, %v2095_v31 }
 0xa19   : > { %v2182_v33 = vpop.f32.mrb[21].mxu1  ;;  %3727 = vmatmul.mubr.msk.f32.vlgmr.msra.gmra.mrb[8].mxu0 %vm802_vm1, %v3714_v30 }
 0xa1a   : > { %3869 = vmatpush3.bf16.xpose.msk.msra.mxu0 %vm4653_vm2, %v3864_v21  ;;  %3729 = vmatprep.mubr.msk.f32.mxu0 %vm802_vm1, %v2182_v33 }
 0xa1d   : > { %3730 = vmatmul.mubr.msk.f32.gmra.mrb[10].mxu0 %vm802_vm1, %v3721_v32 }
 0xa1e   : > { %3743 = vmatprep.mubr.msk.f32.mxu0 %vm802_vm1, %v2386_v34 }
 0xa20   : > { %v3738_v36 = vpop.f32.mrb[22].mxu1 }
 0xa21   : > { %v2382_v38 = vadd.f32 %v3738_v36, %v4683_v7  ;;  %v2376_v40 = vpop.f32.mrb[23].mxu1  ;;  %3744 = vmatmul.mubr.msk.f32.vlgmr.msra.gmra.mrb[14].mxu0 %vm802_vm1, %v2388_v35  ;;  %v3462_v35 = vld [vmem:[%s5286_s7] ss:$0 sm:$0xff] }
 0xa22   : > { %v2377_v41 = vadd.f32 %v2376_v40, %v4686_v8 }
 0xa23   : > { %v2479_v42 = vsel %vm802_vm1, %v2382_v38, -inf }
 0xa24   : > { %2480 = vmax.xlane.f32.xlu1 %v2479_v42  ;;  %v2476_v53 = vsel %vm802_vm1, %v2377_v41, -inf  ;;  %v4180_v42 = vld [vmem:[%s4528_s26 + $0x8] sm:$0xff] }
 0xa25   : > { %2477 = vmax.xlane.f32.xlu0 %v2476_v53 }
 0xab1   : > { %v2481_v7 = vpop.xlane.xlu1 %2480 }
 0xab2   : > { %v2478_v43 = vpop.xlane.xlu0 %2477  ;;  %v2489_v52 = vsub.f32 %v2382_v38, %v2481_v7 }
 0xab3   : > { %v2488_v44 = vsub.f32 %v2377_v41, %v2478_v43  ;;  %v4181_v43 = vld [vmem:[%s4528_s26] sm:$0xff] }
 0xab4   : > { %v2494_v54 = vmul.f32 1.442695, %v2489_v52 }
 0xab5   : > { %v2492_v45 = vmul.f32 1.442695, %v2488_v44 }
 0xab7   : > { %4140 = vpow2.f32 %v2492_v45 }
 0xab8   : > { %4142 = vpow2.f32 %v2494_v54 }
 0xac1   : > { %v4141_v49 = vpop.eup %4140 }
 0xac2   : > { %v2500_v51 = vsel %vm802_vm1, %v4141_v49, 0.0  ;;  %v4143_v61 = vpop.eup %4142 }
 0xac3   : > { %2501 = vadd.xlane.f32.xlu1 %v2500_v51  ;;  %v2503_v26 = vsel %vm802_vm1, %v4143_v61, 0.0 }
 0xaf4   : > { %v3745_v55 = vpop.f32.mrb[14].mxu0 }
 0xaf5   : > { %v2467_v8 = vpop.f32.mrb[15].mxu0  ;;  %v2473_v29 = vadd.f32 %v3745_v55, %v4693_v18  ;;  %v4182_v55 = vld [vmem:[%s4528_s26 + $0x18] sm:$0xff] }
 0xaf6   : > { %v2468_v58 = vadd.f32 %v2467_v8, %v4696_v19 }
 0xaf7   : > { %v2485_v46 = vsel %vm802_vm1, %v2473_v29, -inf }
 0xaf8   : > { %v2482_v37 = vsel %vm802_vm1, %v2468_v58, -inf }
 0xaf9   : > { %2483 = vmax.xlane.f32.xlu0 %v2482_v37 }
 0xafd   : > { %2486 = vmax.xlane.f32.xlu0 %v2485_v46 }
 0xb01   : > { %2504 = vadd.xlane.f32.xlu0 %v2503_v26 }
 0xb50   : > { %v2502_v56 = vpop.xlane.xlu1 %2501 }
 0xb51   : > { %4144 = vrcp.f32 %v2502_v56 }
 0xb5b   : > { %v4145_v59 = vpop.eup %4144 }
 0xb5c   : > { %v2516_v25 = vmul.f32 %v4145_v59, %v4141_v49 }
 0xb5e   : > { %3750 = vmatprep.mubr.msk.f32.mxu1 %vm802_vm1, %v2516_v25 }
 0xb86   : > { %v2484_v57 = vpop.xlane.xlu0 %2483 }
 0xb87   : > { %v2490_v19 = vsub.f32 %v2468_v58, %v2484_v57  ;;  %v4183_v58 = vld [vmem:[%s4528_s26 + $0x10] sm:$0xff]  ;;  %s4218_s26 = sshll.u32 %s4326_s1, 4  ;;  %s4219_s26 = int_to_ptr.vmem [resolvable:$false] %s4218_s26 }
 0xb88   : > { %s4220_s0 = scalar_lea.vmem %s4219_s26, 1024  ;;  %p4221_p10 = scmp.lt.s32.totalorder %s5183_s28, %s4219_s26 }
 0xb89   : > { %v2496_v28 = vmul.f32 1.442695, %v2490_v19 }
 0xb8a   : > { %v2487_v18 = vpop.xlane.xlu0 %2486 }
 0xb8b   : > { %4146 = vpow2.f32 %v2496_v28  ;;  %v2491_v60 = vsub.f32 %v2473_v29, %v2487_v18 }
 0xb8d   : > { %v2498_v27 = vmul.f32 1.442695, %v2491_v60 }
 0xb8e   : > { %v2505_v2 = vpop.xlane.xlu0 %2504 }
 0xb8f   : > { %4148 = vpow2.f32 %v2498_v27 }
 0xb90   : > { %4150 = vrcp.f32 %v2505_v2 }
 0xb95   : > { %v4147_v62 = vpop.eup %4146 }
 0xb96   : > { %v2506_v63 = vsel %vm802_vm1, %v4147_v62, 0.0 }
 0xb97   : > { %2507 = vadd.xlane.f32.xlu1 %v2506_v63 }
 0xb99   : > { %v4149_v0 = vpop.eup %4148 }
 0xb9a   : > { %v2509_v1 = vsel %vm802_vm1, %v4149_v0, 0.0  ;;  %v4151_v11 = vpop.eup %4150 }
 0xb9b   : > { %2510 = vadd.xlane.f32.xlu0 %v2509_v1  ;;  %v2517_v17 = vmul.f32 %v4151_v11, %v4143_v61 }
 0xba8   : > { %4075 = vrot.lane.b32.xlu1 %v4641_v39, %s4324_s25  ;;  %v2695_v39 = vld [vmem:[%s5285_s6 + $0x38] sm:$0xff] }
 0xba9   : > { %v3878_v21 = vpack.c.bf16 %v2695_v39, %v2694_v15  ;;  %v2899_v15 = vld [vmem:[%s5289_s10 + $0x10] sm:$0xff] }
 0xbb1   : > { %4080 = vrot.lane.b32.xlu0 %v4648_v48, %s4324_s25  ;;  %s4214_s25 = scalar_lea.vmem %s5183_s28, 512 }
 0xbb2   : > { %p4215_p6 = scmp.ne.s32.totalorder %s5183_s28, %s4214_s25  ;;  %p4222_p0 = scmp.lt.s32.totalorder %s4220_s0, %s4214_s25 }
 0xbb4   : > { %p4216_p13 = pnand %p4215_p6, %p5320_p12  ;;  %p4223_p2 = por %p4222_p0, %p4221_p10 }
 0xbb6   : > { %p4217_p8 = pneg %p4216_p13 }
 0xbb8   : > { %p4224_p4 = pnand %p4223_p2, %p4217_p8 }
 0xc24   : > { %v2508_v3 = vpop.xlane.xlu1 %2507 }
 0xc25   : > { %4152 = vrcp.f32 %v2508_v3 }
 0xc28   : > { %v4076_v4 = vpop.permute.xlu1 %4075  ;;  %v2511_v5 = vpop.xlane.xlu0 %2510 }
 0xc29   : > { %v4078_v6 = vunpack.i.h.bf16 %v4076_v4  ;;  %v4077_v9 = vunpack.i.l.bf16 %v4076_v4  ;;  %4154 = vrcp.f32 %v2511_v5 }
 0xc2b   : > { %v3870_v10 = vpack.c.bf16 %v4078_v6, %v4077_v9  ;;  %v2898_v9 = vld [vmem:[%s5289_s10 + $0x8] sm:$0xff] }
 0xc2c   : > { %v4081_v14 = vpop.permute.xlu0 %4080 }
 0xc2d   : > { %v4083_v48 = vunpack.i.h.bf16 %v4081_v14  ;;  %v4082_v12 = vunpack.i.l.bf16 %v4081_v14  ;;  %3871 = vmatprep.subr.bf16.mxu1 %v3870_v10  ;;  %v2897_v14 = vld [vmem:[%s5289_s10] sm:$0xff] }
 0xc2e   : > { %3873 = vmatpush3.bf16.msra.mxu1 %v3870_v10  ;;  %v2900_v10 = vld [vmem:[%s5289_s10 + $0x18] sm:$0xff]  ;;  %v3884_v39 = vpack.c.bf16 %v2899_v15, %v2897_v14 }
 0xc2f   : > { %v4153_v16 = vpop.eup %4152  ;;  %v3874_v13 = vpack.c.bf16 %v4083_v48, %v4082_v12  ;;  %v3882_v11 = vpack.c.bf16 %v2900_v10, %v2898_v9  ;;  %v2902_v48 = vld [vmem:[%s5289_s10 + $0x28] sm:$0xff]  ;;  %v2904_v12 = vld [vmem:[%s5289_s10 + $0x38] sm:$0xff] }
 0xc30   : > { %v2518_v23 = vmul.f32 %v4153_v16, %v4147_v62  ;;  %v3886_v16 = vpack.c.bf16 %v2904_v12, %v2902_v48  ;;  %v3100_v12 = vld [vmem:[%s5291_s12 + $0x10] sm:$0xff] }
 0xc31   : > { %3751 = vmatmul.mubr.msk.f32.vlgmr.msra.gmra.mrb[24].mxu1 %vm802_vm1, %v2517_v17  ;;  %3875 = vmatprep.subr.bf16.mxu0 %v3874_v13  ;;  %v2901_v17 = vld [vmem:[%s5289_s10 + $0x20] sm:$0xff] }
 0xc32   : > { %3877 = vmatpush3.bf16.msra.mxu0 %v3874_v13  ;;  %3757 = vmatprep.mubr.msk.f32.mxu0 %vm802_vm1, %v2518_v23  ;;  %v2903_v13 = vld [vmem:[%s5289_s10 + $0x30] sm:$0xff]  ;;  %v2906_v23 = vld [vmem:[%s5289_s10 + $0x48] sm:$0xff] }
 0xc33   : > { %v4155_v47 = vpop.eup %4154  ;;  %3879 = vmatprep.subr.bf16.mxu0 %v3878_v21  ;;  %3001 = vmatprep.mubr.f32.mxu1 %v4317_v50 }
 0xc34   : > { %v2519_v30 = vmul.f32 %v4155_v47, %v4149_v0  ;;  %3883 = vmatprep.subr.bf16.mxu1 %v3882_v11  ;;  %v2908_v47 = vld [vmem:[%s5289_s10 + $0x58] sm:$0xff] }
 0xc35   : > { %3885 = vmatpush1.bf16.msra.mxu1 %v3884_v39 }
 0xc36   : > { %3758 = vmatmul.mubr.msk.f32.vlgmr.msra.gmra.mrb[16].mxu0 %vm802_vm1, %v2519_v30  ;;  %3887 = vmatprep.subr.bf16.mxu1 %v3886_v16  ;;  %v3890_v30 = vpack.c.bf16 %v2908_v47, %v2906_v23  ;;  %v3102_v23 = vld [vmem:[%s5291_s12 + $0x20] sm:$0xff]  ;;  %v3103_v47 = vld [vmem:[%s5291_s12 + $0x28] sm:$0xff] }
 0xc37   : > { %3881 = vmatpush3.bf16.msra.mxu0 %v3878_v21  ;;  %v3888_v21 = vpack.c.bf16 %v2903_v13, %v2901_v17  ;;  %v3118_v17 = vld [vmem:[%s5291_s12 + $0xa0] sm:$0xff]  ;;  %v3119_v13 = vld [vmem:[%s5291_s12 + $0xa8] sm:$0xff] }
 0xc39   : > { %3889 = vmatpush1.bf16.msra.mxu1 %v3888_v21  ;;  %v3906_v21 = vpack.c.bf16 %v3119_v13, %v3118_v17 }
 0xc3a   : > { %3891 = vmatprep.subr.bf16.mxu1 %v3890_v30  ;;  %v3908_v30 = vpack.c.bf16 %v3103_v47, %v3102_v23 }
 0xd04   : > { %v3752_v31 = vpop.f32.mrb[24].mxu1 }
 0xd05   : > { %v2598_v32 = vpop.f32.mrb[25].mxu1 }
 0xd06   : > { %3764 = vmatprep.mubr.msk.f32.mxu0 %vm802_vm1, %v2598_v32  ;;  %v2907_v32 = vld [vmem:[%s5289_s10 + $0x50] sm:$0xff] }
 0xd07   : > { %3765 = vmatmul.mubr.msk.f32.vlgmr.msra.gmra.mrb[8].mxu0 %vm802_vm1, %v3752_v31  ;;  %v2905_v31 = vld [vmem:[%s5289_s10 + $0x40] sm:$0xff] }
 0xd09   : > { %v3759_v33 = vpop.f32.mrb[16].mxu0 }
 0xd0a   : > { %v2685_v34 = vpop.f32.mrb[17].mxu0 }
 0xd0b   : > { %3767 = vmatprep.mubr.msk.f32.mxu0 %vm802_vm1, %v2685_v34  ;;  %v2910_v34 = vld [vmem:[%s5289_s10 + $0x68] sm:$0xff] }
 0xd0c   : > { %3768 = vmatmul.mubr.msk.f32.gmra.mrb[10].mxu0 %vm802_vm1, %v3759_v33  ;;  %v3892_v33 = vpack.c.bf16 %v2907_v32, %v2905_v31  ;;  %v3120_v31 = vld [vmem:[%s5291_s12 + $0xb0] sm:$0xff]  ;;  %v3121_v32 = vld [vmem:[%s5291_s12 + $0xb8] sm:$0xff] }
 0xd0e   : > { %3893 = vmatpush1.bf16.msra.mxu1 %v3892_v33  ;;  %v3910_v33 = vpack.c.bf16 %v3121_v32, %v3120_v31 }
 0xdda   : > { %v3766_v36 = vpop.f32.mrb[8].mxu0 }
 0xddb   : > { %v2805_v38 = vadd.f32 %v3766_v36, %v3462_v35  ;;  %v2774_v40 = vpop.f32.mrb[9].mxu0  ;;  %v2909_v36 = vld [vmem:[%s5289_s10 + $0x60] sm:$0xff] }
 0xddc   : > { %v2804_v41 = vadd.f32 %v3462_v35, %v2774_v40  ;;  %v2911_v40 = vld [vmem:[%s5289_s10 + $0x70] sm:$0xff] }
 0xddd   : > { %v4921_v53 = vadd.f32 %v4180_v42, %v2805_v38  ;;  %v3114_v42 = vld [vmem:[%s5291_s12 + $0x80] sm:$0xff] }
 0xdde   : > { %v4924_v44 = vadd.f32 %v4181_v43, %v2804_v41  ;;  %v3896_v41 = vpack.c.bf16 %v2911_v40, %v2909_v36  ;;  %v3115_v43 = vld [vmem:[%s5291_s12 + $0x88] sm:$0xff] }
 0xddf   : > { %v3769_v45 = vpop.f32.mrb[10].mxu0  ;;  %v2815_v49 = vsel %vm556_vm0, %v4921_v53, 0.0  ;;  %v3123_v40 = vld [vmem:[%s5291_s12 + $0xc8] sm:$0xff] }
 0xde0   : > { %v2807_v51 = vadd.f32 %v3769_v45, %v3462_v35  ;;  %2816 = vadd.xlane.f32.xlu0 %v2815_v49  ;;  %v2784_v7 = vpop.f32.mrb[11].mxu0  ;;  %v2812_v52 = vsel %vm556_vm0, %v4924_v44, 0.0  ;;  %v3098_v45 = vld [vmem:[%s5291_s12] sm:$0xff]  ;;  %v3898_v49 = vpack.c.bf16 %v3115_v43, %v3114_v42  ;;  %v3107_v43 = vld [vmem:[%s5291_s12 + $0x48] sm:$0xff] }
 0xde1   : > { %v2806_v54 = vadd.f32 %v3462_v35, %v2784_v7  ;;  %2813 = vadd.xlane.f32.xlu1 %v2812_v52  ;;  %v2912_v35 = vld [vmem:[%s5289_s10 + $0x78] sm:$0xff]  ;;  %v3106_v42 = vld [vmem:[%s5291_s12 + $0x40] sm:$0xff] }
 0xde2   : > { %v4931_v8 = vadd.f32 %v4182_v55, %v2807_v51  ;;  %v3894_v38 = vpack.c.bf16 %v2912_v35, %v2910_v34  ;;  %v3099_v51 = vld [vmem:[%s5291_s12 + $0x8] sm:$0xff]  ;;  %3899 = vmatprep.subr.bf16.mxu0 %v3898_v49  ;;  %v3104_v34 = vld [vmem:[%s5291_s12 + $0x30] sm:$0xff]  ;;  %v3105_v35 = vld [vmem:[%s5291_s12 + $0x38] sm:$0xff] }
 0xde3   : > { %v4934_v29 = vadd.f32 %v4183_v58, %v2806_v54  ;;  %v3900_v7 = vpack.c.bf16 %v3099_v51, %v3098_v45  ;;  %v3912_v36 = vpack.c.bf16 %v3105_v35, %v3104_v34  ;;  %v3916_v45 = vpack.c.bf16 %v3107_v43, %v3106_v42  ;;  %v3124_v49 = vld [vmem:[%s5291_s12 + $0xd0] sm:$0xff]  ;;  %v3125_v51 = vld [vmem:[%s5291_s12 + $0xd8] sm:$0xff] }
 0xde4   : > { %v2821_v37 = vsel %vm556_vm0, %v4931_v8, 0.0  ;;  %3895 = vmatprep.subr.bf16.mxu1 %v3894_v38  ;;  %v3122_v38 = vld [vmem:[%s5291_s12 + $0xc0] sm:$0xff] }
 0xde5   : > { %2822 = vadd.xlane.f32.xlu0 %v2821_v37  ;;  %v2818_v46 = vsel %vm556_vm0, %v4934_v29, 0.0  ;;  %3897 = vmatpush1.bf16.msra.mxu1 %v3896_v41  ;;  %v3914_v41 = vpack.c.bf16 %v3123_v40, %v3122_v38 }
 0xde6   : > { %2819 = vadd.xlane.f32.xlu1 %v2818_v46  ;;  %3901 = vmatpush3.bf16.msra.mxu0 %v3900_v7  ;;  %v3918_v7 = vpack.c.bf16 %v3125_v51, %v3124_v49 }
 0xe6d   : > { %v2817_v61 = vpop.xlane.xlu0 %2816 }
 0xe6e   : > { %v2825_v26 = vmul.f32 0.015625, %v2817_v61  ;;  %v2814_v56 = vpop.xlane.xlu1 %2813 }
 0xe6f   : > { %v2824_v59 = vmul.f32 0.015625, %v2814_v56 }
 0xe70   : > { %v4941_v25 = vsub.f32 %v4921_v53, %v2825_v26 }
 0xe71   : > { %v4944_v57 = vsub.f32 %v4924_v44, %v2824_v59 }
 0xe72   : > { %v2823_v19 = vpop.xlane.xlu0 %2822  ;;  %v2833_v28 = vmul.f32 %v4941_v25, %v4941_v25 }
 0xe73   : > { %v2827_v18 = vmul.f32 0.015625, %v2823_v19  ;;  %v2820_v60 = vpop.xlane.xlu1 %2819  ;;  %v2832_v27 = vmul.f32 %v4944_v57, %v4944_v57 }
 0xe74   : > { %v2826_v62 = vmul.f32 0.015625, %v2820_v60  ;;  %v2839_v63 = vsel %vm556_vm0, %v2833_v28, 0.0 }
 0xe75   : > { %v4952_v0 = vsub.f32 %v4931_v8, %v2827_v18  ;;  %2840 = vadd.xlane.f32.xlu0 %v2839_v63  ;;  %v2836_v1 = vsel %vm556_vm0, %v2832_v27, 0.0  ;;  %v3463_v27 = vld [vmem:[%s5287_s8] ss:$0 sm:$0xff] }
 0xe76   : > { %v4956_v2 = vsub.f32 %v4934_v29, %v2826_v62  ;;  %2837 = vadd.xlane.f32.xlu1 %v2836_v1  ;;  %v3464_v1 = vld [vmem:[%s5288_s9] ss:$0 sm:$0xff] }
 0xe77   : > { %v2835_v3 = vmul.f32 %v4952_v0, %v4952_v0 }
 0xe78   : > { %v2834_v4 = vmul.f32 %v4956_v2, %v4956_v2 }
 0xe79   : > { %v2845_v5 = vsel %vm556_vm0, %v2835_v3, 0.0 }
 0xe7a   : > { %2846 = vadd.xlane.f32.xlu0 %v2845_v5  ;;  %v2842_v6 = vsel %vm556_vm0, %v2834_v4, 0.0 }
 0xe7b   : > { %2843 = vadd.xlane.f32.xlu1 %v2842_v6 }
 0xf02   : > { %v2841_v52 = vpop.xlane.xlu0 %2840 }
 0xf03   : > { %v2849_v54 = vmul.f32 0.015625, %v2841_v52  ;;  %v2838_v55 = vpop.xlane.xlu1 %2837  ;;  %v3108_v52 = vld [vmem:[%s5291_s12 + $0x50] sm:$0xff] }
 0xf04   : > { %v2848_v58 = vmul.f32 0.015625, %v2838_v55 }
 0xf05   : > { %v2853_v37 = vadd.f32 1e-05, %v2849_v54  ;;  %v3109_v54 = vld [vmem:[%s5291_s12 + $0x58] sm:$0xff] }
 0xf06   : > { %v2852_v46 = vadd.f32 1e-05, %v2848_v58  ;;  %v3920_v55 = vpack.c.bf16 %v3109_v54, %v3108_v52  ;;  %v3126_v58 = vld [vmem:[%s5291_s12 + $0xe0] sm:$0xff] }
 0xf07   : > { %4156 = vrsqrt.f32 %v2853_v37  ;;  %v2847_v61 = vpop.xlane.xlu0 %2846  ;;  %v3127_v37 = vld [vmem:[%s5291_s12 + $0xe8] sm:$0xff] }
 0xf08   : > { %4158 = vrsqrt.f32 %v2852_v46  ;;  %v2851_v26 = vmul.f32 0.015625, %v2847_v61  ;;  %v2844_v56 = vpop.xlane.xlu1 %2843  ;;  %v3110_v46 = vld [vmem:[%s5291_s12 + $0x60] sm:$0xff]  ;;  %v3922_v61 = vpack.c.bf16 %v3127_v37, %v3126_v58 }
 0xf09   : > { %v2850_v59 = vmul.f32 0.015625, %v2844_v56  ;;  %v3128_v56 = vld [vmem:[%s5291_s12 + $0xf0] sm:$0xff] }
 0xf0a   : > { %v2855_v19 = vadd.f32 1e-05, %v2851_v26  ;;  %v3111_v26 = vld [vmem:[%s5291_s12 + $0x68] sm:$0xff] }
 0xf0b   : > { %v2854_v28 = vadd.f32 1e-05, %v2850_v59  ;;  %v3129_v59 = vld [vmem:[%s5291_s12 + $0xf8] sm:$0xff] }
 0xf0d   : > { %4160 = vrsqrt.f32 %v2854_v28  ;;  %v3926_v28 = vpack.c.bf16 %v3129_v59, %v3128_v56 }
 0xf0e   : > { %4162 = vrsqrt.f32 %v2855_v19  ;;  %v3924_v19 = vpack.c.bf16 %v3111_v26, %v3110_v46 }
 0xf11   : > { %v4157_v18 = vpop.eup %4156 }
 0xf12   : > { %v4159_v60 = vpop.eup %4158  ;;  %v2861_v63 = vmul.f32 %v4157_v18, %v4941_v25  ;;  %v3112_v18 = vld [vmem:[%s5291_s12 + $0x70] sm:$0xff] }
 0xf13   : > { %v2860_v62 = vmul.f32 %v4159_v60, %v4944_v57  ;;  %v3113_v60 = vld [vmem:[%s5291_s12 + $0x78] sm:$0xff] }
 0xf14   : > { %v2872_v6 = vmul.f32 %v3463_v27, %v2861_v63 }
 0xf15   : > { %v2871_v3 = vmul.f32 %v3463_v27, %v2860_v62  ;;  %v2913_v62 = vld [vmem:[%s5290_s11] sm:$0x3] }
 0xf16   : > { %v2883_v11 = vadd.f32 %v3464_v1, %v2872_v6  ;;  %v2918_v63 = vrot.slane %v2913_v62, %v652_v22 }
 0xf17   : > { %v4161_v4 = vpop.eup %4160  ;;  %v2882_v5 = vadd.f32 %v3464_v1, %v2871_v3 }
 0xf18   : > { %v4163_v9 = vpop.eup %4162  ;;  %v2862_v10 = vmul.f32 %v4161_v4, %v4956_v2  ;;  %v3116_v2 = vld [vmem:[%s5291_s12 + $0x90] sm:$0xff] }
 0xf19   : > { %3466 = vmatmul.mubr.msk.f32.vlgmr.msra.gmra.mrb[26].mxu1 %vm556_vm0, %v2882_v5  ;;  %v2863_v57 = vmul.f32 %v4163_v9, %v4952_v0  ;;  %v3117_v0 = vld [vmem:[%s5291_s12 + $0x98] sm:$0xff] }
 0xf1a   : > { %3007 = vmatprep.mubr.f32.mxu1 %v4317_v50  ;;  %v2873_v14 = vmul.f32 %v3463_v27, %v2862_v10  ;;  %v3902_v48 = vpack.c.bf16 %v3117_v0, %v3116_v2 }
 0xf1b   : > { %v2874_v15 = vmul.f32 %v3463_v27, %v2863_v57  ;;  %v3928_v27 = vpack.c.bf16 %v3113_v60, %v3112_v18 }
 0xf1c   : > { %v2884_v25 = vadd.f32 %v3464_v1, %v2873_v14  ;;  %3903 = vmatprep.subr.bf16.mxu0 %v3902_v48 }
 0xf1d   : > { %3467 = vmatmul.mubr.msk.f32.gmra.mrb[28].mxu1 %vm556_vm0, %v2883_v11  ;;  %v2885_v39 = vadd.f32 %v3464_v1, %v2874_v15  ;;  %v2922_v1 = vrot.slane %v2913_v62, %v656_v24 }
 0xf1e   : > { %3013 = vmatprep.mubr.f32.mxu1 %v4317_v50 }
 0xf21   : > { %3468 = vmatmul.mubr.msk.f32.gmra.mrb[30].mxu1 %vm556_vm0, %v2884_v25 }
 0xf22   : > { %3019 = vmatprep.mubr.f32.mxu1 %v4317_v50  ;;  %v3101_v50 = vld [vmem:[%s5291_s12 + $0x18] sm:$0xff] }
 0xf23   : > { %v3904_v16 = vpack.c.bf16 %v3101_v50, %v3100_v12 }
 0xf25   : > { %3469 = vmatmul.mubr.msk.f32.gmra.mrb[32].mxu1 %vm556_vm0, %v2885_v39  ;;  %3905 = vmatpush3.bf16.msra.mxu0 %v3904_v16 }
 0xf26   : > { %3907 = vmatprep.subr.bf16.mxu0 %v3906_v21 }
 0xf29   : > { %3909 = vmatpush3.bf16.msra.mxu0 %v3908_v30 }
 0xf2a   : > { %3911 = vmatprep.subr.bf16.mxu0 %v3910_v33 }
 0xf2d   : > { %3913 = vmatpush3.bf16.msra.mxu0 %v3912_v36 }
 0xf2e   : > { %3915 = vmatprep.subr.bf16.mxu0 %v3914_v41 }
 0xf31   : > { %3917 = vmatpush3.bf16.msra.mxu0 %v3916_v45 }
 0xf32   : > { %3919 = vmatprep.subr.bf16.mxu0 %v3918_v7 }
 0xf35   : > { %3921 = vmatpush3.bf16.msra.mxu0 %v3920_v55 }
 0xf36   : > { %3923 = vmatprep.subr.bf16.mxu0 %v3922_v61 }
 0xf39   : > { %3925 = vmatpush3.bf16.msra.mxu0 %v3924_v19 }
 0xf3a   : > { %3927 = vmatprep.subr.bf16.mxu0 %v3926_v28 }
 0xf3d   : > { %3929 = vmatpush3.bf16.msra.mxu0 %v3928_v27 }
 0xfec   : > { %v3003_v3 = vpop.f32.mrb[26].mxu1 }
 0xfed   : > { %v5132_v4 = vadd.f32 %v3003_v3, %v2918_v63  ;;  %v3005_v5 = vpop.f32.mrb[27].mxu1 }
 0xfee   : > { %v3006_v6 = vadd.f32 %v3005_v5, %v2922_v1 }
 0xfef   : > { %v3034_v9 = vmul.f32 0.044715, %v5132_v4  ;;  %v3026_v5 = vmul.f32 0.5, %v5132_v4 }
 0xff0   : > { %v3035_v10 = vmul.f32 0.044715, %v3006_v6  ;;  %v3009_v11 = vpop.f32.mrb[28].mxu1 }
 0xff1   : > { %v3042_v14 = vmul.f32 %v3034_v9, %v5132_v4  ;;  %v5136_v57 = vadd.f32 %v3009_v11, %v2918_v63  ;;  %v3011_v25 = vpop.f32.mrb[29].mxu1 }
 0xff2   : > { %v3043_v15 = vmul.f32 %v3035_v10, %v3006_v6  ;;  %v5138_v39 = vadd.f32 %v3011_v25, %v2922_v1 }
 0xff3   : > { %v3050_v20 = vmul.f32 %v3042_v14, %v5132_v4  ;;  %v3036_v22 = vmul.f32 0.044715, %v5136_v57 }
 0xff4   : > { %v3037_v24 = vmul.f32 0.044715, %v5138_v39  ;;  %v3015_v2 = vpop.f32.mrb[30].mxu1  ;;  %v3051_v0 = vmul.f32 %v3043_v15, %v3006_v6  ;;  %v3029_v15 = vmul.f32 0.5, %v5138_v39 }
 0xff5   : > { %v3058_v48 = vadd.f32 %v3050_v20, %v5132_v4  ;;  %v3044_v12 = vmul.f32 %v3036_v22, %v5136_v57  ;;  %v5145_v50 = vadd.f32 %v3015_v2, %v2918_v63  ;;  %v3017_v16 = vpop.f32.mrb[31].mxu1  ;;  %v3028_v22 = vmul.f32 0.5, %v5136_v57 }
 0xff6   : > { %v3045_v17 = vmul.f32 %v3037_v24, %v5138_v39  ;;  %v5148_v13 = vadd.f32 %v3017_v16, %v2922_v1  ;;  %v3059_v21 = vadd.f32 %v3051_v0, %v3006_v6 }
 0xff7   : > { %v3066_v23 = vmul.f32 0.7978846, %v3058_v48  ;;  %v3038_v47 = vmul.f32 0.044715, %v5145_v50  ;;  %v3052_v30 = vmul.f32 %v3044_v12, %v5136_v57  ;;  %v3030_v16 = vmul.f32 0.5, %v5145_v50 }
 0xff8   : > { %v3039_v31 = vmul.f32 0.044715, %v5148_v13  ;;  %v3021_v32 = vpop.f32.mrb[32].mxu1  ;;  %v3067_v33 = vmul.f32 0.7978846, %v3059_v21  ;;  %v3053_v34 = vmul.f32 %v3045_v17, %v5138_v39  ;;  %v3031_v4 = vmul.f32 0.5, %v5148_v13 }
 0xff9   : > { %4164 = vtanh.f32 %v3066_v23  ;;  %v3046_v35 = vmul.f32 %v3038_v47, %v5145_v50  ;;  %v5155_v36 = vadd.f32 %v3021_v32, %v2918_v63  ;;  %v3023_v38 = vpop.f32.mrb[33].mxu1  ;;  %v3060_v40 = vadd.f32 %v3052_v30, %v5136_v57 }
 0xffa   : > { %v3047_v41 = vmul.f32 %v3039_v31, %v5148_v13  ;;  %v3024_v42 = vadd.f32 %v3023_v38, %v2922_v1  ;;  %4166 = vtanh.f32 %v3067_v33  ;;  %v3061_v43 = vadd.f32 %v3053_v34, %v5138_v39 }
 0xffb   : > { %v3040_v45 = vmul.f32 0.044715, %v5155_v36  ;;  %v3068_v49 = vmul.f32 0.7978846, %v3060_v40  ;;  %v3054_v51 = vmul.f32 %v3046_v35, %v5145_v50  ;;  %v3027_v1 = vmul.f32 0.5, %v3006_v6 }
 0xffc   : > { %v3041_v7 = vmul.f32 0.044715, %v3024_v42  ;;  %v3069_v52 = vmul.f32 0.7978846, %v3061_v43  ;;  %v3055_v54 = vmul.f32 %v3047_v41, %v5148_v13  ;;  %v3033_v47 = vmul.f32 0.5, %v3024_v42 }
 0xffd   : > { %v3048_v55 = vmul.f32 %v3040_v45, %v5155_v36  ;;  %4168 = vtanh.f32 %v3068_v49  ;;  %v3062_v58 = vadd.f32 %v3054_v51, %v5145_v50 }
 0xffe   : > { %v3049_v37 = vmul.f32 %v3041_v7, %v3024_v42  ;;  %4170 = vtanh.f32 %v3069_v52  ;;  %v3063_v46 = vadd.f32 %v3055_v54, %v5148_v13  ;;  %v3032_v13 = vmul.f32 0.5, %v5155_v36 }
 0xfff   : > { %v3070_v61 = vmul.f32 0.7978846, %v3062_v58  ;;  %v3056_v26 = vmul.f32 %v3048_v55, %v5155_v36 }
0x1000   : > { %v3071_v56 = vmul.f32 0.7978846, %v3063_v46  ;;  %v3057_v59 = vmul.f32 %v3049_v37, %v3024_v42 }
0x1001   : > { %4172 = vtanh.f32 %v3070_v61  ;;  %v3064_v19 = vadd.f32 %v3056_v26, %v5155_v36 }
0x1002   : > { %4174 = vtanh.f32 %v3071_v56  ;;  %v3065_v28 = vadd.f32 %v3057_v59, %v3024_v42 }
0x1003   : > { %v4165_v18 = vpop.eup %4164  ;;  %v3072_v60 = vmul.f32 0.7978846, %v3064_v19 }
0x1004   : > { %v4167_v27 = vpop.eup %4166  ;;  %v3082_v62 = vadd.f32 1.0, %v4165_v18  ;;  %v3073_v63 = vmul.f32 0.7978846, %v3065_v28 }
0x1005   : > { %v3083_v3 = vadd.f32 1.0, %v4167_v27  ;;  %4176 = vtanh.f32 %v3072_v60 }
0x1006   : > { %4178 = vtanh.f32 %v3073_v63  ;;  %v3090_v14 = vmul.f32 %v3082_v62, %v3026_v5 }
0x1007   : > { %v4169_v9 = vpop.eup %4168  ;;  %v3091_v10 = vmul.f32 %v3083_v3, %v3027_v1 }
0x1008   : > { %v4171_v11 = vpop.eup %4170  ;;  %v3084_v25 = vadd.f32 1.0, %v4169_v9 }
0x1009   : > { %3194 = vmatprep.mubr.f32.mxu0 %v3091_v10  ;;  %v3085_v20 = vadd.f32 1.0, %v4171_v11 }
0x100a   : > { %3195 = vmatmul.mubr.f32.vlgmr.msra.gmra.mrb[18].mxu0 %v3090_v14  ;;  %v3092_v0 = vmul.f32 %v3084_v25, %v3028_v22 }
0x100b   : > { %v4173_v24 = vpop.eup %4172  ;;  %v3093_v2 = vmul.f32 %v3085_v20, %v3029_v15 }
0x100c   : > { %v4175_v6 = vpop.eup %4174  ;;  %v3086_v48 = vadd.f32 1.0, %v4173_v24 }
0x100d   : > { %3199 = vmatprep.mubr.f32.mxu0 %v3093_v2  ;;  %v3087_v12 = vadd.f32 1.0, %v4175_v6 }
0x100e   : > { %3200 = vmatmul.mubr.f32.gmra.mrb[20].mxu0 %v3092_v0  ;;  %v3094_v57 = vmul.f32 %v3086_v48, %v3030_v16 }
0x100f   : > { %v4177_v17 = vpop.eup %4176  ;;  %v3095_v39 = vmul.f32 %v3087_v12, %v3031_v4 }
0x1010   : > { %v4179_v21 = vpop.eup %4178  ;;  %v3088_v23 = vadd.f32 1.0, %v4177_v17 }
0x1011   : > { %3204 = vmatprep.mubr.f32.mxu0 %v3095_v39  ;;  %v3089_v30 = vadd.f32 1.0, %v4179_v21 }
0x1012   : > { %3205 = vmatmul.mubr.f32.gmra.mrb[22].mxu0 %v3094_v57  ;;  %v3096_v32 = vmul.f32 %v3088_v23, %v3032_v13 }
0x1013   : > { %v3097_v31 = vmul.f32 %v3089_v30, %v3033_v47 }
0x1015   : > { %3209 = vmatprep.mubr.f32.mxu0 %v3097_v31 }
0x1016   : > { %3210 = vmatmul.mubr.f32.gmra.mrb[24].mxu0 %v3096_v32 }
0x1017   : > { %4227 = shalt.err (!%p4224_p4)
}
0x1018   : > { %s4228_s24 = scalar_lea.hbm %s5180_s18, 512  ;;  %s4232_s14 = scalar_lea.hbm %s5294_s15, 1024 }
0x1019   : > { %p4229_p5 = scmp.ne.s32.totalorder %s5180_s18, %s4228_s24  ;;  %p4233_p1 = scmp.lt.u32.totalorder %s5180_s18, %s5294_s15 }
0x101a   : > { %p4234_p3 = scmp.lt.u32.totalorder %s4232_s14, %s4228_s24  ;;  %p4236_p6 = scmp.lt.u32.totalorder %s4228_s24, %s5180_s18 }
0x101b   : > { %p4230_p7 = pnand %p4229_p5, %p5320_p12 }
0x101c   : > { %p4235_p11 = por %p4234_p3, %p4233_p1 }
0x101d   : > { %p4231_p9 = pneg %p4230_p7 }
0x101e   : > { %p4237_p13 = por %p4236_p6, %p4235_p11 }
0x1020   : > { %p4238_p8 = pnand %p4237_p13, %p4231_p9 }
0x1022   : > { %4241 = shalt.err (!%p4238_p8)
}
0x1023   : > { %s5301_s25 = smov 128   ;;  %s5302_s0 = smov 8  }
0x1024   : > { %3953 = dma.vmem_to_hbm [thread:$0]  (%p5320_p12), %s5183_s28, 512, %s5180_s18, %s3229_s20, %s5301_s25, %s5301_s25, %s5302_s0  }
0x1025   : > { %s5321_s14 = sld [smem:[#allocation17_spill]]  ;;  %s534_s24 = scalar_lea.vmem [#allocation5], %s3385_s29 }
0x1026   : > { %s3243_s18 = sshll.u32 %s534_s24, 4  ;;  %s5322_s20 = sld [smem:[#allocation18_spill]]  ;;  %s5224_s18 = int_to_ptr.vmem [resolvable:$true] %s3243_s18 }
0x1027   : > { %s3224_s17 = scalar_lea.sflag [#allocation4], %s4514_s23  ;;  %s4242_s13 = scalar_lea.vmem %s5224_s18, 512 }
0x1028   : > { %p4243_p10 = scmp.ne.s32.totalorder %s5224_s18, %s4242_s13 }
0x102a   : > { %p4244_p0 = pnand %p4243_p10, %p5320_p12 }
0x102b   : > { %v3465_v50 = vld [vmem:[%s5321_s14] ss:$0 sm:$0xff]  ;;  %s4329_s14 = smov [#allocation5]  }
0x102c   : > { %v2893_v35 = vadd.f32 %v3465_v50, %v4924_v44  ;;  %v2894_v42 = vadd.f32 %v3465_v50, %v4921_v53  ;;  %v2895_v44 = vadd.f32 %v3465_v50, %v4934_v29  ;;  %v2896_v53 = vadd.f32 %v3465_v50, %v4931_v8  ;;  %s5323_s1 = smov %s5322_s20  ;;  %s5231_s26 = scalar_lea.hbm %s5322_s20, %s3483_s27 }
0x102d   : > { %p4245_p2 = pneg %p4244_p0  ;;  %s4246_s25 = sshll.u32 %s4329_s14, 4  ;;  %s4247_s25 = int_to_ptr.vmem [resolvable:$false] %s4246_s25 }
0x102e   : > { %s4248_s0 = scalar_lea.vmem %s4247_s25, 1024  ;;  %p4249_p4 = scmp.lt.s32.totalorder %s5224_s18, %s4247_s25 }
0x102f   : > { %p4250_p5 = scmp.lt.s32.totalorder %s4248_s0, %s4242_s13 }
0x1031   : > { %p4251_p7 = por %p4250_p5, %p4249_p4 }
0x1033   : > { %p4252_p9 = pnand %p4251_p7, %p4245_p2 }
0x10dd   : > { %v3606_v33 = vpop.f32.mrb[18].mxu0 }
0x10de   : > { %v3607_v34 = vpop.f32.mrb[19].mxu0 }
0x10df   : > { %v3608_v36 = vadd.f32 %v3607_v34, %v3606_v33 }
0x10e1   : > { %v3215_v38 = vadd.f32 %v3608_v36, %v2893_v35  ;;  %v3609_v40 = vpop.f32.mrb[20].mxu0 }
0x10e2   : > { %v3610_v41 = vpop.f32.mrb[21].mxu0 }
0x10e3   : > { %3219 = vst.msk [vmem:[%s534_s24] sm:$0xff] %vm556_vm0, %v3215_v38  ;;  %v3611_v43 = vadd.f32 %v3610_v41, %v3609_v40 }
0x10e5   : > { %v3216_v45 = vadd.f32 %v3611_v43, %v2894_v42  ;;  %v3612_v49 = vpop.f32.mrb[22].mxu0 }
0x10e6   : > { %v3613_v51 = vpop.f32.mrb[23].mxu0 }
0x10e7   : > { %3220 = vst.msk [vmem:[%s534_s24 + $0x8] sm:$0xff] %vm556_vm0, %v3216_v45  ;;  %v3614_v7 = vadd.f32 %v3613_v51, %v3612_v49 }
0x10e9   : > { %v3217_v52 = vadd.f32 %v3614_v7, %v2895_v44  ;;  %v3615_v54 = vpop.f32.mrb[24].mxu0 }
0x10ea   : > { %v3616_v55 = vpop.f32.mrb[25].mxu0 }
0x10eb   : > { %3221 = vst.msk [vmem:[%s534_s24 + $0x10] sm:$0xff] %vm556_vm0, %v3217_v52  ;;  %v3617_v58 = vadd.f32 %v3616_v55, %v3615_v54 }
0x10ed   : > { %v3218_v37 = vadd.f32 %v3617_v58, %v2896_v53 }
0x10ef   : > { %3222 = vst.msk [vmem:[%s534_s24 + $0x18] sm:$0xff] %vm556_vm0, %v3218_v37 }
0x10f0   : > { %4255 = shalt.err (!%p4252_p9)
}
0x10f1   : > { %s4256_s22 = scalar_lea.hbm %s5231_s26, 512  ;;  %s4260_s29 = scalar_lea.hbm %s5323_s1, 1024 }
0x10f2   : > { %p4257_p1 = scmp.ne.s32.totalorder %s5231_s26, %s4256_s22  ;;  %p4261_p6 = scmp.lt.u32.totalorder %s5231_s26, %s5323_s1 }
0x10f3   : > { %p4262_p13 = scmp.lt.u32.totalorder %s4260_s29, %s4256_s22  ;;  %p4264_p10 = scmp.lt.u32.totalorder %s4256_s22, %s5231_s26 }
0x10f4   : > { %p4258_p3 = pnand %p4257_p1, %p5320_p12 }
0x10f5   : > { %p4263_p8 = por %p4262_p13, %p4261_p6 }
0x10f6   : > { %p4259_p11 = pneg %p4258_p3 }
0x10f7   : > { %p4265_p0 = por %p4264_p10, %p4263_p8 }
0x10f9   : > { %p4266_p2 = pnand %p4265_p0, %p4259_p11 }
0x10fb   : > { %4269 = shalt.err (!%p4266_p2)
}
0x10fc   : > { %s5324_s0 = smov 8   ;;  %s5325_s20 = smov 128  }
0x10fd   : > { %3952 = dma.vmem_to_hbm [thread:$0]  (%p5320_p12), %s5224_s18, 512, %s5231_s26, %s3224_s17, %s5325_s20, %s5325_s20, %s5324_s0  }
0x10fe PF: > { %s5326_s13 = sld [smem:[#allocation11_spill]]  ;;  %p5327_p4 = scmp.ne.s32.totalorder %s5314_s16, 0 }
0x10ff   : > { %p5328_p5 = scmp.ge.s32.totalorder %s4312_s21, 2 }
0x1101   : > { %p3961_p7 = pnand %p5328_p5, %p5327_p4 }
0x1104   : > { %s3275_s14 = sand.u32 1, %s5326_s13  }
0x1105   : > { %s3276_s22 = scalar_lea.sflag [#allocation4], %s3275_s14 }
0x1106   : > { %4291 = dma.done.wait (!%p3961_p7), %s3276_s22, 512  }
0x1107   : > { %4293 = vsyncadd (!%p3961_p7), %s3276_s22, 4294966784  ;;  %s3285_s30 = scalar_lea.sflag [#allocation7], %s3275_s14 }
0x1108   : > { %4295 = dma.done.wait (!%p3961_p7), %s3285_s30, 512  }
0x1109   : > { %4297 = vsyncadd (!%p3961_p7), %s3285_s30, 4294966784  ;;  %s5329_s21 = sld [smem:[#allocation13_spill]]  ;;  %s5330_s23 = sld [smem:[#allocation12_spill]] }
0x110a   : > { %s5331_s20 = sld [smem:[#allocation14_spill]]  ;;  %s5332_s18 = smov %s4304_s19 }
0x110f   : > { %p32_p12 = scmp.ge.s32.totalorder %s5329_s21, 4   ;;  %s5333_s19 = smov %s5330_s23 }
0x1111   :  { %34 = sbr.rel (!%p32_p12) target bundleno = 12 (0xc), region = 141 }
0x1118   :  { %3290 = vsyncpa [#allocation3], 1 }
0x1119   :  { %3292 = vsyncpa [#allocation3 + $0x1], 1 }
0x111a   :  { %3293 = vsyncpa [#allocation4], 1 }
0x111b   :  { %3295 = vsyncpa [#allocation4 + $0x1], 1 }
0x111c   :  { %3296 = vsyncpa [#allocation7], 1 }
0x111d   :  { %3298 = vsyncpa [#allocation7 + $0x1], 1 }

// kernel: tpu_custom_call.1
= control target key start
LH: loop header
LB: loop body
LE: loop exit
PB: predicated region body
PF: predicated region fallthrough
CT: control target
= control target key end

     0   :  { %s5279_s0 = inlined_call_operand.vmem [shape: f32[4,16,64], index: 0, kind: input, shape index: {}]   ;;  %s5280_s1 = inlined_call_operand.hbm [shape: s32[4,1,16], index: 1, kind: input, shape index: {}]   ;;  %s5281_s2 = inlined_call_operand.vmem [shape: f32[1,64], index: 2, kind: input, shape index: {}]   ;;  %s5282_s3 = inlined_call_operand.vmem [shape: f32[1,64], index: 3, kind: input, shape index: {}]   ;;  %s5283_s4 = inlined_call_operand.vmem [shape: f32[64,192], index: 4, kind: input, shape index: {}]   ;;  %s5284_s5 = inlined_call_operand.vmem [shape: f32[1,192], index: 5, kind: input, shape index: {}]   ;;  %s5285_s6 = inlined_call_operand.vmem [shape: f32[64,64], index: 6, kind: input, shape index: {}]   ;;  %s5286_s7 = inlined_call_operand.vmem [shape: f32[1,64], index: 7, kind: input, shape index: {}]   ;;  %s5287_s8 = inlined_call_operand.vmem [shape: f32[1,64], index: 8, kind: input, shape index: {}]   ;;  %s5288_s9 = inlined_call_operand.vmem [shape: f32[1,64], index: 9, kind: input, shape index: {}]   ;;  %s5289_s10 = inlined_call_operand.vmem [shape: f32[64,256], index: 10, kind: input, shape index: {}]   ;;  %s5290_s11 = inlined_call_operand.vmem [shape: f32[1,256], index: 11, kind: input, shape index: {}]   ;;  %s5291_s12 = inlined_call_operand.vmem [shape: f32[256,64], index: 12, kind: input, shape index: {}]   ;;  %s5292_s13 = inlined_call_operand.vmem [shape: f32[1,64], index: 13, kind: input, shape index: {}]   ;;  %s5293_s14 = inlined_call_operand.hbm [shape: f32[4,16,64], index: 14, kind: output, shape index: {0}]   ;;  %s5294_s15 = inlined_call_operand.hbm [shape: f32[4,16,16], index: 15, kind: output, shape index: {1}]  }
   0x1   :  { %5303 = sst [smem:[#allocation15_spill]] %s5279_s0 }
   0x2   :  { %5304 = sst [smem:[#allocation16_spill]] %s5280_s1 }
   0x3   :  { %5305 = sst [smem:[#allocation17_spill]] %s5292_s13 }
   0x4   :  { %5306 = sst [smem:[#allocation18_spill]] %s5293_s14 }
   0x5   :  { %21 = vsyncpa [#allocation3], 0 }
   0x6   :  { %23 = vsyncpa [#allocation3 + $0x1], 0 }
   0x7   :  { %24 = vsyncpa [#allocation4], 0 }
   0x8   :  { %26 = vsyncpa [#allocation4 + $0x1], 0 }
   0x9   :  { %27 = vsyncpa [#allocation7], 0 }
   0xa   :  { %29 = vsyncpa [#allocation7 + $0x1], 0  ;;  %s4410_s18 = smov 0   ;;  %s4412_s19 = smov 0  }
   0xb   :  { %s4414_s20 = smov 0   ;;  %s4416_s21 = smov 0  }
   0xc LB: > { %5307 = sst [smem:[#allocation11_spill]] %s4300_s18  ;;  %s4431_s22 = sadd.s32 4294967295, %s4312_s21   ;;  %s4312_s21 = sphi %s4416_s21, %s5329_s21   ;;  %s4308_s20 = sphi %s4414_s20, %s5331_s20   ;;  %s4304_s19 = sphi %s4412_s19, %s5333_s19   ;;  %s4300_s18 = sphi %s4410_s18, %s5332_s18  }
   0xd   : > { %5308 = sst [smem:[#allocation12_spill]] %s4308_s20  ;;  %s3377_s23 = sadd.s32 4294967294, %s4312_s21  }
   0xe   : > { %s4435_s24 = sadd.s32 1, %s4312_s21   ;;  %s68_s25 = sadd.s32 1, %s4308_s20 }
   0xf   : > { %5309 = sst [smem:[#allocation13_spill]] %s4435_s24  ;;  %s65_s26 = ssub.s32 %s4312_s21, %s4435_s24 }
  0x10   : > { %p75_p0 = scmp.ne.s32.totalorder %s4308_s20, %s4304_s19  ;;  %p66_p1 = scmp.eq.s32.totalorder %s65_s26, 0 }
  0x11   : > { %p76_p2 = scmp.eq.s32.totalorder %s4312_s21, 0  ;;  %p81_p3 = scmp.ne.s32.totalorder %s4304_s19, %s4300_s18 }
  0x12   : > { %p82_p4 = scmp.eq.s32.totalorder %s4431_s22, 0  ;;  %p357_p7 = scmp.eq.s32.totalorder %s4431_s22, 1 }
  0x13   : > { %s4447_s27 = scalar_select %p66_p1, %s4308_s20, %s68_s25  }
  0x14   : > { %p4449_p5 = por %p76_p2, %p75_p0  ;;  %p4453_p6 = por %p82_p4, %p81_p3 }
  0x15   : > { %5310 = sst [smem:[#allocation14_spill]] %s4447_s27  ;;  %p363_p8 = scmp.eq.s32.totalorder %s3377_s23, 1 }
  0x16   : > { %p3967_p10 = scmp.lt.s32.totalorder %s4312_s21, 2  ;;  %p4460_p11 = por %p357_p7, %p75_p0 }
  0x17   : > { %p4464_p12 = por %p363_p8, %p81_p3  ;;  %s455_s17 = sand.u32 1, %s4308_s20  }
  0x18   : > { %s5313_s30 = scalar_select %p4460_p11, 1, 0 }
  0x19   : > { %s5314_s16 = scalar_select %p4464_p12, 1, 0 }
  0x1a   : > { %s3480_s25 = sshll.u32 %s4312_s21, 5  ;;  %s3380_s26 = sshll.u32 %s455_s17, 1 }
  0x1b   : > { %s5315_s1 = sld [smem:[#allocation16_spill]]  ;;  %s459_s23 = scalar_lea.vmem [#allocation2], %s3380_s26 }
  0x1c   : > { %s466_s14 = sshll.u32 %s459_s23, 4  ;;  %p4477_p13 = pnand %p3967_p10, %p4449_p5  ;;  %s4481_s14 = int_to_ptr.vmem [resolvable:$true] %s466_s14 }
  0x1d   : > { %s4483_s20 = scalar_lea.sflag [#allocation3], %s455_s17 }
  0x1e   : > { %p4186_p1 = pneg %p4477_p13 }
  0x21   : > { %s4473_s18 = scalar_lea.hbm %s5315_s1, %s3480_s25  ;;  %s4189_s25 = scalar_lea.hbm %s5315_s1, 64 }
  0x22   : > { %s4184_s24 = scalar_lea.hbm %s4473_s18, 32  ;;  %p4190_p4 = scmp.lt.u32.totalorder %s4473_s18, %s5315_s1 }
  0x23   : > { %p4185_p0 = scmp.ne.s32.totalorder %s4473_s18, %s4184_s24  ;;  %p4191_p5 = scmp.lt.u32.totalorder %s4189_s25, %s4184_s24 }
  0x24   : > { %p4193_p8 = scmp.lt.u32.totalorder %s4184_s24, %s4473_s18 }
  0x25   : > { %p4187_p2 = pnand %p4186_p1, %p4185_p0  ;;  %p4192_p7 = por %p4191_p5, %p4190_p4 }
  0x27   : > { %p4188_p3 = pneg %p4187_p2  ;;  %p4194_p10 = por %p4193_p8, %p4192_p7 }
  0x29   : > { %p4195_p9 = pnand %p4194_p10, %p4188_p3 }
  0x2b   : > { %4198 = shalt.err (!%p4195_p9)
}
  0x2c   : > { %s4199_s17 = scalar_lea.vmem %s4481_s14, 32  ;;  %s4314_s27 = smov [#allocation2]  }
  0x2d   : > { %p4200_p0 = scmp.ne.s32.totalorder %s4481_s14, %s4199_s17  ;;  %s4204_s28 = sshll.u32 %s4314_s27, 4  ;;  %s4205_s28 = int_to_ptr.vmem [resolvable:$false] %s4204_s28 }
  0x2e   : > { %s4206_s26 = scalar_lea.vmem %s4205_s28, 64  ;;  %p4207_p11 = scmp.lt.s32.totalorder %s4481_s14, %s4205_s28 }
  0x2f   : > { %p4202_p2 = pnand %p4200_p0, %p4186_p1  ;;  %p4208_p4 = scmp.lt.s32.totalorder %s4206_s26, %s4199_s17 }
  0x31   : > { %p4203_p12 = pneg %p4202_p2  ;;  %p4209_p5 = por %p4208_p4, %p4207_p11 }
  0x33   : > { %p4210_p7 = pnand %p4209_p5, %p4203_p12 }
  0x35   : > { %4213 = shalt.err (!%p4210_p7)
}
  0x36   : > { %s4315_s24 = smov 16   ;;  %s4316_s25 = smov 1  }
  0x37   : > { %3959 = dma.hbm_to_vmem [thread:$0]  (!%p4477_p13), %s4473_s18, 32, %s4481_s14, %s4483_s20, %s4315_s24, %s4315_s24, %s4316_s25  }
  0x38   : > { %p3383_p9 = scmp.ge.s32.totalorder %s4312_s21, 1  ;;  %p474_p1 = scmp.lt.s32.totalorder %s4312_s21, 3 }
  0x3a   : > { %p475_p3 = pnand %p3383_p9, %p474_p1 }
  0x3b   : > { %s4514_s23 = sand.u32 (!%p475_p3), 1, %s4304_s19  }
  0x3c   : > { %478 = sbr.rel (%p475_p3) target bundleno = 4350 (0x10fe), region = 76  ;;  %s3384_s17 = sshll.u32 (!%p475_p3), %s4514_s23, 1 }
  0x3d   : > { %s481_s27 = scalar_lea.sflag (!%p475_p3), [#allocation3], %s4514_s23  ;;  %s4518_s28 = scalar_lea.vmem (!%p475_p3), [#allocation2], %s3384_s17 }
  0x43   : > { %4287 = dma.done.wait (%p4453_p6), %s481_s27, 32  }
  0x44   : > { %4289 = vsyncadd (%p4453_p6), %s481_s27, 4294967264  ;;  %s3387_s13 = sshll.u32 %s4431_s22, 1  ;;  %vm556_vm0 = vcmask 523264   ;;  %s5317_s0 = sld [smem:[#allocation15_spill]]  ;;  %v633_v28 = vld [vmem:[%s5283_s4 + $0x8] sm:$0xff]  ;;  %v635_v29 = vld [vmem:[%s5283_s4 + $0x18] sm:$0xff] }
  0x45   : > { %p543_p11 = scmp.lt.s32.totalorder %s3387_s13, 3  ;;  %v3770_v30 = vpack.c.bf16 %v635_v29, %v633_v28  ;;  %v632_v31 = vld [vmem:[%s5283_s4] sm:$0xff]  ;;  %v634_v32 = vld [vmem:[%s5283_s4 + $0x10] sm:$0xff]  ;;  %v637_v34 = vld [vmem:[%s5283_s4 + $0x28] sm:$0xff]  ;;  %v4317_v50 = vmov 0.0   ;;  %vm802_vm1 = vcmask 130048  }
  0x46   : > { %v3772_v33 = vpack.c.bf16 %v634_v32, %v632_v31  ;;  %v639_v35 = vld [vmem:[%s5283_s4 + $0x38] sm:$0xff]  ;;  %v636_v37 = vld [vmem:[%s5283_s4 + $0x20] sm:$0xff]  ;;  %v638_v38 = vld [vmem:[%s5283_s4 + $0x30] sm:$0xff]  ;;  %736 = vmatprep.mubr.f32.mxu0 %v4317_v50  ;;  %748 = vmatprep.mubr.f32.mxu1 %v4317_v50  ;;  %s4318_s18 = smov 64   ;;  %s4321_s20 = smov 48  }
  0x47   : > { %s5335_s13 = smov (!%p543_p11, %s3387_s13), 3  ;;  %3771 = vmatprep.subr.bf16.mxu0 %v3770_v30  ;;  %3930 = vmatprep.subr.bf16.mxu1 %v3770_v30  ;;  %v3774_v36 = vpack.c.bf16 %v639_v35, %v637_v34  ;;  %v3776_v39 = vpack.c.bf16 %v638_v38, %v636_v37  ;;  %v641_v40 = vld [vmem:[%s5283_s4 + $0x48] sm:$0xff]  ;;  %v643_v41 = vld [vmem:[%s5283_s4 + $0x58] sm:$0xff]  ;;  %v640_v43 = vld [vmem:[%s5283_s4 + $0x40] sm:$0xff]  ;;  %s3385_s29 = sshll.u32 %s4514_s23, 5 }
  0x48   : > { %s3481_s14 = sshll.u32 %s5335_s13, 4  ;;  %3773 = vmatpush1.bf16.msra.mxu0 %v3772_v33  ;;  %3934 = vmatpush1.bf16.msra.mxu1 %v3772_v33  ;;  %v3778_v42 = vpack.c.bf16 %v643_v41, %v641_v40  ;;  %v642_v44 = vld [vmem:[%s5283_s4 + $0x50] sm:$0xff]  ;;  %v645_v45 = vld [vmem:[%s5283_s4 + $0x68] sm:$0xff]  ;;  %v647_v47 = vld [vmem:[%s5283_s4 + $0x78] sm:$0xff]  ;;  %s4719_s24 = scalar_lea.vmem [#allocation6], %s3385_s29 }
  0x49   : > { %3775 = vmatprep.subr.bf16.mxu0 %v3774_v36  ;;  %3931 = vmatprep.subr.bf16.mxu1 %v3774_v36  ;;  %v3780_v46 = vpack.c.bf16 %v642_v44, %v640_v43  ;;  %v644_v48 = vld [vmem:[%s5283_s4 + $0x60] sm:$0xff]  ;;  %v646_v49 = vld [vmem:[%s5283_s4 + $0x70] sm:$0xff]  ;;  %v3782_v51 = vpack.c.bf16 %v647_v47, %v645_v45  ;;  %vm4653_vm2 = vmpackc.low %vm802_vm1, %vm802_vm1  ;;  %s4322_s25 = smov 32   ;;  %s4325_s1 = smov 16  }
  0x4a   : > { %s4528_s26 = scalar_lea.vmem %s5317_s0, %s3481_s14  ;;  %v3784_v52 = vpack.c.bf16 %v646_v49, %v644_v48  ;;  %s4323_s0 = smov 96  }
  0x4b   : > { %v552_v0 = vld [vmem:[%s4528_s26] sm:$0xff]  ;;  %v554_v1 = vld [vmem:[%s4528_s26 + $0x10] sm:$0xff]  ;;  %v553_v2 = vld [vmem:[%s4528_s26 + $0x8] sm:$0xff]  ;;  %s3483_s27 = sshll.u32 %s4431_s22, 9  ;;  %p5320_p12 = scmp.ne.s32.totalorder %s5313_s30, 0 }
  0x4c   : > { %v557_v3 = vsel %vm556_vm0, %v552_v0, 0.0  ;;  %v563_v4 = vsel %vm556_vm0, %v554_v1, 0.0  ;;  %v555_v5 = vld [vmem:[%s4528_s26 + $0x18] sm:$0xff]  ;;  %v560_v6 = vsel %vm556_vm0, %v553_v2, 0.0  ;;  %3777 = vmatpush1.bf16.msra.mxu0 %v3776_v39  ;;  %3935 = vmatpush1.bf16.msra.mxu1 %v3776_v39 }
  0x4d   : > { %558 = vadd.xlane.f32.xlu0 %v557_v3  ;;  %564 = vadd.xlane.f32.xlu1 %v563_v4  ;;  %v566_v7 = vsel %vm556_vm0, %v555_v5, 0.0  ;;  %v3391_v4 = vld [vmem:[%s5282_s3] ss:$0 sm:$0xff] }
  0x4e   : > { %3779 = vmatprep.subr.bf16.mxu0 %v3778_v42  ;;  %3932 = vmatprep.subr.bf16.mxu1 %v3778_v42 }
  0x50   : > { %3781 = vmatpush1.bf16.msra.mxu0 %v3780_v46  ;;  %3936 = vmatpush1.bf16.msra.mxu1 %v3780_v46 }
  0x51   : > { %561 = vadd.xlane.f32.xlu0 %v560_v6  ;;  %567 = vadd.xlane.f32.xlu1 %v566_v7 }
  0x52   : > { %3783 = vmatprep.subr.bf16.mxu0 %v3782_v51  ;;  %3933 = vmatprep.subr.bf16.mxu1 %v3782_v51 }
  0x54   : > { %3785 = vmatpush1.bf16.msra.mxu0 %v3784_v52  ;;  %3937 = vmatpush1.bf16.msra.mxu1 %v3784_v52 }
  0xda   : > { %v559_v8 = vpop.xlane.xlu0 %558  ;;  %v565_v9 = vpop.xlane.xlu1 %564 }
  0xdb   : > { %v570_v10 = vmul.f32 0.015625, %v559_v8  ;;  %v572_v11 = vmul.f32 0.015625, %v565_v9 }
  0xdd   : > { %v4538_v12 = vsub.f32 %v552_v0, %v570_v10  ;;  %v4540_v13 = vsub.f32 %v554_v1, %v572_v11 }
  0xde   : > { %v562_v14 = vpop.xlane.xlu0 %561  ;;  %v568_v15 = vpop.xlane.xlu1 %567 }
  0xdf   : > { %v571_v16 = vmul.f32 0.015625, %v562_v14  ;;  %v573_v17 = vmul.f32 0.015625, %v568_v15  ;;  %v578_v18 = vmul.f32 %v4538_v12, %v4538_v12  ;;  %v580_v19 = vmul.f32 %v4540_v13, %v4540_v13 }
  0xe1   : > { %v4546_v20 = vsub.f32 %v553_v2, %v571_v16  ;;  %v4548_v21 = vsub.f32 %v555_v5, %v573_v17  ;;  %v582_v22 = vsel %vm556_vm0, %v578_v18, 0.0  ;;  %v588_v23 = vsel %vm556_vm0, %v580_v19, 0.0  ;;  %v3390_v2 = vld [vmem:[%s5281_s2] ss:$0 sm:$0xff] }
  0xe2   : > { %583 = vadd.xlane.f32.xlu0 %v582_v22 }
  0xe3   : > { %v579_v24 = vmul.f32 %v4546_v20, %v4546_v20  ;;  %v581_v25 = vmul.f32 %v4548_v21, %v4548_v21 }
  0xe5   : > { %v585_v26 = vsel %vm556_vm0, %v579_v24, 0.0  ;;  %v591_v27 = vsel %vm556_vm0, %v581_v25, 0.0 }
  0xe6   : > { %589 = vadd.xlane.f32.xlu0 %v588_v23  ;;  %586 = vadd.xlane.f32.xlu1 %v585_v26 }
  0xea   : > { %592 = vadd.xlane.f32.xlu1 %v591_v27 }
 0x16f   : > { %v584_v53 = vpop.xlane.xlu0 %583 }
 0x170   : > { %v594_v54 = vmul.f32 0.015625, %v584_v53 }
 0x172   : > { %v598_v55 = vadd.f32 1e-05, %v594_v54 }
 0x173   : > { %v587_v56 = vpop.xlane.xlu1 %586  ;;  %v590_v57 = vpop.xlane.xlu0 %589 }
 0x174   : > { %4084 = vrsqrt.f32 %v598_v55  ;;  %v595_v58 = vmul.f32 0.015625, %v587_v56  ;;  %v596_v59 = vmul.f32 0.015625, %v590_v57 }
 0x176   : > { %v599_v60 = vadd.f32 1e-05, %v595_v58  ;;  %v600_v61 = vadd.f32 1e-05, %v596_v59 }
 0x177   : > { %v593_v62 = vpop.xlane.xlu1 %592 }
 0x178   : > { %4086 = vrsqrt.f32 %v599_v60  ;;  %v597_v63 = vmul.f32 0.015625, %v593_v62 }
 0x179   : > { %4088 = vrsqrt.f32 %v600_v61 }
 0x17a   : > { %v601_v0 = vadd.f32 1e-05, %v597_v63 }
 0x17c   : > { %4090 = vrsqrt.f32 %v601_v0  ;;  %v3396_v0 = vld [vmem:[%s4518_s28] ss:$0 sm:$0xff] }
 0x17e   : > { %v4085_v1 = vpop.eup %4084 }
 0x17f   : > { %v606_v3 = vmul.f32 %v4085_v1, %v4538_v12  ;;  %v4319_v1 = vmov 0  }
 0x181   : > { %v617_v5 = vmul.f32 %v3390_v2, %v606_v3 }
 0x182   : > { %v4087_v6 = vpop.eup %4086 }
 0x183   : > { %v4089_v7 = vpop.eup %4088  ;;  %v628_v8 = vadd.f32 %v3391_v4, %v617_v5  ;;  %v607_v9 = vmul.f32 %v4087_v6, %v4546_v20  ;;  %v3397_v6 = vld [vmem:[%s4518_s28 + $0x1] ss:$0 sm:$0xff]  ;;  %s4320_s28 = smov 112  }
 0x184   : > { %v608_v10 = vmul.f32 %v4089_v7, %v4540_v13  ;;  %v650_v13 = vlaneseq }
 0x185   : > { %3392 = vmatmul.mubr.msk.f32.vlgmr.msra.gmra.mrb[0].mxu0 %vm556_vm0, %v628_v8  ;;  %v618_v11 = vmul.f32 %v3390_v2, %v607_v9 }
 0x186   : > { %v4091_v14 = vpop.eup %4090  ;;  %742 = vmatprep.mubr.f32.mxu0 %v4317_v50  ;;  %v619_v15 = vmul.f32 %v3390_v2, %v608_v10  ;;  %v4624_v20 = vshrl.u32 %v650_v13, 7  ;;  %v768_v62 = vand.u32 127, %v650_v13 }
 0x187   : > { %v629_v12 = vadd.f32 %v3391_v4, %v618_v11  ;;  %v609_v16 = vmul.f32 %v4091_v14, %v4548_v21  ;;  %v648_v21 = vld [vmem:[%s5284_s5] sm:$0x3] }
 0x188   : > { %v630_v17 = vadd.f32 %v3391_v4, %v619_v15  ;;  %v652_v22 = vsub.s32 0, %v4624_v20  ;;  %v656_v24 = vsub.s32 1, %v4624_v20  ;;  %v771_v63 = vadd.s32 8, %v4624_v20 }
 0x189   : > { %3393 = vmatmul.mubr.msk.f32.gmra.mrb[2].mxu0 %vm556_vm0, %v629_v12  ;;  %v620_v18 = vmul.f32 %v3390_v2, %v609_v16  ;;  %vm772_vm4 = vcmp.gt.s32.totalorder %v768_v62, %v4624_v20 }
 0x18a   : > { %3394 = vmatmul.mubr.msk.f32.vlgmr.msra.gmra.mrb[0].mxu1 %vm556_vm0, %v630_v17  ;;  %v653_v23 = vrot.slane %v648_v21, %v652_v22  ;;  %v657_v28 = vrot.slane %v648_v21, %v656_v24  ;;  %vm773_vm3 = vcmp.gt.s32.totalorder %v768_v62, %v771_v63  ;;  %v774_v3 = vsel %vm772_vm4, 1, %v4319_v1 }
 0x18b   : > { %754 = vmatprep.mubr.f32.mxu1 %v4317_v50  ;;  %v631_v19 = vadd.f32 %v3391_v4, %v620_v18  ;;  %v775_v2 = vsel %vm773_vm3, 1, %v4319_v1  ;;  %v784_v5 = vadd.s32 %v3396_v0, %v774_v3  ;;  %v786_v11 = vadd.s32 %v3397_v6, %v774_v3 }
 0x18c   : > { %v785_v4 = vadd.s32 %v3396_v0, %v775_v2  ;;  %v787_v9 = vadd.s32 %v3397_v6, %v775_v2 }
 0x18d   : > { %vm788_vm6 = vcmp.gt.s32.totalorder %v784_v5, 0  ;;  %vm790_vm8 = vcmp.gt.s32.totalorder %v786_v11, 0 }
 0x18e   : > { %3395 = vmatmul.mubr.msk.f32.gmra.mrb[2].mxu1 %vm556_vm0, %v631_v19  ;;  %vm789_vm5 = vcmp.gt.s32.totalorder %v785_v4, 0  ;;  %v4686_v8 = vsel %vm788_vm6, -1e+18, %v4317_v50  ;;  %vm791_vm7 = vcmp.gt.s32.totalorder %v787_v9, 0  ;;  %v4696_v19 = vsel %vm790_vm8, -1e+18, %v4317_v50 }
 0x18f   : > { %v4683_v7 = vsel %vm789_vm5, -1e+18, %v4317_v50  ;;  %v4693_v18 = vsel %vm791_vm7, -1e+18, %v4317_v50 }
 0x258   : > { %v738_v25 = vpop.f32.mrb[0].mxu0 }
 0x259   : > { %v739_v26 = vadd.f32 %v738_v25, %v653_v23  ;;  %v740_v27 = vpop.f32.mrb[1].mxu0 }
 0x25a   : > { %v741_v34 = vadd.f32 %v740_v27, %v657_v28 }
 0x25b   : > { %v4635_v29 = vmul.f32 0.25, %v739_v26 }
 0x25c   : > { %v744_v30 = vpop.f32.mrb[2].mxu0 }
 0x25d   : > { %v745_v31 = vadd.f32 %v744_v30, %v653_v23  ;;  %v750_v32 = vpop.f32.mrb[0].mxu1  ;;  %v746_v33 = vpop.f32.mrb[3].mxu0  ;;  %3622 = vmatprep.mubr.msk.f32.mxu1 %vm802_vm1, %v4635_v29 }
 0x25e   : > { %v747_v35 = vadd.f32 %v746_v33, %v657_v28  ;;  %v752_v36 = vpop.f32.mrb[1].mxu1  ;;  %v751_v41 = vadd.f32 %v750_v32, %v653_v23 }
 0x25f   : > { %v4639_v37 = vpack.i.bf16 %v745_v31, %v739_v26  ;;  %v753_v44 = vadd.f32 %v752_v36, %v657_v28  ;;  %v4663_v59 = vmul.f32 0.25, %v745_v31 }
 0x260   : > { %v3798_v38 = vpack.c.bf16 %v747_v35, %v741_v34  ;;  %v4641_v39 = vpack.i.bf16 %v747_v35, %v741_v34  ;;  %v4665_v60 = vmul.f32 0.25, %v751_v41 }
 0x261   : > { %v756_v40 = vpop.f32.mrb[2].mxu1  ;;  %4015 = vrot.lane.b32.xlu0 %v4639_v37, %s4318_s18 }
 0x262   : > { %v757_v42 = vadd.f32 %v756_v40, %v653_v23  ;;  %v758_v43 = vpop.f32.mrb[3].mxu1 }
 0x263   : > { %v759_v45 = vadd.f32 %v758_v43, %v657_v28 }
 0x264   : > { %v4644_v46 = vpack.i.bf16 %v757_v42, %v751_v41  ;;  %v4673_v61 = vmul.f32 0.25, %v757_v42 }
 0x265   : > { %v4646_v47 = vpack.c.bf16 %v759_v45, %v753_v44  ;;  %v4648_v48 = vpack.i.bf16 %v759_v45, %v753_v44 }
 0x266   : > { %4020 = vrot.lane.b32.xlu1 %v4644_v46, %s4318_s18  ;;  %s5180_s18 = scalar_lea.hbm %s5294_s15, %s3483_s27 }
 0x2d3   : > { %v4016_v49 = vpop.permute.xlu0 %4015 }
 0x2d4   : > { %v4018_v51 = vunpack.i.h.bf16 %v4016_v49  ;;  %v4017_v52 = vunpack.i.l.bf16 %v4016_v49 }
 0x2d6   : > { %v3786_v54 = vpack.c.bf16 %v4018_v51, %v4017_v52 }
 0x2d8   : > { %v4021_v55 = vpop.permute.xlu1 %4020  ;;  %3788 = vmatprep.subr.msk.bf16.mxu1 %vm4653_vm2, %v3786_v54 }
 0x2d9   : > { %v4023_v56 = vunpack.i.h.bf16 %v4021_v55  ;;  %v4022_v57 = vunpack.i.l.bf16 %v4021_v55  ;;  %3791 = vmatpush3.bf16.xpose.msk.msra.mxu1 %vm4653_vm2, %v3786_v54 }
 0x2db   : > { %v3792_v58 = vpack.c.bf16 %v4023_v56, %v4022_v57 }
 0x2dd   : > { %3794 = vmatprep.subr.msk.bf16.mxu1 %vm4653_vm2, %v3792_v58 }
 0x2e0   : > { %3623 = vmatmul.mubr.msk.f32.vlgmr.msra.gmra.mrb[4].mxu1 %vm802_vm1, %v4663_v59 }
 0x2e1   : > { %3797 = vmatpush3.bf16.xpose.msk.msra.mxu1 %vm4653_vm2, %v3792_v58  ;;  %3629 = vmatprep.mubr.msk.f32.mxu1 %vm802_vm1, %v4665_v60 }
 0x2e2   : > { %3799 = vmatprep.subr.bf16.mxu1 %v3798_v38 }
 0x2e8   : > { %3630 = vmatmul.mubr.msk.f32.vlgmr.msra.gmra.mrb[6].mxu1 %vm802_vm1, %v4673_v61 }
 0x2e9   : > { %3801 = vmatpush3.bf16.msra.mxu1 %v3798_v38 }
 0x2ea   : > { %3803 = vmatprep.subr.bf16.mxu1 %v4646_v47 }
 0x3b3   : > { %v3624_v10 = vpop.f32.mrb[4].mxu1 }
 0x3b4   : > { %v885_v14 = vadd.f32 %v3624_v10, %v4683_v7  ;;  %v879_v15 = vpop.f32.mrb[5].mxu1 }
 0x3b5   : > { %v880_v12 = vadd.f32 %v879_v15, %v4686_v8 }
 0x3b6   : > { %v982_v16 = vsel %vm802_vm1, %v885_v14, -inf }
 0x3b7   : > { %983 = vmax.xlane.f32.xlu0 %v982_v16  ;;  %v979_v17 = vsel %vm802_vm1, %v880_v12, -inf }
 0x3b8   : > { %980 = vmax.xlane.f32.xlu1 %v979_v17 }
 0x3bb   : > { %v3631_v13 = vpop.f32.mrb[6].mxu1 }
 0x3bc   : > { %v976_v21 = vadd.f32 %v3631_v13, %v4693_v18  ;;  %v970_v23 = vpop.f32.mrb[7].mxu1 }
 0x3bd   : > { %v971_v25 = vadd.f32 %v970_v23, %v4696_v19 }
 0x3be   : > { %v988_v26 = vsel %vm802_vm1, %v976_v21, -inf }
 0x3bf   : > { %989 = vmax.xlane.f32.xlu1 %v988_v26  ;;  %v985_v27 = vsel %vm802_vm1, %v971_v25, -inf }
 0x3c0   : > { %986 = vmax.xlane.f32.xlu0 %v985_v27 }
 0x444   : > { %v984_v28 = vpop.xlane.xlu0 %983 }
 0x445   : > { %v992_v30 = vsub.f32 %v885_v14, %v984_v28  ;;  %v981_v31 = vpop.xlane.xlu1 %980 }
 0x446   : > { %v991_v32 = vsub.f32 %v880_v12, %v981_v31 }
 0x447   : > { %v997_v33 = vmul.f32 1.442695, %v992_v30 }
 0x448   : > { %v995_v34 = vmul.f32 1.442695, %v991_v32 }
 0x449   : > { %4092 = vpow2.f32 %v997_v33 }
 0x44a   : > { %4094 = vpow2.f32 %v995_v34 }
 0x44c   : > { %v990_v35 = vpop.xlane.xlu1 %989 }
 0x44d   : > { %v994_v36 = vsub.f32 %v976_v21, %v990_v35  ;;  %v987_v38 = vpop.xlane.xlu0 %986 }
 0x44e   : > { %v993_v40 = vsub.f32 %v971_v25, %v987_v38 }
 0x44f   : > { %v1001_v41 = vmul.f32 1.442695, %v994_v36 }
 0x450   : > { %v999_v42 = vmul.f32 1.442695, %v993_v40 }
 0x451   : > { %4096 = vpow2.f32 %v1001_v41 }
 0x452   : > { %4098 = vpow2.f32 %v999_v42 }
 0x453   : > { %v4093_v43 = vpop.eup %4092 }
 0x454   : > { %v4095_v44 = vpop.eup %4094  ;;  %v1006_v45 = vsel %vm802_vm1, %v4093_v43, 0.0 }
 0x455   : > { %1007 = vadd.xlane.f32.xlu1 %v1006_v45  ;;  %v1003_v49 = vsel %vm802_vm1, %v4095_v44, 0.0 }
 0x456   : > { %1004 = vadd.xlane.f32.xlu0 %v1003_v49 }
 0x45b   : > { %v4097_v51 = vpop.eup %4096 }
 0x45c   : > { %v4099_v52 = vpop.eup %4098  ;;  %v1012_v54 = vsel %vm802_vm1, %v4097_v51, 0.0 }
 0x45d   : > { %1013 = vadd.xlane.f32.xlu1 %v1012_v54  ;;  %v1009_v55 = vsel %vm802_vm1, %v4099_v52, 0.0 }
 0x45e   : > { %1010 = vadd.xlane.f32.xlu0 %v1009_v55 }
 0x46e   : > { %1282 = vrot.lane.b32.xlu1 %v4665_v60, %s4320_s28 }
 0x472   : > { %1284 = vrot.lane.b32.xlu1 %v4673_v61, %s4320_s28 }
 0x474   : > { %4025 = vrot.lane.b32.xlu0 %v4644_v46, %s4321_s20 }
 0x476   : > { %4030 = vrot.lane.b32.xlu1 %v4639_v37, %s4321_s20  ;;  %s3229_s20 = scalar_lea.sflag [#allocation7], %s4514_s23 }
 0x478   : > { %1191 = vrot.lane.b32.xlu0 %v4635_v29, %s4320_s28 }
 0x47a   : > { %1193 = vrot.lane.b32.xlu1 %v4663_v59, %s4320_s28 }
 0x4e2   : > { %v1008_v56 = vpop.xlane.xlu1 %1007 }
 0x4e3   : > { %4100 = vrcp.f32 %v1008_v56  ;;  %v1005_v57 = vpop.xlane.xlu0 %1004 }
 0x4e4   : > { %4102 = vrcp.f32 %v1005_v57 }
 0x4ea   : > { %v1014_v58 = vpop.xlane.xlu1 %1013 }
 0x4eb   : > { %4104 = vrcp.f32 %v1014_v58  ;;  %v1011_v62 = vpop.xlane.xlu0 %1010 }
 0x4ec   : > { %4106 = vrcp.f32 %v1011_v62 }
 0x4ed   : > { %v4101_v63 = vpop.eup %4100 }
 0x4ee   : > { %v4103_v0 = vpop.eup %4102  ;;  %v1020_v1 = vmul.f32 %v4101_v63, %v4093_v43  ;;  %v1283_v2 = vpop.permute.xlu1 %1282 }
 0x4ef   : > { %v4026_v3 = vpop.permute.xlu0 %4025  ;;  %v1019_v4 = vmul.f32 %v4103_v0, %v4095_v44 }
 0x4f0   : > { %v4028_v5 = vunpack.i.h.bf16 %v4026_v3  ;;  %v4027_v6 = vunpack.i.l.bf16 %v4026_v3  ;;  %1024 = vst.msk [vmem:[%s4719_s24 + $0x8] sm:$0xff] %vm802_vm1, %v1020_v1 }
 0x4f1   : > { %1023 = vst.msk [vmem:[%s4719_s24] sm:$0xff] %vm802_vm1, %v1019_v4  ;;  %3636 = vmatprep.mubr.msk.f32.mxu1 %vm802_vm1, %v1019_v4 }
 0x4f2   : > { %v3812_v9 = vpack.c.bf16 %v4028_v5, %v4027_v6  ;;  %3637 = vmatmul.mubr.msk.f32.vlgmr.msra.gmra.mrb[8].mxu1 %vm802_vm1, %v1020_v1  ;;  %v1285_v10 = vpop.permute.xlu1 %1284 }
 0x4f3   : > { %3805 = vmatpush3.bf16.msra.mxu1 %v4646_v47  ;;  %v1192_v11 = vpop.permute.xlu0 %1191 }
 0x4f4   : > { %3650 = vmatprep.mubr.msk.f32.mxu0 %vm802_vm1, %v1192_v11  ;;  %3814 = vmatprep.subr.msk.bf16.mxu1 %vm4653_vm2, %v3812_v9 }
 0x4f5   : > { %v4105_v14 = vpop.eup %4104 }
 0x4f6   : > { %v4107_v15 = vpop.eup %4106  ;;  %v1022_v12 = vmul.f32 %v4105_v14, %v4097_v51  ;;  %v4031_v16 = vpop.permute.xlu1 %4030 }
 0x4f7   : > { %v4033_v17 = vunpack.i.h.bf16 %v4031_v16  ;;  %v4032_v13 = vunpack.i.l.bf16 %v4031_v16  ;;  %v1021_v21 = vmul.f32 %v4107_v15, %v4099_v52 }
 0x4f8   : > { %1026 = vst.msk [vmem:[%s4719_s24 + $0x18] sm:$0xff] %vm802_vm1, %v1022_v12 }
 0x4f9   : > { %v3806_v23 = vpack.c.bf16 %v4033_v17, %v4032_v13  ;;  %1025 = vst.msk [vmem:[%s4719_s24 + $0x10] sm:$0xff] %vm802_vm1, %v1021_v21  ;;  %3643 = vmatprep.mubr.msk.f32.mxu1 %vm802_vm1, %v1021_v21 }
 0x4fa   : > { %3644 = vmatmul.mubr.msk.f32.vlgmr.msra.gmra.mrb[10].mxu1 %vm802_vm1, %v1022_v12  ;;  %v1194_v47 = vpop.permute.xlu1 %1193 }
 0x4fb   : > { %3808 = vmatprep.subr.msk.bf16.mxu0 %vm4653_vm2, %v3806_v23  ;;  %3657 = vmatprep.mubr.msk.f32.mxu1 %vm802_vm1, %v1283_v2 }
 0x4fc   : > { %3817 = vmatpush3.bf16.xpose.msk.msra.mxu1 %vm4653_vm2, %v3812_v9  ;;  %3811 = vmatpush3.bf16.xpose.msk.msra.mxu0 %vm4653_vm2, %v3806_v23 }
 0x503   : > { %3658 = vmatmul.mubr.msk.f32.vlgmr.msra.gmra.mrb[12].mxu1 %vm802_vm1, %v1285_v10  ;;  %3651 = vmatmul.mubr.msk.f32.vlgmr.msra.gmra.mrb[4].mxu0 %vm802_vm1, %v1194_v47 }
 0x5c5   : > { %v4746_v25 = vpop.f32.mrb[8].mxu1 }
 0x5c6   : > { %v4748_v26 = vpop.f32.mrb[9].mxu1 }
 0x5cd   : > { %v4750_v27 = vpop.f32.mrb[10].mxu1 }
 0x5ce   : > { %v4752_v28 = vpop.f32.mrb[11].mxu1 }
 0x5d6   : > { %v3659_v30 = vpop.f32.mrb[12].mxu1  ;;  %v3652_v31 = vpop.f32.mrb[4].mxu0 }
 0x5d7   : > { %v1370_v32 = vadd.f32 %v3659_v30, %v4693_v18  ;;  %v1364_v33 = vpop.f32.mrb[13].mxu1  ;;  %v1273_v34 = vpop.f32.mrb[5].mxu0  ;;  %v1279_v9 = vadd.f32 %v3652_v31, %v4683_v7 }
 0x5d8   : > { %v1365_v35 = vadd.f32 %v1364_v33, %v4696_v19  ;;  %v1274_v40 = vadd.f32 %v1273_v34, %v4686_v8 }
 0x5d9   : > { %v1382_v36 = vsel %vm802_vm1, %v1370_v32, -inf  ;;  %v1376_v10 = vsel %vm802_vm1, %v1279_v9, -inf }
 0x5da   : > { %1383 = vmax.xlane.f32.xlu1 %v1382_v36  ;;  %v1379_v38 = vsel %vm802_vm1, %v1365_v35, -inf  ;;  %v1373_v41 = vsel %vm802_vm1, %v1274_v40, -inf }
 0x5db   : > { %1380 = vmax.xlane.f32.xlu0 %v1379_v38 }
 0x5eb   : > { %4040 = vrot.lane.b32.xlu1 %v4639_v37, %s4322_s25 }
 0x5ef   : > { %4045 = vrot.lane.b32.xlu1 %v4644_v46, %s4322_s25  ;;  %s4324_s25 = smov 80  }
 0x5f3   : > { %1791 = vrot.lane.b32.xlu1 %v4635_v29, %s4323_s0 }
 0x5f7   : > { %1882 = vrot.lane.b32.xlu1 %v4665_v60, %s4323_s0 }
 0x61b   : > { %1374 = vmax.xlane.f32.xlu1 %v1373_v41 }
 0x62c   : > { %4050 = vrot.lane.b32.xlu1 %v4641_v39, %s4320_s28 }
 0x667   : > { %v1384_v42 = vpop.xlane.xlu1 %1383 }
 0x668   : > { %v1388_v43 = vsub.f32 %v1370_v32, %v1384_v42  ;;  %v1381_v44 = vpop.xlane.xlu0 %1380 }
 0x669   : > { %v1387_v45 = vsub.f32 %v1365_v35, %v1381_v44 }
 0x66a   : > { %v1395_v49 = vmul.f32 1.442695, %v1388_v43 }
 0x66b   : > { %v1393_v51 = vmul.f32 1.442695, %v1387_v45  ;;  %v4041_v57 = vpop.permute.xlu1 %4040 }
 0x66c   : > { %4108 = vpow2.f32 %v1395_v49  ;;  %v4043_v17 = vunpack.i.h.bf16 %v4041_v57  ;;  %v4042_v13 = vunpack.i.l.bf16 %v4041_v57 }
 0x66d   : > { %4110 = vpow2.f32 %v1393_v51 }
 0x66e   : > { %v3834_v30 = vpack.c.bf16 %v4043_v17, %v4042_v13  ;;  %v1189_v17 = vld [vmem:[%s5285_s6] sm:$0xff]  ;;  %v1190_v13 = vld [vmem:[%s5285_s6 + $0x8] sm:$0xff] }
 0x66f   : > { %v4046_v58 = vpop.permute.xlu1 %4045 }
 0x670   : > { %v4048_v35 = vunpack.i.h.bf16 %v4046_v58  ;;  %v4047_v36 = vunpack.i.l.bf16 %v4046_v58 }
 0x672   : > { %v3840_v38 = vpack.c.bf16 %v4048_v35, %v4047_v36 }
 0x673   : > { %v1792_v62 = vpop.permute.xlu1 %1791 }
 0x676   : > { %v4109_v52 = vpop.eup %4108 }
 0x677   : > { %v1406_v54 = vsel %vm802_vm1, %v4109_v52, 0.0  ;;  %v4111_v55 = vpop.eup %4110  ;;  %v1883_v63 = vpop.permute.xlu1 %1882 }
 0x678   : > { %1407 = vadd.xlane.f32.xlu0 %v1406_v54  ;;  %v1403_v56 = vsel %vm802_vm1, %v4111_v55, 0.0 }
 0x67c   : > { %1404 = vadd.xlane.f32.xlu0 %v1403_v56 }
 0x692   : > { %4035 = vrot.lane.b32.xlu0 %v4648_v48, %s4320_s28  ;;  %s3260_s28 = sshll.u32 %s4719_s24, 4  ;;  %s5183_s28 = int_to_ptr.vmem [resolvable:$true] %s3260_s28 }
 0x696   : > { %1793 = vrot.lane.b32.xlu0 %v4663_v59, %s4323_s0 }
 0x69a   : > { %1884 = vrot.lane.b32.xlu0 %v4673_v61, %s4323_s0 }
 0x6a8   : > { %v1375_v0 = vpop.xlane.xlu1 %1374 }
 0x6a9   : > { %v1385_v1 = vsub.f32 %v1274_v40, %v1375_v0 }
 0x6ab   : > { %v1389_v2 = vmul.f32 1.442695, %v1385_v1 }
 0x6ac   : > { %v4051_v3 = vpop.permute.xlu1 %4050 }
 0x6ad   : > { %v4053_v4 = vunpack.i.h.bf16 %v4051_v3  ;;  %v4052_v5 = vunpack.i.l.bf16 %v4051_v3  ;;  %4112 = vpow2.f32 %v1389_v2 }
 0x6af   : > { %v3818_v6 = vpack.c.bf16 %v4053_v4, %v4052_v5 }
 0x6b1   : > { %3819 = vmatprep.subr.bf16.mxu0 %v3818_v6 }
 0x6b2   : > { %3821 = vmatpush3.bf16.msra.mxu0 %v3818_v6 }
 0x6b7   : > { %v4113_v11 = vpop.eup %4112 }
 0x6b8   : > { %v1397_v14 = vsel %vm802_vm1, %v4113_v11, 0.0 }
 0x6b9   : > { %1377 = vmax.xlane.f32.xlu0 %v1376_v10 }
 0x6bd   : > { %1398 = vadd.xlane.f32.xlu0 %v1397_v14 }
 0x705   : > { %v1408_v15 = vpop.xlane.xlu0 %1407 }
 0x706   : > { %4114 = vrcp.f32 %v1408_v15  ;;  %v1595_v15 = vld [vmem:[%s5285_s6 + $0x10] sm:$0xff] }
 0x709   : > { %v1405_v12 = vpop.xlane.xlu0 %1404 }
 0x70a   : > { %4116 = vrcp.f32 %v1405_v12  ;;  %v1596_v12 = vld [vmem:[%s5285_s6 + $0x18] sm:$0xff] }
 0x70d   : > { %v4036_v16 = vpop.permute.xlu0 %4035 }
 0x70e   : > { %v4038_v21 = vunpack.i.h.bf16 %v4036_v16  ;;  %v4037_v23 = vunpack.i.l.bf16 %v4036_v16  ;;  %v3826_v16 = vpack.c.bf16 %v1596_v12, %v1595_v15 }
 0x710   : > { %v3822_v47 = vpack.c.bf16 %v4038_v21, %v4037_v23  ;;  %v4115_v31 = vpop.eup %4114  ;;  %3827 = vmatprep.subr.bf16.mxu0 %v3826_v16  ;;  %v3830_v21 = vpack.c.bf16 %v1190_v13, %v1189_v17 }
 0x711   : > { %v1416_v34 = vmul.f32 %v4115_v31, %v4109_v52  ;;  %v1794_v40 = vpop.permute.xlu0 %1793 }
 0x712   : > { %3823 = vmatprep.subr.bf16.mxu1 %v3822_v47 }
 0x713   : > { %3825 = vmatpush3.bf16.msra.mxu1 %v3822_v47 }
 0x714   : > { %v4117_v32 = vpop.eup %4116  ;;  %3836 = vmatprep.subr.msk.bf16.mxu1 %vm4653_vm2, %v3834_v30 }
 0x715   : > { %v1415_v33 = vmul.f32 %v4117_v32, %v4111_v55  ;;  %v1885_v41 = vpop.permute.xlu0 %1884 }
 0x717   : > { %3671 = vmatprep.mubr.msk.f32.mxu1 %vm802_vm1, %v1415_v33 }
 0x718   : > { %3672 = vmatmul.mubr.msk.f32.vlgmr.msra.gmra.mrb[14].mxu1 %vm802_vm1, %v1416_v34 }
 0x719   : > { %3698 = vmatprep.mubr.msk.f32.mxu1 %vm802_vm1, %v1792_v62 }
 0x71c   : > { %3839 = vmatpush3.bf16.xpose.msk.msra.mxu1 %vm4653_vm2, %v3834_v30 }
 0x71d   : > { %3842 = vmatprep.subr.msk.bf16.mxu1 %vm4653_vm2, %v3840_v38 }
 0x723   : > { %3699 = vmatmul.mubr.msk.f32.vlgmr.msra.gmra.mrb[16].mxu1 %vm802_vm1, %v1794_v40 }
 0x724   : > { %3845 = vmatpush3.bf16.xpose.msk.msra.mxu1 %vm4653_vm2, %v3840_v38  ;;  %3705 = vmatprep.mubr.msk.f32.mxu1 %vm802_vm1, %v1883_v63 }
 0x72b   : > { %3706 = vmatmul.mubr.msk.f32.vlgmr.msra.gmra.mrb[18].mxu1 %vm802_vm1, %v1885_v41 }
 0x746   : > { %v1378_v42 = vpop.xlane.xlu0 %1377 }
 0x747   : > { %v1386_v43 = vsub.f32 %v1279_v9, %v1378_v42 }
 0x749   : > { %v1391_v44 = vmul.f32 1.442695, %v1386_v43 }
 0x74a   : > { %v1399_v45 = vpop.xlane.xlu0 %1398 }
 0x74b   : > { %4118 = vpow2.f32 %v1391_v44 }
 0x74c   : > { %4120 = vrcp.f32 %v1399_v45 }
 0x755   : > { %v4119_v49 = vpop.eup %4118 }
 0x756   : > { %v4121_v51 = vpop.eup %4120  ;;  %v1400_v52 = vsel %vm802_vm1, %v4119_v49, 0.0 }
 0x757   : > { %1401 = vadd.xlane.f32.xlu0 %v1400_v52  ;;  %v1413_v54 = vmul.f32 %v4121_v51, %v4113_v11 }
 0x759   : > { %3664 = vmatprep.mubr.msk.f32.mxu0 %vm802_vm1, %v1413_v54 }
 0x7e4   : > { %v1402_v55 = vpop.xlane.xlu0 %1401 }
 0x7e5   : > { %4122 = vrcp.f32 %v1402_v55 }
 0x7eb   : > { %v4795_v56 = vpop.f32.mrb[14].mxu1 }
 0x7ec   : > { %v4797_v57 = vpop.f32.mrb[15].mxu1 }
 0x7ef   : > { %v4123_v58 = vpop.eup %4122 }
 0x7f0   : > { %v1414_v62 = vmul.f32 %v4123_v58, %v4119_v49 }
 0x7f2   : > { %3665 = vmatmul.mubr.msk.f32.vlgmr.msra.gmra.mrb[6].mxu0 %vm802_vm1, %v1414_v62  ;;  %v2192_v62 = vld [vmem:[%s5285_s6 + $0x28] sm:$0xff] }
 0x7f3   : > { %3829 = vmatpush3.bf16.msra.mxu0 %v3826_v16 }
 0x7f4   : > { %3831 = vmatprep.subr.bf16.mxu0 %v3830_v21 }
 0x7f6   : > { %v3700_v63 = vpop.f32.mrb[16].mxu1 }
 0x7f7   : > { %v1879_v0 = vadd.f32 %v3700_v63, %v4683_v7  ;;  %v1873_v1 = vpop.f32.mrb[17].mxu1 }
 0x7f8   : > { %v1874_v2 = vadd.f32 %v1873_v1, %v4686_v8 }
 0x7f9   : > { %v1976_v3 = vsel %vm802_vm1, %v1879_v0, -inf }
 0x7fa   : > { %1977 = vmax.xlane.f32.xlu0 %v1976_v3  ;;  %v1973_v4 = vsel %vm802_vm1, %v1874_v2, -inf }
 0x7fe   : > { %v3707_v5 = vpop.f32.mrb[18].mxu1  ;;  %1974 = vmax.xlane.f32.xlu0 %v1973_v4 }
 0x7ff   : > { %v1964_v6 = vpop.f32.mrb[19].mxu1  ;;  %v1970_v10 = vadd.f32 %v3707_v5, %v4693_v18 }
 0x800   : > { %v1965_v9 = vadd.f32 %v1964_v6, %v4696_v19 }
 0x801   : > { %v1982_v14 = vsel %vm802_vm1, %v1970_v10, -inf }
 0x802   : > { %v1979_v11 = vsel %vm802_vm1, %v1965_v9, -inf }
 0x803   : > { %1980 = vmax.xlane.f32.xlu0 %v1979_v11 }
 0x807   : > { %1983 = vmax.xlane.f32.xlu0 %v1982_v14 }
 0x887   : > { %v1978_v23 = vpop.xlane.xlu0 %1977 }
 0x888   : > { %v1986_v47 = vsub.f32 %v1879_v0, %v1978_v23 }
 0x88a   : > { %v1991_v30 = vmul.f32 1.442695, %v1986_v47 }
 0x88b   : > { %v1975_v31 = vpop.xlane.xlu0 %1974 }
 0x88c   : > { %4124 = vpow2.f32 %v1991_v30  ;;  %v1985_v32 = vsub.f32 %v1874_v2, %v1975_v31 }
 0x88e   : > { %v1989_v33 = vmul.f32 1.442695, %v1985_v32 }
 0x890   : > { %4126 = vpow2.f32 %v1989_v33  ;;  %v1981_v34 = vpop.xlane.xlu0 %1980 }
 0x891   : > { %v1987_v35 = vsub.f32 %v1965_v9, %v1981_v34 }
 0x893   : > { %v1993_v41 = vmul.f32 1.442695, %v1987_v35 }
 0x894   : > { %v1984_v36 = vpop.xlane.xlu0 %1983 }
 0x895   : > { %v1988_v38 = vsub.f32 %v1970_v10, %v1984_v36 }
 0x896   : > { %v4820_v40 = vpop.eup %4124 }
 0x897   : > { %v1995_v42 = vmul.f32 1.442695, %v1988_v38  ;;  %v2000_v43 = vsel %vm802_vm1, %v4820_v40, 0.0 }
 0x898   : > { %2001 = vadd.xlane.f32.xlu0 %v2000_v43 }
 0x899   : > { %4128 = vpow2.f32 %v1995_v42 }
 0x89a   : > { %v4127_v44 = vpop.eup %4126  ;;  %4130 = vpow2.f32 %v1993_v41 }
 0x89b   : > { %v1997_v45 = vsel %vm802_vm1, %v4127_v44, 0.0 }
 0x89c   : > { %1998 = vadd.xlane.f32.xlu1 %v1997_v45 }
 0x8a3   : > { %v4825_v49 = vpop.eup %4128 }
 0x8a4   : > { %v2006_v51 = vsel %vm802_vm1, %v4825_v49, 0.0  ;;  %v4131_v52 = vpop.eup %4130 }
 0x8a5   : > { %2007 = vadd.xlane.f32.xlu0 %v2006_v51  ;;  %v2003_v54 = vsel %vm802_vm1, %v4131_v52, 0.0 }
 0x8a9   : > { %2004 = vadd.xlane.f32.xlu0 %v2003_v54 }
 0x8ad   : > { %4060 = vrot.lane.b32.xlu1 %v4648_v48, %s4323_s0 }
 0x8b1   : > { %2387 = vrot.lane.b32.xlu1 %v4673_v61, %s4324_s25 }
 0x8bf   : > { %4055 = vrot.lane.b32.xlu0 %v4641_v39, %s4323_s0 }
 0x8c3   : > { %4065 = vrot.lane.b32.xlu0 %v4639_v37, %s4325_s1 }
 0x8c5   : > { %v3666_v55 = vpop.f32.mrb[6].mxu0 }
 0x8c6   : > { %v1497_v58 = vpop.f32.mrb[7].mxu0 }
 0x8c7   : > { %4070 = vrot.lane.b32.xlu0 %v4644_v46, %s4325_s1  ;;  %3678 = vmatprep.mubr.msk.f32.mxu0 %vm802_vm1, %v1497_v58  ;;  %s4326_s1 = smov [#allocation6]  }
 0x8c8   : > { %3679 = vmatmul.mubr.msk.f32.vlgmr.msra.gmra.mrb[8].mxu0 %vm802_vm1, %v3666_v55 }
 0x8c9   : > { %3681 = vmatprep.mubr.msk.f32.mxu0 %vm802_vm1, %v4797_v57  ;;  %3833 = vmatpush3.bf16.msra.mxu0 %v3830_v21 }
 0x8cb   : > { %2294 = vrot.lane.b32.xlu0 %v4635_v29, %s4324_s25 }
 0x8cc   : > { %3682 = vmatmul.mubr.msk.f32.gmra.mrb[10].mxu0 %vm802_vm1, %v4795_v56 }
 0x8cd   : > { %3688 = vmatprep.mubr.msk.f32.mxu0 %vm802_vm1, %v4748_v26 }
 0x8cf   : > { %2296 = vrot.lane.b32.xlu0 %v4663_v59, %s4324_s25 }
 0x8d0   : > { %3689 = vmatmul.mubr.msk.f32.vlgmr.msra.gmra.mrb[8].mxu0 %vm802_vm1, %v4746_v25 }
 0x8d1   : > { %3691 = vmatprep.mubr.msk.f32.mxu0 %vm802_vm1, %v4752_v28 }
 0x8d3   : > { %2385 = vrot.lane.b32.xlu0 %v4665_v60, %s4324_s25 }
 0x8d4   : > { %3692 = vmatmul.mubr.msk.f32.gmra.mrb[10].mxu0 %vm802_vm1, %v4750_v27  ;;  %v2191_v27 = vld [vmem:[%s5285_s6 + $0x20] sm:$0xff] }
 0x8d5   : > { %v3854_v2 = vpack.c.bf16 %v2192_v62, %v2191_v27 }
 0x925   : > { %v2002_v46 = vpop.xlane.xlu0 %2001 }
 0x929   : > { %v1999_v29 = vpop.xlane.xlu1 %1998 }
 0x92a   : > { %4132 = vrcp.f32 %v1999_v29 }
 0x92b   : > { %4134 = vrcp.f32 %v2002_v46 }
 0x92d   : > { %v4061_v37 = vpop.permute.xlu1 %4060 }
 0x92e   : > { %v4063_v61 = vunpack.i.h.bf16 %v4061_v37  ;;  %v4062_v26 = vunpack.i.l.bf16 %v4061_v37 }
 0x930   : > { %v3850_v56 = vpack.c.bf16 %v4063_v61, %v4062_v26 }
 0x931   : > { %v2388_v35 = vpop.permute.xlu1 %2387 }
 0x932   : > { %v2008_v59 = vpop.xlane.xlu0 %2007  ;;  %3851 = vmatprep.subr.bf16.mxu1 %v3850_v56 }
 0x933   : > { %3853 = vmatpush3.bf16.msra.mxu1 %v3850_v56  ;;  %4136 = vrcp.f32 %v2008_v59 }
 0x934   : > { %v4133_v25 = vpop.eup %4132 }
 0x935   : > { %v2013_v57 = vmul.f32 %v4133_v25, %v4127_v44  ;;  %v4135_v3 = vpop.eup %4134 }
 0x936   : > { %v2005_v28 = vpop.xlane.xlu0 %2004  ;;  %v2014_v11 = vmul.f32 %v4135_v3, %v4820_v40 }
 0x937   : > { %4138 = vrcp.f32 %v2005_v28  ;;  %3712 = vmatprep.mubr.msk.f32.mxu0 %vm802_vm1, %v2013_v57 }
 0x93a   : > { %v4056_v60 = vpop.permute.xlu0 %4055 }
 0x93b   : > { %v4058_v63 = vunpack.i.h.bf16 %v4056_v60  ;;  %v4057_v0 = vunpack.i.l.bf16 %v4056_v60 }
 0x93d   : > { %v3846_v1 = vpack.c.bf16 %v4058_v63, %v4057_v0  ;;  %v4137_v9 = vpop.eup %4136 }
 0x93e   : > { %v4066_v4 = vpop.permute.xlu0 %4065  ;;  %v2016_v16 = vmul.f32 %v4137_v9, %v4825_v49 }
 0x93f   : > { %v4068_v5 = vunpack.i.h.bf16 %v4066_v4  ;;  %v4067_v6 = vunpack.i.l.bf16 %v4066_v4  ;;  %3847 = vmatprep.subr.bf16.mxu0 %v3846_v1 }
 0x940   : > { %3849 = vmatpush3.bf16.msra.mxu0 %v3846_v1 }
 0x941   : > { %v4139_v10 = vpop.eup %4138  ;;  %v3858_v14 = vpack.c.bf16 %v4068_v5, %v4067_v6  ;;  %3855 = vmatprep.subr.bf16.mxu0 %v3854_v2 }
 0x942   : > { %v4071_v15 = vpop.permute.xlu0 %4070  ;;  %v2015_v12 = vmul.f32 %v4139_v10, %v4131_v52 }
 0x943   : > { %v4073_v17 = vunpack.i.h.bf16 %v4071_v15  ;;  %v4072_v13 = vunpack.i.l.bf16 %v4071_v15  ;;  %3713 = vmatmul.mubr.msk.f32.vlgmr.msra.gmra.mrb[12].mxu0 %vm802_vm1, %v2014_v11  ;;  %3860 = vmatprep.subr.msk.bf16.mxu1 %vm4653_vm2, %v3858_v14  ;;  %v2694_v15 = vld [vmem:[%s5285_s6 + $0x30] sm:$0xff] }
 0x944   : > { %3719 = vmatprep.mubr.msk.f32.mxu1 %vm802_vm1, %v2015_v12  ;;  %3857 = vmatpush3.bf16.msra.mxu0 %v3854_v2 }
 0x945   : > { %v3864_v21 = vpack.c.bf16 %v4073_v17, %v4072_v13  ;;  %3720 = vmatmul.mubr.msk.f32.vlgmr.msra.gmra.mrb[20].mxu1 %vm802_vm1, %v2016_v16 }
 0x946   : > { %3863 = vmatpush3.bf16.xpose.msk.msra.mxu1 %vm4653_vm2, %v3858_v14  ;;  %v2295_v23 = vpop.permute.xlu0 %2294 }
 0x947   : > { %3736 = vmatprep.mubr.msk.f32.mxu1 %vm802_vm1, %v2295_v23  ;;  %3866 = vmatprep.subr.msk.bf16.mxu0 %vm4653_vm2, %v3864_v21 }
 0x94a   : > { %v2297_v47 = vpop.permute.xlu0 %2296 }
 0x94d   : > { %3737 = vmatmul.mubr.msk.f32.vlgmr.msra.gmra.mrb[22].mxu1 %vm802_vm1, %v2297_v47 }
 0x94e   : > { %v2386_v34 = vpop.permute.xlu0 %2385 }
 0xa16   : > { %v3714_v30 = vpop.f32.mrb[12].mxu0 }
 0xa17   : > { %v2095_v31 = vpop.f32.mrb[13].mxu0 }
 0xa18   : > { %v3721_v32 = vpop.f32.mrb[20].mxu1  ;;  %3726 = vmatprep.mubr.msk.f32.mxu0 %vm802_vm1, %v2095_v31 }
 0xa19   : > { %v2182_v33 = vpop.f32.mrb[21].mxu1  ;;  %3727 = vmatmul.mubr.msk.f32.vlgmr.msra.gmra.mrb[8].mxu0 %vm802_vm1, %v3714_v30 }
 0xa1a   : > { %3869 = vmatpush3.bf16.xpose.msk.msra.mxu0 %vm4653_vm2, %v3864_v21  ;;  %3729 = vmatprep.mubr.msk.f32.mxu0 %vm802_vm1, %v2182_v33 }
 0xa1d   : > { %3730 = vmatmul.mubr.msk.f32.gmra.mrb[10].mxu0 %vm802_vm1, %v3721_v32 }
 0xa1e   : > { %3743 = vmatprep.mubr.msk.f32.mxu0 %vm802_vm1, %v2386_v34 }
 0xa20   : > { %v3738_v36 = vpop.f32.mrb[22].mxu1 }
 0xa21   : > { %v2382_v38 = vadd.f32 %v3738_v36, %v4683_v7  ;;  %v2376_v40 = vpop.f32.mrb[23].mxu1  ;;  %3744 = vmatmul.mubr.msk.f32.vlgmr.msra.gmra.mrb[14].mxu0 %vm802_vm1, %v2388_v35  ;;  %v3462_v35 = vld [vmem:[%s5286_s7] ss:$0 sm:$0xff] }
 0xa22   : > { %v2377_v41 = vadd.f32 %v2376_v40, %v4686_v8 }
 0xa23   : > { %v2479_v42 = vsel %vm802_vm1, %v2382_v38, -inf }
 0xa24   : > { %2480 = vmax.xlane.f32.xlu1 %v2479_v42  ;;  %v2476_v53 = vsel %vm802_vm1, %v2377_v41, -inf  ;;  %v4180_v42 = vld [vmem:[%s4528_s26 + $0x8] sm:$0xff] }
 0xa25   : > { %2477 = vmax.xlane.f32.xlu0 %v2476_v53 }
 0xab1   : > { %v2481_v7 = vpop.xlane.xlu1 %2480 }
 0xab2   : > { %v2478_v43 = vpop.xlane.xlu0 %2477  ;;  %v2489_v52 = vsub.f32 %v2382_v38, %v2481_v7 }
 0xab3   : > { %v2488_v44 = vsub.f32 %v2377_v41, %v2478_v43  ;;  %v4181_v43 = vld [vmem:[%s4528_s26] sm:$0xff] }
 0xab4   : > { %v2494_v54 = vmul.f32 1.442695, %v2489_v52 }
 0xab5   : > { %v2492_v45 = vmul.f32 1.442695, %v2488_v44 }
 0xab7   : > { %4140 = vpow2.f32 %v2492_v45 }
 0xab8   : > { %4142 = vpow2.f32 %v2494_v54 }
 0xac1   : > { %v4141_v49 = vpop.eup %4140 }
 0xac2   : > { %v2500_v51 = vsel %vm802_vm1, %v4141_v49, 0.0  ;;  %v4143_v61 = vpop.eup %4142 }
 0xac3   : > { %2501 = vadd.xlane.f32.xlu1 %v2500_v51  ;;  %v2503_v26 = vsel %vm802_vm1, %v4143_v61, 0.0 }
 0xaf4   : > { %v3745_v55 = vpop.f32.mrb[14].mxu0 }
 0xaf5   : > { %v2467_v8 = vpop.f32.mrb[15].mxu0  ;;  %v2473_v29 = vadd.f32 %v3745_v55, %v4693_v18  ;;  %v4182_v55 = vld [vmem:[%s4528_s26 + $0x18] sm:$0xff] }
 0xaf6   : > { %v2468_v58 = vadd.f32 %v2467_v8, %v4696_v19 }
 0xaf7   : > { %v2485_v46 = vsel %vm802_vm1, %v2473_v29, -inf }
 0xaf8   : > { %v2482_v37 = vsel %vm802_vm1, %v2468_v58, -inf }
 0xaf9   : > { %2483 = vmax.xlane.f32.xlu0 %v2482_v37 }
 0xafd   : > { %2486 = vmax.xlane.f32.xlu0 %v2485_v46 }
 0xb01   : > { %2504 = vadd.xlane.f32.xlu0 %v2503_v26 }
 0xb50   : > { %v2502_v56 = vpop.xlane.xlu1 %2501 }
 0xb51   : > { %4144 = vrcp.f32 %v2502_v56 }
 0xb5b   : > { %v4145_v59 = vpop.eup %4144 }
 0xb5c   : > { %v2516_v25 = vmul.f32 %v4145_v59, %v4141_v49 }
 0xb5e   : > { %3750 = vmatprep.mubr.msk.f32.mxu1 %vm802_vm1, %v2516_v25 }
 0xb86   : > { %v2484_v57 = vpop.xlane.xlu0 %2483 }
 0xb87   : > { %v2490_v19 = vsub.f32 %v2468_v58, %v2484_v57  ;;  %v4183_v58 = vld [vmem:[%s4528_s26 + $0x10] sm:$0xff]  ;;  %s4218_s26 = sshll.u32 %s4326_s1, 4  ;;  %s4219_s26 = int_to_ptr.vmem [resolvable:$false] %s4218_s26 }
 0xb88   : > { %s4220_s0 = scalar_lea.vmem %s4219_s26, 1024  ;;  %p4221_p10 = scmp.lt.s32.totalorder %s5183_s28, %s4219_s26 }
 0xb89   : > { %v2496_v28 = vmul.f32 1.442695, %v2490_v19 }
 0xb8a   : > { %v2487_v18 = vpop.xlane.xlu0 %2486 }
 0xb8b   : > { %4146 = vpow2.f32 %v2496_v28  ;;  %v2491_v60 = vsub.f32 %v2473_v29, %v2487_v18 }
 0xb8d   : > { %v2498_v27 = vmul.f32 1.442695, %v2491_v60 }
 0xb8e   : > { %v2505_v2 = vpop.xlane.xlu0 %2504 }
 0xb8f   : > { %4148 = vpow2.f32 %v2498_v27 }
 0xb90   : > { %4150 = vrcp.f32 %v2505_v2 }
 0xb95   : > { %v4147_v62 = vpop.eup %4146 }
 0xb96   : > { %v2506_v63 = vsel %vm802_vm1, %v4147_v62, 0.0 }
 0xb97   : > { %2507 = vadd.xlane.f32.xlu1 %v2506_v63 }
 0xb99   : > { %v4149_v0 = vpop.eup %4148 }
 0xb9a   : > { %v2509_v1 = vsel %vm802_vm1, %v4149_v0, 0.0  ;;  %v4151_v11 = vpop.eup %4150 }
 0xb9b   : > { %2510 = vadd.xlane.f32.xlu0 %v2509_v1  ;;  %v2517_v17 = vmul.f32 %v4151_v11, %v4143_v61 }
 0xba8   : > { %4075 = vrot.lane.b32.xlu1 %v4641_v39, %s4324_s25  ;;  %v2695_v39 = vld [vmem:[%s5285_s6 + $0x38] sm:$0xff] }
 0xba9   : > { %v3878_v21 = vpack.c.bf16 %v2695_v39, %v2694_v15  ;;  %v2899_v15 = vld [vmem:[%s5289_s10 + $0x10] sm:$0xff] }
 0xbb1   : > { %4080 = vrot.lane.b32.xlu0 %v4648_v48, %s4324_s25  ;;  %s4214_s25 = scalar_lea.vmem %s5183_s28, 512 }
 0xbb2   : > { %p4215_p6 = scmp.ne.s32.totalorder %s5183_s28, %s4214_s25  ;;  %p4222_p0 = scmp.lt.s32.totalorder %s4220_s0, %s4214_s25 }
 0xbb4   : > { %p4216_p13 = pnand %p4215_p6, %p5320_p12  ;;  %p4223_p2 = por %p4222_p0, %p4221_p10 }
 0xbb6   : > { %p4217_p8 = pneg %p4216_p13 }
 0xbb8   : > { %p4224_p4 = pnand %p4223_p2, %p4217_p8 }
 0xc24   : > { %v2508_v3 = vpop.xlane.xlu1 %2507 }
 0xc25   : > { %4152 = vrcp.f32 %v2508_v3 }
 0xc28   : > { %v4076_v4 = vpop.permute.xlu1 %4075  ;;  %v2511_v5 = vpop.xlane.xlu0 %2510 }
 0xc29   : > { %v4078_v6 = vunpack.i.h.bf16 %v4076_v4  ;;  %v4077_v9 = vunpack.i.l.bf16 %v4076_v4  ;;  %4154 = vrcp.f32 %v2511_v5 }
 0xc2b   : > { %v3870_v10 = vpack.c.bf16 %v4078_v6, %v4077_v9  ;;  %v2898_v9 = vld [vmem:[%s5289_s10 + $0x8] sm:$0xff] }
 0xc2c   : > { %v4081_v14 = vpop.permute.xlu0 %4080 }
 0xc2d   : > { %v4083_v48 = vunpack.i.h.bf16 %v4081_v14  ;;  %v4082_v12 = vunpack.i.l.bf16 %v4081_v14  ;;  %3871 = vmatprep.subr.bf16.mxu1 %v3870_v10  ;;  %v2897_v14 = vld [vmem:[%s5289_s10] sm:$0xff] }
 0xc2e   : > { %3873 = vmatpush3.bf16.msra.mxu1 %v3870_v10  ;;  %v2900_v10 = vld [vmem:[%s5289_s10 + $0x18] sm:$0xff]  ;;  %v3884_v39 = vpack.c.bf16 %v2899_v15, %v2897_v14 }
 0xc2f   : > { %v4153_v16 = vpop.eup %4152  ;;  %v3874_v13 = vpack.c.bf16 %v4083_v48, %v4082_v12  ;;  %v3882_v11 = vpack.c.bf16 %v2900_v10, %v2898_v9  ;;  %v2902_v48 = vld [vmem:[%s5289_s10 + $0x28] sm:$0xff]  ;;  %v2904_v12 = vld [vmem:[%s5289_s10 + $0x38] sm:$0xff] }
 0xc30   : > { %v2518_v23 = vmul.f32 %v4153_v16, %v4147_v62  ;;  %v3886_v16 = vpack.c.bf16 %v2904_v12, %v2902_v48  ;;  %v3100_v12 = vld [vmem:[%s5291_s12 + $0x10] sm:$0xff] }
 0xc31   : > { %3751 = vmatmul.mubr.msk.f32.vlgmr.msra.gmra.mrb[24].mxu1 %vm802_vm1, %v2517_v17  ;;  %3875 = vmatprep.subr.bf16.mxu0 %v3874_v13  ;;  %v2901_v17 = vld [vmem:[%s5289_s10 + $0x20] sm:$0xff] }
 0xc32   : > { %3877 = vmatpush3.bf16.msra.mxu0 %v3874_v13  ;;  %3757 = vmatprep.mubr.msk.f32.mxu0 %vm802_vm1, %v2518_v23  ;;  %v2903_v13 = vld [vmem:[%s5289_s10 + $0x30] sm:$0xff]  ;;  %v2906_v23 = vld [vmem:[%s5289_s10 + $0x48] sm:$0xff] }
 0xc33   : > { %v4155_v47 = vpop.eup %4154  ;;  %3879 = vmatprep.subr.bf16.mxu0 %v3878_v21  ;;  %3001 = vmatprep.mubr.f32.mxu1 %v4317_v50 }
 0xc34   : > { %v2519_v30 = vmul.f32 %v4155_v47, %v4149_v0  ;;  %3883 = vmatprep.subr.bf16.mxu1 %v3882_v11  ;;  %v2908_v47 = vld [vmem:[%s5289_s10 + $0x58] sm:$0xff] }
 0xc35   : > { %3885 = vmatpush1.bf16.msra.mxu1 %v3884_v39 }
 0xc36   : > { %3758 = vmatmul.mubr.msk.f32.vlgmr.msra.gmra.mrb[16].mxu0 %vm802_vm1, %v2519_v30  ;;  %3887 = vmatprep.subr.bf16.mxu1 %v3886_v16  ;;  %v3890_v30 = vpack.c.bf16 %v2908_v47, %v2906_v23  ;;  %v3102_v23 = vld [vmem:[%s5291_s12 + $0x20] sm:$0xff]  ;;  %v3103_v47 = vld [vmem:[%s5291_s12 + $0x28] sm:$0xff] }
 0xc37   : > { %3881 = vmatpush3.bf16.msra.mxu0 %v3878_v21  ;;  %v3888_v21 = vpack.c.bf16 %v2903_v13, %v2901_v17  ;;  %v3118_v17 = vld [vmem:[%s5291_s12 + $0xa0] sm:$0xff]  ;;  %v3119_v13 = vld [vmem:[%s5291_s12 + $0xa8] sm:$0xff] }
 0xc39   : > { %3889 = vmatpush1.bf16.msra.mxu1 %v3888_v21  ;;  %v3906_v21 = vpack.c.bf16 %v3119_v13, %v3118_v17 }
 0xc3a   : > { %3891 = vmatprep.subr.bf16.mxu1 %v3890_v30  ;;  %v3908_v30 = vpack.c.bf16 %v3103_v47, %v3102_v23 }
 0xd04   : > { %v3752_v31 = vpop.f32.mrb[24].mxu1 }
 0xd05   : > { %v2598_v32 = vpop.f32.mrb[25].mxu1 }
 0xd06   : > { %3764 = vmatprep.mubr.msk.f32.mxu0 %vm802_vm1, %v2598_v32  ;;  %v2907_v32 = vld [vmem:[%s5289_s10 + $0x50] sm:$0xff] }
 0xd07   : > { %3765 = vmatmul.mubr.msk.f32.vlgmr.msra.gmra.mrb[8].mxu0 %vm802_vm1, %v3752_v31  ;;  %v2905_v31 = vld [vmem:[%s5289_s10 + $0x40] sm:$0xff] }
 0xd09   : > { %v3759_v33 = vpop.f32.mrb[16].mxu0 }
 0xd0a   : > { %v2685_v34 = vpop.f32.mrb[17].mxu0 }
 0xd0b   : > { %3767 = vmatprep.mubr.msk.f32.mxu0 %vm802_vm1, %v2685_v34  ;;  %v2910_v34 = vld [vmem:[%s5289_s10 + $0x68] sm:$0xff] }
 0xd0c   : > { %3768 = vmatmul.mubr.msk.f32.gmra.mrb[10].mxu0 %vm802_vm1, %v3759_v33  ;;  %v3892_v33 = vpack.c.bf16 %v2907_v32, %v2905_v31  ;;  %v3120_v31 = vld [vmem:[%s5291_s12 + $0xb0] sm:$0xff]  ;;  %v3121_v32 = vld [vmem:[%s5291_s12 + $0xb8] sm:$0xff] }
 0xd0e   : > { %3893 = vmatpush1.bf16.msra.mxu1 %v3892_v33  ;;  %v3910_v33 = vpack.c.bf16 %v3121_v32, %v3120_v31 }
 0xdda   : > { %v3766_v36 = vpop.f32.mrb[8].mxu0 }
 0xddb   : > { %v2805_v38 = vadd.f32 %v3766_v36, %v3462_v35  ;;  %v2774_v40 = vpop.f32.mrb[9].mxu0  ;;  %v2909_v36 = vld [vmem:[%s5289_s10 + $0x60] sm:$0xff] }
 0xddc   : > { %v2804_v41 = vadd.f32 %v3462_v35, %v2774_v40  ;;  %v2911_v40 = vld [vmem:[%s5289_s10 + $0x70] sm:$0xff] }
 0xddd   : > { %v4921_v53 = vadd.f32 %v4180_v42, %v2805_v38  ;;  %v3114_v42 = vld [vmem:[%s5291_s12 + $0x80] sm:$0xff] }
 0xdde   : > { %v4924_v44 = vadd.f32 %v4181_v43, %v2804_v41  ;;  %v3896_v41 = vpack.c.bf16 %v2911_v40, %v2909_v36  ;;  %v3115_v43 = vld [vmem:[%s5291_s12 + $0x88] sm:$0xff] }
 0xddf   : > { %v3769_v45 = vpop.f32.mrb[10].mxu0  ;;  %v2815_v49 = vsel %vm556_vm0, %v4921_v53, 0.0  ;;  %v3123_v40 = vld [vmem:[%s5291_s12 + $0xc8] sm:$0xff] }
 0xde0   : > { %v2807_v51 = vadd.f32 %v3769_v45, %v3462_v35  ;;  %2816 = vadd.xlane.f32.xlu0 %v2815_v49  ;;  %v2784_v7 = vpop.f32.mrb[11].mxu0  ;;  %v2812_v52 = vsel %vm556_vm0, %v4924_v44, 0.0  ;;  %v3098_v45 = vld [vmem:[%s5291_s12] sm:$0xff]  ;;  %v3898_v49 = vpack.c.bf16 %v3115_v43, %v3114_v42  ;;  %v3107_v43 = vld [vmem:[%s5291_s12 + $0x48] sm:$0xff] }
 0xde1   : > { %v2806_v54 = vadd.f32 %v3462_v35, %v2784_v7  ;;  %2813 = vadd.xlane.f32.xlu1 %v2812_v52  ;;  %v2912_v35 = vld [vmem:[%s5289_s10 + $0x78] sm:$0xff]  ;;  %v3106_v42 = vld [vmem:[%s5291_s12 + $0x40] sm:$0xff] }
 0xde2   : > { %v4931_v8 = vadd.f32 %v4182_v55, %v2807_v51  ;;  %v3894_v38 = vpack.c.bf16 %v2912_v35, %v2910_v34  ;;  %v3099_v51 = vld [vmem:[%s5291_s12 + $0x8] sm:$0xff]  ;;  %3899 = vmatprep.subr.bf16.mxu0 %v3898_v49  ;;  %v3104_v34 = vld [vmem:[%s5291_s12 + $0x30] sm:$0xff]  ;;  %v3105_v35 = vld [vmem:[%s5291_s12 + $0x38] sm:$0xff] }
 0xde3   : > { %v4934_v29 = vadd.f32 %v4183_v58, %v2806_v54  ;;  %v3900_v7 = vpack.c.bf16 %v3099_v51, %v3098_v45  ;;  %v3912_v36 = vpack.c.bf16 %v3105_v35, %v3104_v34  ;;  %v3916_v45 = vpack.c.bf16 %v3107_v43, %v3106_v42  ;;  %v3124_v49 = vld [vmem:[%s5291_s12 + $0xd0] sm:$0xff]  ;;  %v3125_v51 = vld [vmem:[%s5291_s12 + $0xd8] sm:$0xff] }
 0xde4   : > { %v2821_v37 = vsel %vm556_vm0, %v4931_v8, 0.0  ;;  %3895 = vmatprep.subr.bf16.mxu1 %v3894_v38  ;;  %v3122_v38 = vld [vmem:[%s5291_s12 + $0xc0] sm:$0xff] }
 0xde5   : > { %2822 = vadd.xlane.f32.xlu0 %v2821_v37  ;;  %v2818_v46 = vsel %vm556_vm0, %v4934_v29, 0.0  ;;  %3897 = vmatpush1.bf16.msra.mxu1 %v3896_v41  ;;  %v3914_v41 = vpack.c.bf16 %v3123_v40, %v3122_v38 }
 0xde6   : > { %2819 = vadd.xlane.f32.xlu1 %v2818_v46  ;;  %3901 = vmatpush3.bf16.msra.mxu0 %v3900_v7  ;;  %v3918_v7 = vpack.c.bf16 %v3125_v51, %v3124_v49 }
 0xe6d   : > { %v2817_v61 = vpop.xlane.xlu0 %2816 }
 0xe6e   : > { %v2825_v26 = vmul.f32 0.015625, %v2817_v61  ;;  %v2814_v56 = vpop.xlane.xlu1 %2813 }
 0xe6f   : > { %v2824_v59 = vmul.f32 0.015625, %v2814_v56 }
 0xe70   : > { %v4941_v25 = vsub.f32 %v4921_v53, %v2825_v26 }
 0xe71   : > { %v4944_v57 = vsub.f32 %v4924_v44, %v2824_v59 }
 0xe72   : > { %v2823_v19 = vpop.xlane.xlu0 %2822  ;;  %v2833_v28 = vmul.f32 %v4941_v25, %v4941_v25 }
 0xe73   : > { %v2827_v18 = vmul.f32 0.015625, %v2823_v19  ;;  %v2820_v60 = vpop.xlane.xlu1 %2819  ;;  %v2832_v27 = vmul.f32 %v4944_v57, %v4944_v57 }
 0xe74   : > { %v2826_v62 = vmul.f32 0.015625, %v2820_v60  ;;  %v2839_v63 = vsel %vm556_vm0, %v2833_v28, 0.0 }
 0xe75   : > { %v4952_v0 = vsub.f32 %v4931_v8, %v2827_v18  ;;  %2840 = vadd.xlane.f32.xlu0 %v2839_v63  ;;  %v2836_v1 = vsel %vm556_vm0, %v2832_v27, 0.0  ;;  %v3463_v27 = vld [vmem:[%s5287_s8] ss:$0 sm:$0xff] }
 0xe76   : > { %v4956_v2 = vsub.f32 %v4934_v29, %v2826_v62  ;;  %2837 = vadd.xlane.f32.xlu1 %v2836_v1  ;;  %v3464_v1 = vld [vmem:[%s5288_s9] ss:$0 sm:$0xff] }
 0xe77   : > { %v2835_v3 = vmul.f32 %v4952_v0, %v4952_v0 }
 0xe78   : > { %v2834_v4 = vmul.f32 %v4956_v2, %v4956_v2 }
 0xe79   : > { %v2845_v5 = vsel %vm556_vm0, %v2835_v3, 0.0 }
 0xe7a   : > { %2846 = vadd.xlane.f32.xlu0 %v2845_v5  ;;  %v2842_v6 = vsel %vm556_vm0, %v2834_v4, 0.0 }
 0xe7b   : > { %2843 = vadd.xlane.f32.xlu1 %v2842_v6 }
 0xf02   : > { %v2841_v52 = vpop.xlane.xlu0 %2840 }
 0xf03   : > { %v2849_v54 = vmul.f32 0.015625, %v2841_v52  ;;  %v2838_v55 = vpop.xlane.xlu1 %2837  ;;  %v3108_v52 = vld [vmem:[%s5291_s12 + $0x50] sm:$0xff] }
 0xf04   : > { %v2848_v58 = vmul.f32 0.015625, %v2838_v55 }
 0xf05   : > { %v2853_v37 = vadd.f32 1e-05, %v2849_v54  ;;  %v3109_v54 = vld [vmem:[%s5291_s12 + $0x58] sm:$0xff] }
 0xf06   : > { %v2852_v46 = vadd.f32 1e-05, %v2848_v58  ;;  %v3920_v55 = vpack.c.bf16 %v3109_v54, %v3108_v52  ;;  %v3126_v58 = vld [vmem:[%s5291_s12 + $0xe0] sm:$0xff] }
 0xf07   : > { %4156 = vrsqrt.f32 %v2853_v37  ;;  %v2847_v61 = vpop.xlane.xlu0 %2846  ;;  %v3127_v37 = vld [vmem:[%s5291_s12 + $0xe8] sm:$0xff] }
 0xf08   : > { %4158 = vrsqrt.f32 %v2852_v46  ;;  %v2851_v26 = vmul.f32 0.015625, %v2847_v61  ;;  %v2844_v56 = vpop.xlane.xlu1 %2843  ;;  %v3110_v46 = vld [vmem:[%s5291_s12 + $0x60] sm:$0xff]  ;;  %v3922_v61 = vpack.c.bf16 %v3127_v37, %v3126_v58 }
 0xf09   : > { %v2850_v59 = vmul.f32 0.015625, %v2844_v56  ;;  %v3128_v56 = vld [vmem:[%s5291_s12 + $0xf0] sm:$0xff] }
 0xf0a   : > { %v2855_v19 = vadd.f32 1e-05, %v2851_v26  ;;  %v3111_v26 = vld [vmem:[%s5291_s12 + $0x68] sm:$0xff] }
 0xf0b   : > { %v2854_v28 = vadd.f32 1e-05, %v2850_v59  ;;  %v3129_v59 = vld [vmem:[%s5291_s12 + $0xf8] sm:$0xff] }
 0xf0d   : > { %4160 = vrsqrt.f32 %v2854_v28  ;;  %v3926_v28 = vpack.c.bf16 %v3129_v59, %v3128_v56 }
 0xf0e   : > { %4162 = vrsqrt.f32 %v2855_v19  ;;  %v3924_v19 = vpack.c.bf16 %v3111_v26, %v3110_v46 }
 0xf11   : > { %v4157_v18 = vpop.eup %4156 }
 0xf12   : > { %v4159_v60 = vpop.eup %4158  ;;  %v2861_v63 = vmul.f32 %v4157_v18, %v4941_v25  ;;  %v3112_v18 = vld [vmem:[%s5291_s12 + $0x70] sm:$0xff] }
 0xf13   : > { %v2860_v62 = vmul.f32 %v4159_v60, %v4944_v57  ;;  %v3113_v60 = vld [vmem:[%s5291_s12 + $0x78] sm:$0xff] }
 0xf14   : > { %v2872_v6 = vmul.f32 %v3463_v27, %v2861_v63 }
 0xf15   : > { %v2871_v3 = vmul.f32 %v3463_v27, %v2860_v62  ;;  %v2913_v62 = vld [vmem:[%s5290_s11] sm:$0x3] }
 0xf16   : > { %v2883_v11 = vadd.f32 %v3464_v1, %v2872_v6  ;;  %v2918_v63 = vrot.slane %v2913_v62, %v652_v22 }
 0xf17   : > { %v4161_v4 = vpop.eup %4160  ;;  %v2882_v5 = vadd.f32 %v3464_v1, %v2871_v3 }
 0xf18   : > { %v4163_v9 = vpop.eup %4162  ;;  %v2862_v10 = vmul.f32 %v4161_v4, %v4956_v2  ;;  %v3116_v2 = vld [vmem:[%s5291_s12 + $0x90] sm:$0xff] }
 0xf19   : > { %3466 = vmatmul.mubr.msk.f32.vlgmr.msra.gmra.mrb[26].mxu1 %vm556_vm0, %v2882_v5  ;;  %v2863_v57 = vmul.f32 %v4163_v9, %v4952_v0  ;;  %v3117_v0 = vld [vmem:[%s5291_s12 + $0x98] sm:$0xff] }
 0xf1a   : > { %3007 = vmatprep.mubr.f32.mxu1 %v4317_v50  ;;  %v2873_v14 = vmul.f32 %v3463_v27, %v2862_v10  ;;  %v3902_v48 = vpack.c.bf16 %v3117_v0, %v3116_v2 }
 0xf1b   : > { %v2874_v15 = vmul.f32 %v3463_v27, %v2863_v57  ;;  %v3928_v27 = vpack.c.bf16 %v3113_v60, %v3112_v18 }
 0xf1c   : > { %v2884_v25 = vadd.f32 %v3464_v1, %v2873_v14  ;;  %3903 = vmatprep.subr.bf16.mxu0 %v3902_v48 }
 0xf1d   : > { %3467 = vmatmul.mubr.msk.f32.gmra.mrb[28].mxu1 %vm556_vm0, %v2883_v11  ;;  %v2885_v39 = vadd.f32 %v3464_v1, %v2874_v15  ;;  %v2922_v1 = vrot.slane %v2913_v62, %v656_v24 }
 0xf1e   : > { %3013 = vmatprep.mubr.f32.mxu1 %v4317_v50 }
 0xf21   : > { %3468 = vmatmul.mubr.msk.f32.gmra.mrb[30].mxu1 %vm556_vm0, %v2884_v25 }
 0xf22   : > { %3019 = vmatprep.mubr.f32.mxu1 %v4317_v50  ;;  %v3101_v50 = vld [vmem:[%s5291_s12 + $0x18] sm:$0xff] }
 0xf23   : > { %v3904_v16 = vpack.c.bf16 %v3101_v50, %v3100_v12 }
 0xf25   : > { %3469 = vmatmul.mubr.msk.f32.gmra.mrb[32].mxu1 %vm556_vm0, %v2885_v39  ;;  %3905 = vmatpush3.bf16.msra.mxu0 %v3904_v16 }
 0xf26   : > { %3907 = vmatprep.subr.bf16.mxu0 %v3906_v21 }
 0xf29   : > { %3909 = vmatpush3.bf16.msra.mxu0 %v3908_v30 }
 0xf2a   : > { %3911 = vmatprep.subr.bf16.mxu0 %v3910_v33 }
 0xf2d   : > { %3913 = vmatpush3.bf16.msra.mxu0 %v3912_v36 }
 0xf2e   : > { %3915 = vmatprep.subr.bf16.mxu0 %v3914_v41 }
 0xf31   : > { %3917 = vmatpush3.bf16.msra.mxu0 %v3916_v45 }
 0xf32   : > { %3919 = vmatprep.subr.bf16.mxu0 %v3918_v7 }
 0xf35   : > { %3921 = vmatpush3.bf16.msra.mxu0 %v3920_v55 }
 0xf36   : > { %3923 = vmatprep.subr.bf16.mxu0 %v3922_v61 }
 0xf39   : > { %3925 = vmatpush3.bf16.msra.mxu0 %v3924_v19 }
 0xf3a   : > { %3927 = vmatprep.subr.bf16.mxu0 %v3926_v28 }
 0xf3d   : > { %3929 = vmatpush3.bf16.msra.mxu0 %v3928_v27 }
 0xfec   : > { %v3003_v3 = vpop.f32.mrb[26].mxu1 }
 0xfed   : > { %v5132_v4 = vadd.f32 %v3003_v3, %v2918_v63  ;;  %v3005_v5 = vpop.f32.mrb[27].mxu1 }
 0xfee   : > { %v3006_v6 = vadd.f32 %v3005_v5, %v2922_v1 }
 0xfef   : > { %v3034_v9 = vmul.f32 0.044715, %v5132_v4  ;;  %v3026_v5 = vmul.f32 0.5, %v5132_v4 }
 0xff0   : > { %v3035_v10 = vmul.f32 0.044715, %v3006_v6  ;;  %v3009_v11 = vpop.f32.mrb[28].mxu1 }
 0xff1   : > { %v3042_v14 = vmul.f32 %v3034_v9, %v5132_v4  ;;  %v5136_v57 = vadd.f32 %v3009_v11, %v2918_v63  ;;  %v3011_v25 = vpop.f32.mrb[29].mxu1 }
 0xff2   : > { %v3043_v15 = vmul.f32 %v3035_v10, %v3006_v6  ;;  %v5138_v39 = vadd.f32 %v3011_v25, %v2922_v1 }
 0xff3   : > { %v3050_v20 = vmul.f32 %v3042_v14, %v5132_v4  ;;  %v3036_v22 = vmul.f32 0.044715, %v5136_v57 }
 0xff4   : > { %v3037_v24 = vmul.f32 0.044715, %v5138_v39  ;;  %v3015_v2 = vpop.f32.mrb[30].mxu1  ;;  %v3051_v0 = vmul.f32 %v3043_v15, %v3006_v6  ;;  %v3029_v15 = vmul.f32 0.5, %v5138_v39 }
 0xff5   : > { %v3058_v48 = vadd.f32 %v3050_v20, %v5132_v4  ;;  %v3044_v12 = vmul.f32 %v3036_v22, %v5136_v57  ;;  %v5145_v50 = vadd.f32 %v3015_v2, %v2918_v63  ;;  %v3017_v16 = vpop.f32.mrb[31].mxu1  ;;  %v3028_v22 = vmul.f32 0.5, %v5136_v57 }
 0xff6   : > { %v3045_v17 = vmul.f32 %v3037_v24, %v5138_v39  ;;  %v5148_v13 = vadd.f32 %v3017_v16, %v2922_v1  ;;  %v3059_v21 = vadd.f32 %v3051_v0, %v3006_v6 }
 0xff7   : > { %v3066_v23 = vmul.f32 0.7978846, %v3058_v48  ;;  %v3038_v47 = vmul.f32 0.044715, %v5145_v50  ;;  %v3052_v30 = vmul.f32 %v3044_v12, %v5136_v57  ;;  %v3030_v16 = vmul.f32 0.5, %v5145_v50 }
 0xff8   : > { %v3039_v31 = vmul.f32 0.044715, %v5148_v13  ;;  %v3021_v32 = vpop.f32.mrb[32].mxu1  ;;  %v3067_v33 = vmul.f32 0.7978846, %v3059_v21  ;;  %v3053_v34 = vmul.f32 %v3045_v17, %v5138_v39  ;;  %v3031_v4 = vmul.f32 0.5, %v5148_v13 }
 0xff9   : > { %4164 = vtanh.f32 %v3066_v23  ;;  %v3046_v35 = vmul.f32 %v3038_v47, %v5145_v50  ;;  %v5155_v36 = vadd.f32 %v3021_v32, %v2918_v63  ;;  %v3023_v38 = vpop.f32.mrb[33].mxu1  ;;  %v3060_v40 = vadd.f32 %v3052_v30, %v5136_v57 }
 0xffa   : > { %v3047_v41 = vmul.f32 %v3039_v31, %v5148_v13  ;;  %v3024_v42 = vadd.f32 %v3023_v38, %v2922_v1  ;;  %4166 = vtanh.f32 %v3067_v33  ;;  %v3061_v43 = vadd.f32 %v3053_v34, %v5138_v39 }
 0xffb   : > { %v3040_v45 = vmul.f32 0.044715, %v5155_v36  ;;  %v3068_v49 = vmul.f32 0.7978846, %v3060_v40  ;;  %v3054_v51 = vmul.f32 %v3046_v35, %v5145_v50  ;;  %v3027_v1 = vmul.f32 0.5, %v3006_v6 }
 0xffc   : > { %v3041_v7 = vmul.f32 0.044715, %v3024_v42  ;;  %v3069_v52 = vmul.f32 0.7978846, %v3061_v43  ;;  %v3055_v54 = vmul.f32 %v3047_v41, %v5148_v13  ;;  %v3033_v47 = vmul.f32 0.5, %v3024_v42 }
 0xffd   : > { %v3048_v55 = vmul.f32 %v3040_v45, %v5155_v36  ;;  %4168 = vtanh.f32 %v3068_v49  ;;  %v3062_v58 = vadd.f32 %v3054_v51, %v5145_v50 }
 0xffe   : > { %v3049_v37 = vmul.f32 %v3041_v7, %v3024_v42  ;;  %4170 = vtanh.f32 %v3069_v52  ;;  %v3063_v46 = vadd.f32 %v3055_v54, %v5148_v13  ;;  %v3032_v13 = vmul.f32 0.5, %v5155_v36 }
 0xfff   : > { %v3070_v61 = vmul.f32 0.7978846, %v3062_v58  ;;  %v3056_v26 = vmul.f32 %v3048_v55, %v5155_v36 }
0x1000   : > { %v3071_v56 = vmul.f32 0.7978846, %v3063_v46  ;;  %v3057_v59 = vmul.f32 %v3049_v37, %v3024_v42 }
0x1001   : > { %4172 = vtanh.f32 %v3070_v61  ;;  %v3064_v19 = vadd.f32 %v3056_v26, %v5155_v36 }
0x1002   : > { %4174 = vtanh.f32 %v3071_v56  ;;  %v3065_v28 = vadd.f32 %v3057_v59, %v3024_v42 }
0x1003   : > { %v4165_v18 = vpop.eup %4164  ;;  %v3072_v60 = vmul.f32 0.7978846, %v3064_v19 }
0x1004   : > { %v4167_v27 = vpop.eup %4166  ;;  %v3082_v62 = vadd.f32 1.0, %v4165_v18  ;;  %v3073_v63 = vmul.f32 0.7978846, %v3065_v28 }
0x1005   : > { %v3083_v3 = vadd.f32 1.0, %v4167_v27  ;;  %4176 = vtanh.f32 %v3072_v60 }
0x1006   : > { %4178 = vtanh.f32 %v3073_v63  ;;  %v3090_v14 = vmul.f32 %v3082_v62, %v3026_v5 }
0x1007   : > { %v4169_v9 = vpop.eup %4168  ;;  %v3091_v10 = vmul.f32 %v3083_v3, %v3027_v1 }
0x1008   : > { %v4171_v11 = vpop.eup %4170  ;;  %v3084_v25 = vadd.f32 1.0, %v4169_v9 }
0x1009   : > { %3194 = vmatprep.mubr.f32.mxu0 %v3091_v10  ;;  %v3085_v20 = vadd.f32 1.0, %v4171_v11 }
0x100a   : > { %3195 = vmatmul.mubr.f32.vlgmr.msra.gmra.mrb[18].mxu0 %v3090_v14  ;;  %v3092_v0 = vmul.f32 %v3084_v25, %v3028_v22 }
0x100b   : > { %v4173_v24 = vpop.eup %4172  ;;  %v3093_v2 = vmul.f32 %v3085_v20, %v3029_v15 }
0x100c   : > { %v4175_v6 = vpop.eup %4174  ;;  %v3086_v48 = vadd.f32 1.0, %v4173_v24 }
0x100d   : > { %3199 = vmatprep.mubr.f32.mxu0 %v3093_v2  ;;  %v3087_v12 = vadd.f32 1.0, %v4175_v6 }
0x100e   : > { %3200 = vmatmul.mubr.f32.gmra.mrb[20].mxu0 %v3092_v0  ;;  %v3094_v57 = vmul.f32 %v3086_v48, %v3030_v16 }
0x100f   : > { %v4177_v17 = vpop.eup %4176  ;;  %v3095_v39 = vmul.f32 %v3087_v12, %v3031_v4 }
0x1010   : > { %v4179_v21 = vpop.eup %4178  ;;  %v3088_v23 = vadd.f32 1.0, %v4177_v17 }
0x1011   : > { %3204 = vmatprep.mubr.f32.mxu0 %v3095_v39  ;;  %v3089_v30 = vadd.f32 1.0, %v4179_v21 }
0x1012   : > { %3205 = vmatmul.mubr.f32.gmra.mrb[22].mxu0 %v3094_v57  ;;  %v3096_v32 = vmul.f32 %v3088_v23, %v3032_v13 }
0x1013   : > { %v3097_v31 = vmul.f32 %v3089_v30, %v3033_v47 }
0x1015   : > { %3209 = vmatprep.mubr.f32.mxu0 %v3097_v31 }
0x1016   : > { %3210 = vmatmul.mubr.f32.gmra.mrb[24].mxu0 %v3096_v32 }
0x1017   : > { %4227 = shalt.err (!%p4224_p4)
}
0x1018   : > { %s4228_s24 = scalar_lea.hbm %s5180_s18, 512  ;;  %s4232_s14 = scalar_lea.hbm %s5294_s15, 1024 }
0x1019   : > { %p4229_p5 = scmp.ne.s32.totalorder %s5180_s18, %s4228_s24  ;;  %p4233_p1 = scmp.lt.u32.totalorder %s5180_s18, %s5294_s15 }
0x101a   : > { %p4234_p3 = scmp.lt.u32.totalorder %s4232_s14, %s4228_s24  ;;  %p4236_p6 = scmp.lt.u32.totalorder %s4228_s24, %s5180_s18 }
0x101b   : > { %p4230_p7 = pnand %p4229_p5, %p5320_p12 }
0x101c   : > { %p4235_p11 = por %p4234_p3, %p4233_p1 }
0x101d   : > { %p4231_p9 = pneg %p4230_p7 }
0x101e   : > { %p4237_p13 = por %p4236_p6, %p4235_p11 }
0x1020   : > { %p4238_p8 = pnand %p4237_p13, %p4231_p9 }
0x1022   : > { %4241 = shalt.err (!%p4238_p8)
}
0x1023   : > { %s5301_s25 = smov 128   ;;  %s5302_s0 = smov 8  }
0x1024   : > { %3953 = dma.vmem_to_hbm [thread:$0]  (%p5320_p12), %s5183_s28, 512, %s5180_s18, %s3229_s20, %s5301_s25, %s5301_s25, %s5302_s0  }
0x1025   : > { %s5321_s14 = sld [smem:[#allocation17_spill]]  ;;  %s534_s24 = scalar_lea.vmem [#allocation5], %s3385_s29 }
0x1026   : > { %s3243_s18 = sshll.u32 %s534_s24, 4  ;;  %s5322_s20 = sld [smem:[#allocation18_spill]]  ;;  %s5224_s18 = int_to_ptr.vmem [resolvable:$true] %s3243_s18 }
0x1027   : > { %s3224_s17 = scalar_lea.sflag [#allocation4], %s4514_s23  ;;  %s4242_s13 = scalar_lea.vmem %s5224_s18, 512 }
0x1028   : > { %p4243_p10 = scmp.ne.s32.totalorder %s5224_s18, %s4242_s13 }
0x102a   : > { %p4244_p0 = pnand %p4243_p10, %p5320_p12 }
0x102b   : > { %v3465_v50 = vld [vmem:[%s5321_s14] ss:$0 sm:$0xff]  ;;  %s4329_s14 = smov [#allocation5]  }
0x102c   : > { %v2893_v35 = vadd.f32 %v3465_v50, %v4924_v44  ;;  %v2894_v42 = vadd.f32 %v3465_v50, %v4921_v53  ;;  %v2895_v44 = vadd.f32 %v3465_v50, %v4934_v29  ;;  %v2896_v53 = vadd.f32 %v3465_v50, %v4931_v8  ;;  %s5323_s1 = smov %s5322_s20  ;;  %s5231_s26 = scalar_lea.hbm %s5322_s20, %s3483_s27 }
0x102d   : > { %p4245_p2 = pneg %p4244_p0  ;;  %s4246_s25 = sshll.u32 %s4329_s14, 4  ;;  %s4247_s25 = int_to_ptr.vmem [resolvable:$false] %s4246_s25 }
0x102e   : > { %s4248_s0 = scalar_lea.vmem %s4247_s25, 1024  ;;  %p4249_p4 = scmp.lt.s32.totalorder %s5224_s18, %s4247_s25 }
0x102f   : > { %p4250_p5 = scmp.lt.s32.totalorder %s4248_s0, %s4242_s13 }
0x1031   : > { %p4251_p7 = por %p4250_p5, %p4249_p4 }
0x1033   : > { %p4252_p9 = pnand %p4251_p7, %p4245_p2 }
0x10dd   : > { %v3606_v33 = vpop.f32.mrb[18].mxu0 }
0x10de   : > { %v3607_v34 = vpop.f32.mrb[19].mxu0 }
0x10df   : > { %v3608_v36 = vadd.f32 %v3607_v34, %v3606_v33 }
0x10e1   : > { %v3215_v38 = vadd.f32 %v3608_v36, %v2893_v35  ;;  %v3609_v40 = vpop.f32.mrb[20].mxu0 }
0x10e2   : > { %v3610_v41 = vpop.f32.mrb[21].mxu0 }
0x10e3   : > { %3219 = vst.msk [vmem:[%s534_s24] sm:$0xff] %vm556_vm0, %v3215_v38  ;;  %v3611_v43 = vadd.f32 %v3610_v41, %v3609_v40 }
0x10e5   : > { %v3216_v45 = vadd.f32 %v3611_v43, %v2894_v42  ;;  %v3612_v49 = vpop.f32.mrb[22].mxu0 }
0x10e6   : > { %v3613_v51 = vpop.f32.mrb[23].mxu0 }
0x10e7   : > { %3220 = vst.msk [vmem:[%s534_s24 + $0x8] sm:$0xff] %vm556_vm0, %v3216_v45  ;;  %v3614_v7 = vadd.f32 %v3613_v51, %v3612_v49 }
0x10e9   : > { %v3217_v52 = vadd.f32 %v3614_v7, %v2895_v44  ;;  %v3615_v54 = vpop.f32.mrb[24].mxu0 }
0x10ea   : > { %v3616_v55 = vpop.f32.mrb[25].mxu0 }
0x10eb   : > { %3221 = vst.msk [vmem:[%s534_s24 + $0x10] sm:$0xff] %vm556_vm0, %v3217_v52  ;;  %v3617_v58 = vadd.f32 %v3616_v55, %v3615_v54 }
0x10ed   : > { %v3218_v37 = vadd.f32 %v3617_v58, %v2896_v53 }
0x10ef   : > { %3222 = vst.msk [vmem:[%s534_s24 + $0x18] sm:$0xff] %vm556_vm0, %v3218_v37 }
0x10f0   : > { %4255 = shalt.err (!%p4252_p9)
}
0x10f1   : > { %s4256_s22 = scalar_lea.hbm %s5231_s26, 512  ;;  %s4260_s29 = scalar_lea.hbm %s5323_s1, 1024 }
0x10f2   : > { %p4257_p1 = scmp.ne.s32.totalorder %s5231_s26, %s4256_s22  ;;  %p4261_p6 = scmp.lt.u32.totalorder %s5231_s26, %s5323_s1 }
0x10f3   : > { %p4262_p13 = scmp.lt.u32.totalorder %s4260_s29, %s4256_s22  ;;  %p4264_p10 = scmp.lt.u32.totalorder %s4256_s22, %s5231_s26 }
0x10f4   : > { %p4258_p3 = pnand %p4257_p1, %p5320_p12 }
0x10f5   : > { %p4263_p8 = por %p4262_p13, %p4261_p6 }
0x10f6   : > { %p4259_p11 = pneg %p4258_p3 }
0x10f7   : > { %p4265_p0 = por %p4264_p10, %p4263_p8 }
0x10f9   : > { %p4266_p2 = pnand %p4265_p0, %p4259_p11 }
0x10fb   : > { %4269 = shalt.err (!%p4266_p2)
}
0x10fc   : > { %s5324_s0 = smov 8   ;;  %s5325_s20 = smov 128  }
0x10fd   : > { %3952 = dma.vmem_to_hbm [thread:$0]  (%p5320_p12), %s5224_s18, 512, %s5231_s26, %s3224_s17, %s5325_s20, %s5325_s20, %s5324_s0  }
0x10fe PF: > { %s5326_s13 = sld [smem:[#allocation11_spill]]  ;;  %p5327_p4 = scmp.ne.s32.totalorder %s5314_s16, 0 }
0x10ff   : > { %p5328_p5 = scmp.ge.s32.totalorder %s4312_s21, 2 }
0x1101   : > { %p3961_p7 = pnand %p5328_p5, %p5327_p4 }
0x1104   : > { %s3275_s14 = sand.u32 1, %s5326_s13  }
0x1105   : > { %s3276_s22 = scalar_lea.sflag [#allocation4], %s3275_s14 }
0x1106   : > { %4291 = dma.done.wait (!%p3961_p7), %s3276_s22, 512  }
0x1107   : > { %4293 = vsyncadd (!%p3961_p7), %s3276_s22, 4294966784  ;;  %s3285_s30 = scalar_lea.sflag [#allocation7], %s3275_s14 }
0x1108   : > { %4295 = dma.done.wait (!%p3961_p7), %s3285_s30, 512  }
0x1109   : > { %4297 = vsyncadd (!%p3961_p7), %s3285_s30, 4294966784  ;;  %s5329_s21 = sld [smem:[#allocation13_spill]]  ;;  %s5330_s23 = sld [smem:[#allocation12_spill]] }
0x110a   : > { %s5331_s20 = sld [smem:[#allocation14_spill]]  ;;  %s5332_s18 = smov %s4304_s19 }
0x110f   : > { %p32_p12 = scmp.ge.s32.totalorder %s5329_s21, 4   ;;  %s5333_s19 = smov %s5330_s23 }
0x1111   :  { %34 = sbr.rel (!%p32_p12) target bundleno = 12 (0xc), region = 141 }
0x1118   :  { %3290 = vsyncpa [#allocation3], 1 }
0x1119   :  { %3292 = vsyncpa [#allocation3 + $0x1], 1 }
0x111a   :  { %3293 = vsyncpa [#allocation4], 1 }
0x111b   :  { %3295 = vsyncpa [#allocation4 + $0x1], 1 }
0x111c   :  { %3296 = vsyncpa [#allocation7], 1 }
0x111d   :  { %3298 = vsyncpa [#allocation7 + $0x1], 1 }

</bundles_post_ra>
